<compile_context>
chip_gen: v5e
topology: v5e:2x2
jax: 0.10.0
libtpu: 0.0.40
codegen_flags: <defaults>
</compile_context>

<pallas_src>
import functools
import math

import jax
import jax.numpy as jnp
from jax.experimental import pallas as pl
from jax.experimental.pallas import tpu as pltpu

LN_EPS = 1e-12          # ESPnet LayerNorm eps
MASK_NEG = -1e9         # additive mask (no -inf intermediates)


def _round_up(x, m):
    return ((x + m - 1) // m) * m


def _layer_norm(x, gamma, beta):
    # x: (M, D) f32; gamma/beta: (1, D) f32
    mean = jnp.mean(x, axis=-1, keepdims=True)
    xc = x - mean
    var = jnp.mean(xc * xc, axis=-1, keepdims=True)
    return xc * jax.lax.rsqrt(var + LN_EPS) * gamma + beta


# ----------------------------- fused decoder-layer kernel -----------------------------

def _decoder_layer_kernel(
        tgt_ref, mem_ref, tmask_ref, mmask_ref, ln_ref, bias_ref,
        wqkv_ref, wo1_ref, wq2_ref, wkv2_ref, wo2_ref, w1_ref, w2_ref,
        out_ref, *, num_heads, dkp, boff):
    bf16 = jnp.bfloat16
    bb, tq, d = tgt_ref.shape
    tk = mem_ref.shape[1]
    dff = w1_ref.shape[1]
    hd = num_heads * dkp
    m = bb * tq                       # batch folded into matmul M dimension

    def ln(xr, idx):
        return _layer_norm(xr, ln_ref[2 * idx:2 * idx + 1, :],
                           ln_ref[2 * idx + 1:2 * idx + 2, :])

    def bias(name, width):
        off = boff[name]
        return bias_ref[:, off:off + width]          # (1, width) f32

    def mha(q3, k3, v3, mask_add, row_keep, wo_ref):
        # q3: (bb, tq, H*dkp) bf16; k3/v3: (bb, tkv, H*dkp) bf16
        # mask_add: (bb, {1|tq}, tkv) f32 additive; row_keep: (bb, {1|tq}, 1)
        acc = jnp.zeros((m, d), jnp.float32)
        for h in range(num_heads):                   # static unroll; 128-aligned slices
            sl = slice(h * dkp, (h + 1) * dkp)
            s = jnp.einsum("bqd,bkd->bqk", q3[..., sl], k3[..., sl],
                           preferred_element_type=jnp.float32) + mask_add
            s = s - jnp.max(s, axis=-1, keepdims=True)
            e = jnp.exp(s)
            p = e * pl.reciprocal(jnp.sum(e, axis=-1, keepdims=True),
                                  approx=False)
            ctx = jnp.einsum("bqk,bkd->bqd", p.astype(bf16), v3[..., sl],
                             preferred_element_type=jnp.float32)
            ctx = ctx * row_keep                     # zero fully-masked query rows
            # output projection accumulated over heads == concat(heads) @ Wo
            acc = acc + jnp.dot(ctx.reshape(m, dkp).astype(bf16),
                                wo_ref[h * dkp:(h + 1) * dkp, :],
                                preferred_element_type=jnp.float32)
        return acc

    x = tgt_ref[...].reshape(m, d)                   # (M, D) f32 residual stream

    # masks -> additive bias + per-query "any key kept" flag (once per step)
    tkeep = tmask_ref[...]                           # (bb, {1|tq}, tq) f32 {1,0}
    mkeep = mmask_ref[...]                           # (bb, {1|tq}, tk)
    t_add = jnp.where(tkeep > 0.0, 0.0, MASK_NEG).astype(jnp.float32)
    m_add = jnp.where(mkeep > 0.0, 0.0, MASK_NEG).astype(jnp.float32)
    t_row = (jnp.max(tkeep, axis=-1, keepdims=True) > 0.0).astype(jnp.float32)
    m_row = (jnp.max(mkeep, axis=-1, keepdims=True) > 0.0).astype(jnp.float32)

    # ---- self-attention sub-layer: x = x + Wo @ MHA(LN1(x), LN1(x), LN1(x)) ----
    xn = ln(x, 0)
    qkv = jnp.dot(xn.astype(bf16), wqkv_ref[...],
                  preferred_element_type=jnp.float32) + bias("qkv", 3 * hd)
    qkv3 = qkv.reshape(bb, tq, 3 * hd).astype(bf16)
    x = x + mha(qkv3[..., :hd], qkv3[..., hd:2 * hd], qkv3[..., 2 * hd:],
                t_add, t_row, wo1_ref) + bias("o1", d)

    # ---- cross-attention sub-layer: x = x + Wo @ MHA(LN2(x), mem, mem) ----
    xn = ln(x, 1)
    q2 = jnp.dot(xn.astype(bf16), wq2_ref[...],
                 preferred_element_type=jnp.float32) + bias("q2", hd)
    kv2 = jnp.dot(mem_ref[...].reshape(bb * tk, d), wkv2_ref[...],
                  preferred_element_type=jnp.float32) + bias("kv2", 2 * hd)
    kv23 = kv2.reshape(bb, tk, 2 * hd).astype(bf16)
    x = x + mha(q2.reshape(bb, tq, hd).astype(bf16),
                kv23[..., :hd], kv23[..., hd:],
                m_add, m_row, wo2_ref) + bias("o2", d)

    # ---- position-wise feed-forward sub-layer ----
    xn = ln(x, 2)
    h1 = jnp.dot(xn.astype(bf16), w1_ref[...],
                 preferred_element_type=jnp.float32) + bias("f1", dff)
    h1 = jnp.maximum(h1, 0.0)
    y = jnp.dot(h1.astype(bf16), w2_ref[...],
                preferred_element_type=jnp.float32) + bias("f2", d)
    out_ref[...] = (x + y).reshape(bb, tq, d)


# ----------------------------- one-time host-side packing -----------------------------

def _pack_head_cols(w, b, num_heads, dk, dkp, scale=1.0):
    # columns grouped per head, each head zero-padded dk -> dkp (lane aligned)
    din = w.shape[0]
    wp = (w * scale).reshape(din, num_heads, dk)
    wp = jnp.pad(wp, ((0, 0), (0, 0), (0, dkp - dk))).reshape(din, num_heads * dkp)
    bp = (b * scale).reshape(1, num_heads, dk)
    bp = jnp.pad(bp, ((0, 0), (0, 0), (0, dkp - dk))).reshape(1, num_heads * dkp)
    return wp, bp


def _pack_head_rows(w, num_heads, dk, dkp):
    # rows grouped per head, each head zero-padded dk -> dkp
    dout = w.shape[1]
    wp = w.reshape(num_heads, dk, dout)
    wp = jnp.pad(wp, ((0, 0), (0, dkp - dk), (0, 0))).reshape(num_heads * dkp, dout)
    return wp


def pack_decoder_params(params, *, num_heads):
    """Pack / pre-cast once at parameter-init time (NOT per forward call)."""
    bf16 = jnp.bfloat16
    g1, b1 = params["norm1"]
    g2, b2 = params["norm2"]
    g3, b3 = params["norm3"]
    d_model = g1.shape[-1]
    dk = d_model // num_heads
    dkp = _round_up(dk, 128)            # lane-align each head (zero-pad is exact)
    scale = 1.0 / math.sqrt(dk)         # fold 1/sqrt(dk) into Q projections

    wq, bq, wk, bk, wv, bv, wo, bo = params["self_attn"]
    wq_p, bq_p = _pack_head_cols(wq, bq, num_heads, dk, dkp, scale)
    wk_p, bk_p = _pack_head_cols(wk, bk, num_heads, dk, dkp)
    wv_p, bv_p = _pack_head_cols(wv, bv, num_heads, dk, dkp)
    wqkv = jnp.concatenate([wq_p, wk_p, wv_p], axis=1).astype(bf16)   # (D, 3*H*dkp)
    bqkv = jnp.concatenate([bq_p, bk_p, bv_p], axis=1)
    wo1 = _pack_head_rows(wo, num_heads, dk, dkp).astype(bf16)        # (H*dkp, D)

    swq, sbq, swk, sbk, swv, sbv, swo, sbo = params["src_attn"]
    wq2, bq2 = _pack_head_cols(swq, sbq, num_heads, dk, dkp, scale)
    swk_p, sbk_p = _pack_head_cols(swk, sbk, num_heads, dk, dkp)
    swv_p, sbv_p = _pack_head_cols(swv, sbv, num_heads, dk, dkp)
    wkv2 = jnp.concatenate([swk_p, swv_p], axis=1).astype(bf16)       # (D, 2*H*dkp)
    bkv2 = jnp.concatenate([sbk_p, sbv_p], axis=1)
    wo2 = _pack_head_rows(swo, num_heads, dk, dkp).astype(bf16)

    w1, fb1, w2, fb2 = params["ffn"]

    # LN params: 6 tiny (1,D) vectors -> one (6, D) array.
    ln_pack = jnp.concatenate([g1, b1, g2, b2, g3, b3], axis=0).astype(jnp.float32)

    # All biases -> one lane-padded (1, NB) array with static offsets.
    segs = [("qkv", bqkv), ("o1", bo), ("q2", bq2), ("kv2", bkv2),
            ("o2", sbo), ("f1", fb1), ("f2", fb2)]
    boff, parts, off = {}, [], 0
    for name, arr in segs:
        wpad = _round_up(arr.shape[1], 128)
        boff[name] = off
        if wpad > arr.shape[1]:
            arr = jnp.pad(arr, ((0, 0), (0, wpad - arr.shape[1])))
        parts.append(arr.astype(jnp.float32))
        off += wpad
    bias_pack = jnp.concatenate(parts, axis=1)

    return dict(num_heads=num_heads, dkp=dkp, boff=boff,
                ln=ln_pack, bias=bias_pack,
                wqkv=wqkv, wo1=wo1,
                wq2=wq2.astype(bf16), wkv2=wkv2, wo2=wo2,
                w1=w1.astype(bf16), w2=w2.astype(bf16))


# ----------------------------- pallas wrapper -----------------------------

def decoder_layer(tgt, tgt_mask, memory, memory_mask, packed):
    """Fused Pallas DecoderLayer forward (cache=None path).

    tgt:    (B, Tq, D) f32      tgt_mask:    (B, 1 or Tq, Tq) {1=keep, 0=masked}
    memory: (B, Tk, D) f32      memory_mask: (B, 1 or Tq, Tk)
    Returns (x, tgt_mask, memory, memory_mask) like the PyTorch module.
    """
    B, Tq, D = tgt.shape
    H, dkp = packed["num_heads"], packed["dkp"]
    assert D % H == 0

    # Fold as many batch elements per grid step as possible so the projection /
    # FFN matmuls see >=128 M rows, while keeping grid > 1 for megacore split
    # when B is large.
    bb = B
    for cand in range(1, B + 1):
        if B % cand == 0 and cand * Tq >= 128:
            bb = cand
            break
    grid = (B // bb,)

    mem_bf16 = memory.astype(jnp.bfloat16)          # K/V source only -> bf16 is safe
    tmask = tgt_mask.astype(jnp.float32)
    mmask = memory_mask.astype(jnp.float32)

    weights = (packed["ln"], packed["bias"], packed["wqkv"], packed["wo1"],
               packed["wq2"], packed["wkv2"], packed["wo2"],
               packed["w1"], packed["w2"])

    def batched(shape):
        nd = len(shape)
        return pl.BlockSpec((bb,) + tuple(shape[1:]),
                            lambda g, _nd=nd: (g,) + (0,) * (_nd - 1))

    def whole(shape):
        nd = len(shape)
        return pl.BlockSpec(tuple(shape), lambda g, _nd=nd: (0,) * _nd)

    in_specs = [batched(tgt.shape), batched(memory.shape),
                batched(tmask.shape), batched(mmask.shape)]
    in_specs += [whole(w.shape) for w in weights]

    x = pl.pallas_call(
        functools.partial(_decoder_layer_kernel, num_heads=H, dkp=dkp,
                          boff=packed["boff"]),
        grid=grid,
        in_specs=in_specs,
        out_specs=pl.BlockSpec((bb, Tq, D), lambda g: (g, 0, 0)),
        out_shape=jax.ShapeDtypeStruct((B, Tq, D), jnp.float32),
        compiler_params=pltpu.CompilerParams(
            dimension_semantics=("parallel",)),
    )(tgt, mem_bf16, tmask, mmask, *weights)
    return x, tgt_mask, memory, memory_mask


# ----------------------------- reference (pure JAX, f32) -----------------------------

def _ref_ln(x, g, b):
    m = x.mean(-1, keepdims=True)
    v = ((x - m) ** 2).mean(-1, keepdims=True)
    return (x - m) / jnp.sqrt(v + LN_EPS) * g + b


def _ref_mha(q_in, kv_in, mask, p, num_heads):
    wq, bq, wk, bk, wv, bv, wo, bo = p
    q = q_in @ wq + bq
    k = kv_in @ wk + bk
    v = kv_in @ wv + bv
    B, Tq, D = q.shape
    Tk = k.shape[1]
    dk = D // num_heads
    q = q.reshape(B, Tq, num_heads, dk).transpose(0, 2, 1, 3)
    k = k.reshape(B, Tk, num_heads, dk).transpose(0, 2, 1, 3)
    v = v.reshape(B, Tk, num_heads, dk).transpose(0, 2, 1, 3)
    s = jnp.einsum("bhqd,bhkd->bhqk", q, k) / math.sqrt(dk)
    keep = mask[:, None, :, :] > 0
    s = jnp.where(keep, s, jnp.finfo(jnp.float32).min)
    a = jax.nn.softmax(s, axis=-1)
    a = jnp.where(keep, a, 0.0)
    ctx = jnp.einsum("bhqk,bhkd->bhqd", a, v).transpose(0, 2, 1, 3).reshape(B, Tq, D)
    return ctx @ wo + bo


def decoder_layer_reference(tgt, tgt_mask, memory, memory_mask, params, *, num_heads):
    g1, b1 = params["norm1"]
    g2, b2 = params["norm2"]
    g3, b3 = params["norm3"]
    tn = _ref_ln(tgt, g1, b1)
    x = tgt + _ref_mha(tn, tn, tgt_mask, params["self_attn"], num_heads)
    x = x + _ref_mha(_ref_ln(x, g2, b2), memory, memory_mask,
                     params["src_attn"], num_heads)
    xn = _ref_ln(x, g3, b3)
    w1, fb1, w2, fb2 = params["ffn"]
    return x + (jnp.maximum(xn @ w1 + fb1, 0.0) @ w2 + fb2)


# ----------------------------- setup & main -----------------------------

def init_params(key, d_model, d_ff):
    ks = jax.random.split(key, 3)

    def w(k, shape):
        return (jax.random.normal(k, shape) / math.sqrt(shape[0])).astype(jnp.float32)

    def bias(k, n):
        return (0.1 * jax.random.normal(k, (1, n))).astype(jnp.float32)

    def attn(k):
        kk = jax.random.split(k, 8)
        return (w(kk[0], (d_model, d_model)), bias(kk[1], d_model),
                w(kk[2], (d_model, d_model)), bias(kk[3], d_model),
                w(kk[4], (d_model, d_model)), bias(kk[5], d_model),
                w(kk[6], (d_model, d_model)), bias(kk[7], d_model))

    kf = jax.random.split(ks[2], 4)
    ln = lambda: (jnp.ones((1, d_model), jnp.float32),
                  jnp.zeros((1, d_model), jnp.float32))
    return {
        "norm1": ln(), "norm2": ln(), "norm3": ln(),
        "self_attn": attn(ks[0]),
        "src_attn": attn(ks[1]),
        "ffn": (w(kf[0], (d_model, d_ff)), bias(kf[1], d_ff),
                w(kf[2], (d_ff, d_model)), bias(kf[3], d_model)),
    }


if __name__ == "__main__":
    B, T_OUT, T_IN, D, H, D_FF = 2, 8, 16, 128, 4, 256

    key = jax.random.PRNGKey(0)
    k_tgt, k_mem, k_par = jax.random.split(key, 3)

    tgt = jax.random.normal(k_tgt, (B, T_OUT, D), dtype=jnp.float32)
    memory = jax.random.normal(k_mem, (B, T_IN, D), dtype=jnp.float32)

    # ESPnet-style masks: causal & padding for the target (B, Tq, Tq),
    # key-padding only for the encoder memory (B, 1, Tk). 1.0 = keep.
    tgt_lens = jnp.array([T_OUT, T_OUT - 2])
    mem_lens = jnp.array([T_IN, T_IN - 4])
    pad_t = jnp.arange(T_OUT)[None, None, :] < tgt_lens[:, None, None]
    causal = jnp.arange(T_OUT)[None, :, None] >= jnp.arange(T_OUT)[None, None, :]
    tgt_mask = (pad_t & causal).astype(jnp.float32)                       # (B, Tq, Tq)
    memory_mask = (jnp.arange(T_IN)[None, None, :]
                   < mem_lens[:, None, None]).astype(jnp.float32)         # (B, 1, Tk)

    params = init_params(k_par, D, D_FF)
    packed = pack_decoder_params(params, num_heads=H)   # one-time packing

    x, out_tgt_mask, out_mem, out_mem_mask = decoder_layer(
        tgt, tgt_mask, memory, memory_mask, packed)
    x = jax.block_until_ready(x)

    x_ref = decoder_layer_reference(tgt, tgt_mask, memory, memory_mask,
                                    params, num_heads=H)
    err = jnp.max(jnp.abs(x - x_ref))
    assert x.shape == (B, T_OUT, D)
    # Tolerance accounts for bf16 MXU operands vs. the pure-f32 reference.
    assert jnp.allclose(x, x_ref, rtol=5e-2, atol=5e-2), f"max err {err}"
    print("KERNEL_OK")
</pallas_src>

<mosaic_0001>
module attributes {stable_mosaic.version = 11 : i64} {
  func.func @_decoder_layer_kernel(%arg0: i32, %arg1: memref<2x8x128xf32, #tpu.memory_space<vmem>>, %arg2: memref<2x16x128xbf16, #tpu.memory_space<vmem>>, %arg3: memref<2x8x8xf32, #tpu.memory_space<vmem>>, %arg4: memref<2x1x16xf32, #tpu.memory_space<vmem>>, %arg5: memref<6x128xf32, #tpu.memory_space<vmem>>, %arg6: memref<1x3712xf32, #tpu.memory_space<vmem>>, %arg7: memref<128x1536xbf16, #tpu.memory_space<vmem>>, %arg8: memref<512x128xbf16, #tpu.memory_space<vmem>>, %arg9: memref<128x512xbf16, #tpu.memory_space<vmem>>, %arg10: memref<128x1024xbf16, #tpu.memory_space<vmem>>, %arg11: memref<512x128xbf16, #tpu.memory_space<vmem>>, %arg12: memref<128x256xbf16, #tpu.memory_space<vmem>>, %arg13: memref<256x128xbf16, #tpu.memory_space<vmem>>, %arg14: memref<2x8x128xf32, #tpu.memory_space<vmem>>) attributes {dimension_semantics = [#tpu.dimension_semantics<parallel>], iteration_bounds = array<i64: 1>, scalar_prefetch = 0 : i64, scratch_operands = 0 : i64, tpu.core_type = #tpu.core_type<tc>, window_params = [{transform_indices = @transform_0, window_bounds = array<i64: 2, 8, 128>}, {transform_indices = @transform_1, window_bounds = array<i64: 2, 16, 128>}, {transform_indices = @transform_2, window_bounds = array<i64: 2, 8, 8>}, {transform_indices = @transform_3, window_bounds = array<i64: 2, 1, 16>}, {pipeline_mode = #tpu.pipeline_mode<synchronous>, transform_indices = @transform_4, window_bounds = array<i64: 6, 128>}, {pipeline_mode = #tpu.pipeline_mode<synchronous>, transform_indices = @transform_5, window_bounds = array<i64: 1, 3712>}, {pipeline_mode = #tpu.pipeline_mode<synchronous>, transform_indices = @transform_6, window_bounds = array<i64: 128, 1536>}, {pipeline_mode = #tpu.pipeline_mode<synchronous>, transform_indices = @transform_7, window_bounds = array<i64: 512, 128>}, {pipeline_mode = #tpu.pipeline_mode<synchronous>, transform_indices = @transform_8, window_bounds = array<i64: 128, 512>}, {pipeline_mode = #tpu.pipeline_mode<synchronous>, transform_indices = @transform_9, window_bounds = array<i64: 128, 1024>}, {pipeline_mode = #tpu.pipeline_mode<synchronous>, transform_indices = @transform_10, window_bounds = array<i64: 512, 128>}, {pipeline_mode = #tpu.pipeline_mode<synchronous>, transform_indices = @transform_11, window_bounds = array<i64: 128, 256>}, {pipeline_mode = #tpu.pipeline_mode<synchronous>, transform_indices = @transform_12, window_bounds = array<i64: 256, 128>}, {transform_indices = @transform_13, window_bounds = array<i64: 2, 8, 128>}]} {
    %c0 = arith.constant 0 : index
    %c0_0 = arith.constant 0 : index
    %c0_1 = arith.constant 0 : index
    %0 = vector.load %arg1[%c0, %c0_0, %c0_1] : memref<2x8x128xf32, #tpu.memory_space<vmem>>, vector<2x8x128xf32>
    %1 = vector.shape_cast %0 : vector<2x8x128xf32> to vector<16x128xf32>
    %c0_2 = arith.constant 0 : index
    %c0_3 = arith.constant 0 : index
    %c0_4 = arith.constant 0 : index
    %2 = vector.load %arg3[%c0_2, %c0_3, %c0_4] : memref<2x8x8xf32, #tpu.memory_space<vmem>>, vector<2x8x8xf32>
    %c0_5 = arith.constant 0 : index
    %c0_6 = arith.constant 0 : index
    %c0_7 = arith.constant 0 : index
    %3 = vector.load %arg4[%c0_5, %c0_6, %c0_7] : memref<2x1x16xf32, #tpu.memory_space<vmem>>, vector<2x1x16xf32>
    %cst = arith.constant 0.000000e+00 : f32
    %4 = vector.broadcast %cst : f32 to vector<2x8x8xf32>
    %5 = arith.cmpf ogt, %2, %4 : vector<2x8x8xf32>
    %cst_8 = arith.constant 0.000000e+00 : f32
    %cst_9 = arith.constant -1.000000e+09 : f32
    %6 = vector.broadcast %cst_8 : f32 to vector<2x8x8xf32>
    %7 = vector.broadcast %cst_9 : f32 to vector<2x8x8xf32>
    %8 = arith.select %5, %6, %7 : vector<2x8x8xi1>, vector<2x8x8xf32>
    %cst_10 = arith.constant 0.000000e+00 : f32
    %9 = vector.broadcast %cst_10 : f32 to vector<2x1x16xf32>
    %10 = arith.cmpf ogt, %3, %9 : vector<2x1x16xf32>
    %cst_11 = arith.constant 0.000000e+00 : f32
    %cst_12 = arith.constant -1.000000e+09 : f32
    %11 = vector.broadcast %cst_11 : f32 to vector<2x1x16xf32>
    %12 = vector.broadcast %cst_12 : f32 to vector<2x1x16xf32>
    %13 = arith.select %10, %11, %12 : vector<2x1x16xi1>, vector<2x1x16xf32>
    %cst_13 = arith.constant dense<0xFF800000> : vector<2x8xf32>
    %14 = vector.multi_reduction <maximumf>, %2, %cst_13 [2] : vector<2x8x8xf32> to vector<2x8xf32>
    %15 = vector.shape_cast %14 : vector<2x8xf32> to vector<2x8x1xf32>
    %cst_14 = arith.constant 0.000000e+00 : f32
    %16 = vector.broadcast %cst_14 : f32 to vector<2x8x1xf32>
    %17 = arith.cmpf ogt, %15, %16 : vector<2x8x1xf32>
    %18 = arith.extui %17 : vector<2x8x1xi1> to vector<2x8x1xi32>
    %19 = arith.sitofp %18 : vector<2x8x1xi32> to vector<2x8x1xf32>
    %cst_15 = arith.constant dense<0xFF800000> : vector<2x1xf32>
    %20 = vector.multi_reduction <maximumf>, %3, %cst_15 [2] : vector<2x1x16xf32> to vector<2x1xf32>
    %21 = vector.shape_cast %20 : vector<2x1xf32> to vector<2x1x1xf32>
    %cst_16 = arith.constant 0.000000e+00 : f32
    %22 = vector.broadcast %cst_16 : f32 to vector<2x1x1xf32>
    %23 = arith.cmpf ogt, %21, %22 : vector<2x1x1xf32>
    %24 = arith.extui %23 : vector<2x1x1xi1> to vector<2x1x1xi32>
    %25 = arith.sitofp %24 : vector<2x1x1xi32> to vector<2x1x1xf32>
    %c0_17 = arith.constant 0 : index
    %c0_18 = arith.constant 0 : index
    %26 = vector.load %arg5[%c0_17, %c0_18] : memref<6x128xf32, #tpu.memory_space<vmem>>, vector<1x128xf32>
    %c1 = arith.constant 1 : index
    %c0_19 = arith.constant 0 : index
    %27 = vector.load %arg5[%c1, %c0_19] : memref<6x128xf32, #tpu.memory_space<vmem>>, vector<1x128xf32>
    %cst_20 = arith.constant dense<0.000000e+00> : vector<16xf32>
    %28 = vector.multi_reduction <add>, %1, %cst_20 [1] : vector<16x128xf32> to vector<16xf32>
    %29 = vector.shape_cast %28 : vector<16xf32> to vector<16x1xf32>
    %cst_21 = arith.constant 1.280000e+02 : f32
    %30 = vector.broadcast %cst_21 : f32 to vector<16x1xf32>
    %31 = arith.divf %29, %30 : vector<16x1xf32>
    %32 = vector.broadcast %31 : vector<16x1xf32> to vector<16x128xf32>
    %33 = arith.subf %1, %32 : vector<16x128xf32>
    %34 = arith.mulf %33, %33 : vector<16x128xf32>
    %cst_22 = arith.constant dense<0.000000e+00> : vector<16xf32>
    %35 = vector.multi_reduction <add>, %34, %cst_22 [1] : vector<16x128xf32> to vector<16xf32>
    %36 = vector.shape_cast %35 : vector<16xf32> to vector<16x1xf32>
    %cst_23 = arith.constant 1.280000e+02 : f32
    %37 = vector.broadcast %cst_23 : f32 to vector<16x1xf32>
    %38 = arith.divf %36, %37 : vector<16x1xf32>
    %cst_24 = arith.constant 9.99999996E-13 : f32
    %39 = vector.broadcast %cst_24 : f32 to vector<16x1xf32>
    %40 = arith.addf %38, %39 : vector<16x1xf32>
    %41 = math.rsqrt %40 : vector<16x1xf32>
    %42 = vector.broadcast %41 : vector<16x1xf32> to vector<16x128xf32>
    %43 = arith.mulf %33, %42 : vector<16x128xf32>
    %44 = vector.broadcast %26 : vector<1x128xf32> to vector<16x128xf32>
    %45 = arith.mulf %43, %44 : vector<16x128xf32>
    %46 = vector.broadcast %27 : vector<1x128xf32> to vector<16x128xf32>
    %47 = arith.addf %45, %46 : vector<16x128xf32>
    %48 = arith.truncf %47 : vector<16x128xf32> to vector<16x128xbf16>
    %c0_25 = arith.constant 0 : index
    %c0_26 = arith.constant 0 : index
    %49 = vector.load %arg7[%c0_25, %c0_26] : memref<128x1536xbf16, #tpu.memory_space<vmem>>, vector<128x1536xbf16>
    %cst_27 = arith.constant dense<0.000000e+00> : vector<16x1536xf32>
    %50 = tpu.matmul %48, %49, %cst_27 {dimension_numbers = #tpu.dot_dimension_numbers<[1], [0], [0], [1], [0, 0, 1, 1], [], []>} : vector<16x128xbf16>, vector<128x1536xbf16>, vector<16x1536xf32> -> vector<16x1536xf32>
    %c0_28 = arith.constant 0 : index
    %c0_29 = arith.constant 0 : index
    %51 = vector.load %arg6[%c0_28, %c0_29] : memref<1x3712xf32, #tpu.memory_space<vmem>>, vector<1x1536xf32>
    %52 = vector.broadcast %51 : vector<1x1536xf32> to vector<16x1536xf32>
    %53 = arith.addf %50, %52 : vector<16x1536xf32>
    %54 = vector.shape_cast %53 : vector<16x1536xf32> to vector<2x8x1536xf32>
    %55 = arith.truncf %54 : vector<2x8x1536xf32> to vector<2x8x1536xbf16>
    %56 = vector.extract_strided_slice %55 {offsets = [0, 0, 0], sizes = [2, 8, 512], strides = [1, 1, 1]} : vector<2x8x1536xbf16> to vector<2x8x512xbf16>
    %57 = vector.extract_strided_slice %55 {offsets = [0, 0, 512], sizes = [2, 8, 512], strides = [1, 1, 1]} : vector<2x8x1536xbf16> to vector<2x8x512xbf16>
    %58 = vector.extract_strided_slice %55 {offsets = [0, 0, 1024], sizes = [2, 8, 512], strides = [1, 1, 1]} : vector<2x8x1536xbf16> to vector<2x8x512xbf16>
    %cst_30 = arith.constant 0.000000e+00 : f32
    %59 = vector.broadcast %cst_30 : f32 to vector<16x128xf32>
    %60 = vector.extract_strided_slice %56 {offsets = [0, 0, 0], sizes = [2, 8, 128], strides = [1, 1, 1]} : vector<2x8x512xbf16> to vector<2x8x128xbf16>
    %61 = vector.extract_strided_slice %57 {offsets = [0, 0, 0], sizes = [2, 8, 128], strides = [1, 1, 1]} : vector<2x8x512xbf16> to vector<2x8x128xbf16>
    "tpu.trace_start"() <{level = 10 : i32, message = "bqd,bkd->bqk"}> : () -> ()
    %cst_31 = arith.constant dense<0.000000e+00> : vector<2x8x8xf32>
    %62 = tpu.matmul %60, %61, %cst_31 {dimension_numbers = #tpu.dot_dimension_numbers<[2], [2], [1], [1], [0, 0, 0, 1, 1, 1], [0], [0]>} : vector<2x8x128xbf16>, vector<2x8x128xbf16>, vector<2x8x8xf32> -> vector<2x8x8xf32>
    "tpu.trace_stop"() : () -> ()
    %63 = arith.addf %62, %8 : vector<2x8x8xf32>
    %cst_32 = arith.constant dense<0xFF800000> : vector<2x8xf32>
    %64 = vector.multi_reduction <maximumf>, %63, %cst_32 [2] : vector<2x8x8xf32> to vector<2x8xf32>
    %65 = vector.shape_cast %64 : vector<2x8xf32> to vector<2x8x1xf32>
    %66 = vector.broadcast %65 : vector<2x8x1xf32> to vector<2x8x8xf32>
    %67 = arith.subf %63, %66 : vector<2x8x8xf32>
    %68 = math.exp %67 : vector<2x8x8xf32>
    %cst_33 = arith.constant dense<0.000000e+00> : vector<2x8xf32>
    %69 = vector.multi_reduction <add>, %68, %cst_33 [2] : vector<2x8x8xf32> to vector<2x8xf32>
    %70 = vector.shape_cast %69 : vector<2x8xf32> to vector<2x8x1xf32>
    %71 = tpu.reciprocal %70 : vector<2x8x1xf32> -> vector<2x8x1xf32>
    %72 = vector.broadcast %71 : vector<2x8x1xf32> to vector<2x8x8xf32>
    %73 = arith.mulf %68, %72 : vector<2x8x8xf32>
    %74 = arith.truncf %73 : vector<2x8x8xf32> to vector<2x8x8xbf16>
    %75 = vector.extract_strided_slice %58 {offsets = [0, 0, 0], sizes = [2, 8, 128], strides = [1, 1, 1]} : vector<2x8x512xbf16> to vector<2x8x128xbf16>
    "tpu.trace_start"() <{level = 10 : i32, message = "bqk,bkd->bqd"}> : () -> ()
    %cst_34 = arith.constant dense<0.000000e+00> : vector<2x8x128xf32>
    %76 = tpu.matmul %74, %75, %cst_34 {dimension_numbers = #tpu.dot_dimension_numbers<[2], [1], [1], [2], [0, 0, 0, 1, 1, 2], [0], [0]>} : vector<2x8x8xbf16>, vector<2x8x128xbf16>, vector<2x8x128xf32> -> vector<2x8x128xf32>
    "tpu.trace_stop"() : () -> ()
    %77 = vector.broadcast %19 : vector<2x8x1xf32> to vector<2x8x128xf32>
    %78 = arith.mulf %76, %77 : vector<2x8x128xf32>
    %79 = vector.shape_cast %78 : vector<2x8x128xf32> to vector<16x128xf32>
    %80 = arith.truncf %79 : vector<16x128xf32> to vector<16x128xbf16>
    %c0_35 = arith.constant 0 : index
    %c0_36 = arith.constant 0 : index
    %81 = vector.load %arg8[%c0_35, %c0_36] : memref<512x128xbf16, #tpu.memory_space<vmem>>, vector<128x128xbf16>
    %cst_37 = arith.constant dense<0.000000e+00> : vector<16x128xf32>
    %82 = tpu.matmul %80, %81, %cst_37 {dimension_numbers = #tpu.dot_dimension_numbers<[1], [0], [0], [1], [0, 0, 1, 1], [], []>} : vector<16x128xbf16>, vector<128x128xbf16>, vector<16x128xf32> -> vector<16x128xf32>
    %83 = arith.addf %59, %82 : vector<16x128xf32>
    %84 = vector.extract_strided_slice %56 {offsets = [0, 0, 128], sizes = [2, 8, 128], strides = [1, 1, 1]} : vector<2x8x512xbf16> to vector<2x8x128xbf16>
    %85 = vector.extract_strided_slice %57 {offsets = [0, 0, 128], sizes = [2, 8, 128], strides = [1, 1, 1]} : vector<2x8x512xbf16> to vector<2x8x128xbf16>
    "tpu.trace_start"() <{level = 10 : i32, message = "bqd,bkd->bqk"}> : () -> ()
    %cst_38 = arith.constant dense<0.000000e+00> : vector<2x8x8xf32>
    %86 = tpu.matmul %84, %85, %cst_38 {dimension_numbers = #tpu.dot_dimension_numbers<[2], [2], [1], [1], [0, 0, 0, 1, 1, 1], [0], [0]>} : vector<2x8x128xbf16>, vector<2x8x128xbf16>, vector<2x8x8xf32> -> vector<2x8x8xf32>
    "tpu.trace_stop"() : () -> ()
    %87 = arith.addf %86, %8 : vector<2x8x8xf32>
    %cst_39 = arith.constant dense<0xFF800000> : vector<2x8xf32>
    %88 = vector.multi_reduction <maximumf>, %87, %cst_39 [2] : vector<2x8x8xf32> to vector<2x8xf32>
    %89 = vector.shape_cast %88 : vector<2x8xf32> to vector<2x8x1xf32>
    %90 = vector.broadcast %89 : vector<2x8x1xf32> to vector<2x8x8xf32>
    %91 = arith.subf %87, %90 : vector<2x8x8xf32>
    %92 = math.exp %91 : vector<2x8x8xf32>
    %cst_40 = arith.constant dense<0.000000e+00> : vector<2x8xf32>
    %93 = vector.multi_reduction <add>, %92, %cst_40 [2] : vector<2x8x8xf32> to vector<2x8xf32>
    %94 = vector.shape_cast %93 : vector<2x8xf32> to vector<2x8x1xf32>
    %95 = tpu.reciprocal %94 : vector<2x8x1xf32> -> vector<2x8x1xf32>
    %96 = vector.broadcast %95 : vector<2x8x1xf32> to vector<2x8x8xf32>
    %97 = arith.mulf %92, %96 : vector<2x8x8xf32>
    %98 = arith.truncf %97 : vector<2x8x8xf32> to vector<2x8x8xbf16>
    %99 = vector.extract_strided_slice %58 {offsets = [0, 0, 128], sizes = [2, 8, 128], strides = [1, 1, 1]} : vector<2x8x512xbf16> to vector<2x8x128xbf16>
    "tpu.trace_start"() <{level = 10 : i32, message = "bqk,bkd->bqd"}> : () -> ()
    %cst_41 = arith.constant dense<0.000000e+00> : vector<2x8x128xf32>
    %100 = tpu.matmul %98, %99, %cst_41 {dimension_numbers = #tpu.dot_dimension_numbers<[2], [1], [1], [2], [0, 0, 0, 1, 1, 2], [0], [0]>} : vector<2x8x8xbf16>, vector<2x8x128xbf16>, vector<2x8x128xf32> -> vector<2x8x128xf32>
    "tpu.trace_stop"() : () -> ()
    %101 = vector.broadcast %19 : vector<2x8x1xf32> to vector<2x8x128xf32>
    %102 = arith.mulf %100, %101 : vector<2x8x128xf32>
    %103 = vector.shape_cast %102 : vector<2x8x128xf32> to vector<16x128xf32>
    %104 = arith.truncf %103 : vector<16x128xf32> to vector<16x128xbf16>
    %c128 = arith.constant 128 : index
    %c0_42 = arith.constant 0 : index
    %105 = vector.load %arg8[%c128, %c0_42] : memref<512x128xbf16, #tpu.memory_space<vmem>>, vector<128x128xbf16>
    %cst_43 = arith.constant dense<0.000000e+00> : vector<16x128xf32>
    %106 = tpu.matmul %104, %105, %cst_43 {dimension_numbers = #tpu.dot_dimension_numbers<[1], [0], [0], [1], [0, 0, 1, 1], [], []>} : vector<16x128xbf16>, vector<128x128xbf16>, vector<16x128xf32> -> vector<16x128xf32>
    %107 = arith.addf %83, %106 : vector<16x128xf32>
    %108 = vector.extract_strided_slice %56 {offsets = [0, 0, 256], sizes = [2, 8, 128], strides = [1, 1, 1]} : vector<2x8x512xbf16> to vector<2x8x128xbf16>
    %109 = vector.extract_strided_slice %57 {offsets = [0, 0, 256], sizes = [2, 8, 128], strides = [1, 1, 1]} : vector<2x8x512xbf16> to vector<2x8x128xbf16>
    "tpu.trace_start"() <{level = 10 : i32, message = "bqd,bkd->bqk"}> : () -> ()
    %cst_44 = arith.constant dense<0.000000e+00> : vector<2x8x8xf32>
    %110 = tpu.matmul %108, %109, %cst_44 {dimension_numbers = #tpu.dot_dimension_numbers<[2], [2], [1], [1], [0, 0, 0, 1, 1, 1], [0], [0]>} : vector<2x8x128xbf16>, vector<2x8x128xbf16>, vector<2x8x8xf32> -> vector<2x8x8xf32>
    "tpu.trace_stop"() : () -> ()
    %111 = arith.addf %110, %8 : vector<2x8x8xf32>
    %cst_45 = arith.constant dense<0xFF800000> : vector<2x8xf32>
    %112 = vector.multi_reduction <maximumf>, %111, %cst_45 [2] : vector<2x8x8xf32> to vector<2x8xf32>
    %113 = vector.shape_cast %112 : vector<2x8xf32> to vector<2x8x1xf32>
    %114 = vector.broadcast %113 : vector<2x8x1xf32> to vector<2x8x8xf32>
    %115 = arith.subf %111, %114 : vector<2x8x8xf32>
    %116 = math.exp %115 : vector<2x8x8xf32>
    %cst_46 = arith.constant dense<0.000000e+00> : vector<2x8xf32>
    %117 = vector.multi_reduction <add>, %116, %cst_46 [2] : vector<2x8x8xf32> to vector<2x8xf32>
    %118 = vector.shape_cast %117 : vector<2x8xf32> to vector<2x8x1xf32>
    %119 = tpu.reciprocal %118 : vector<2x8x1xf32> -> vector<2x8x1xf32>
    %120 = vector.broadcast %119 : vector<2x8x1xf32> to vector<2x8x8xf32>
    %121 = arith.mulf %116, %120 : vector<2x8x8xf32>
    %122 = arith.truncf %121 : vector<2x8x8xf32> to vector<2x8x8xbf16>
    %123 = vector.extract_strided_slice %58 {offsets = [0, 0, 256], sizes = [2, 8, 128], strides = [1, 1, 1]} : vector<2x8x512xbf16> to vector<2x8x128xbf16>
    "tpu.trace_start"() <{level = 10 : i32, message = "bqk,bkd->bqd"}> : () -> ()
    %cst_47 = arith.constant dense<0.000000e+00> : vector<2x8x128xf32>
    %124 = tpu.matmul %122, %123, %cst_47 {dimension_numbers = #tpu.dot_dimension_numbers<[2], [1], [1], [2], [0, 0, 0, 1, 1, 2], [0], [0]>} : vector<2x8x8xbf16>, vector<2x8x128xbf16>, vector<2x8x128xf32> -> vector<2x8x128xf32>
    "tpu.trace_stop"() : () -> ()
    %125 = vector.broadcast %19 : vector<2x8x1xf32> to vector<2x8x128xf32>
    %126 = arith.mulf %124, %125 : vector<2x8x128xf32>
    %127 = vector.shape_cast %126 : vector<2x8x128xf32> to vector<16x128xf32>
    %128 = arith.truncf %127 : vector<16x128xf32> to vector<16x128xbf16>
    %c256 = arith.constant 256 : index
    %c0_48 = arith.constant 0 : index
    %129 = vector.load %arg8[%c256, %c0_48] : memref<512x128xbf16, #tpu.memory_space<vmem>>, vector<128x128xbf16>
    %cst_49 = arith.constant dense<0.000000e+00> : vector<16x128xf32>
    %130 = tpu.matmul %128, %129, %cst_49 {dimension_numbers = #tpu.dot_dimension_numbers<[1], [0], [0], [1], [0, 0, 1, 1], [], []>} : vector<16x128xbf16>, vector<128x128xbf16>, vector<16x128xf32> -> vector<16x128xf32>
    %131 = arith.addf %107, %130 : vector<16x128xf32>
    %132 = vector.extract_strided_slice %56 {offsets = [0, 0, 384], sizes = [2, 8, 128], strides = [1, 1, 1]} : vector<2x8x512xbf16> to vector<2x8x128xbf16>
    %133 = vector.extract_strided_slice %57 {offsets = [0, 0, 384], sizes = [2, 8, 128], strides = [1, 1, 1]} : vector<2x8x512xbf16> to vector<2x8x128xbf16>
    "tpu.trace_start"() <{level = 10 : i32, message = "bqd,bkd->bqk"}> : () -> ()
    %cst_50 = arith.constant dense<0.000000e+00> : vector<2x8x8xf32>
    %134 = tpu.matmul %132, %133, %cst_50 {dimension_numbers = #tpu.dot_dimension_numbers<[2], [2], [1], [1], [0, 0, 0, 1, 1, 1], [0], [0]>} : vector<2x8x128xbf16>, vector<2x8x128xbf16>, vector<2x8x8xf32> -> vector<2x8x8xf32>
    "tpu.trace_stop"() : () -> ()
    %135 = arith.addf %134, %8 : vector<2x8x8xf32>
    %cst_51 = arith.constant dense<0xFF800000> : vector<2x8xf32>
    %136 = vector.multi_reduction <maximumf>, %135, %cst_51 [2] : vector<2x8x8xf32> to vector<2x8xf32>
    %137 = vector.shape_cast %136 : vector<2x8xf32> to vector<2x8x1xf32>
    %138 = vector.broadcast %137 : vector<2x8x1xf32> to vector<2x8x8xf32>
    %139 = arith.subf %135, %138 : vector<2x8x8xf32>
    %140 = math.exp %139 : vector<2x8x8xf32>
    %cst_52 = arith.constant dense<0.000000e+00> : vector<2x8xf32>
    %141 = vector.multi_reduction <add>, %140, %cst_52 [2] : vector<2x8x8xf32> to vector<2x8xf32>
    %142 = vector.shape_cast %141 : vector<2x8xf32> to vector<2x8x1xf32>
    %143 = tpu.reciprocal %142 : vector<2x8x1xf32> -> vector<2x8x1xf32>
    %144 = vector.broadcast %143 : vector<2x8x1xf32> to vector<2x8x8xf32>
    %145 = arith.mulf %140, %144 : vector<2x8x8xf32>
    %146 = arith.truncf %145 : vector<2x8x8xf32> to vector<2x8x8xbf16>
    %147 = vector.extract_strided_slice %58 {offsets = [0, 0, 384], sizes = [2, 8, 128], strides = [1, 1, 1]} : vector<2x8x512xbf16> to vector<2x8x128xbf16>
    "tpu.trace_start"() <{level = 10 : i32, message = "bqk,bkd->bqd"}> : () -> ()
    %cst_53 = arith.constant dense<0.000000e+00> : vector<2x8x128xf32>
    %148 = tpu.matmul %146, %147, %cst_53 {dimension_numbers = #tpu.dot_dimension_numbers<[2], [1], [1], [2], [0, 0, 0, 1, 1, 2], [0], [0]>} : vector<2x8x8xbf16>, vector<2x8x128xbf16>, vector<2x8x128xf32> -> vector<2x8x128xf32>
    "tpu.trace_stop"() : () -> ()
    %149 = vector.broadcast %19 : vector<2x8x1xf32> to vector<2x8x128xf32>
    %150 = arith.mulf %148, %149 : vector<2x8x128xf32>
    %151 = vector.shape_cast %150 : vector<2x8x128xf32> to vector<16x128xf32>
    %152 = arith.truncf %151 : vector<16x128xf32> to vector<16x128xbf16>
    %c384 = arith.constant 384 : index
    %c0_54 = arith.constant 0 : index
    %153 = vector.load %arg8[%c384, %c0_54] : memref<512x128xbf16, #tpu.memory_space<vmem>>, vector<128x128xbf16>
    %cst_55 = arith.constant dense<0.000000e+00> : vector<16x128xf32>
    %154 = tpu.matmul %152, %153, %cst_55 {dimension_numbers = #tpu.dot_dimension_numbers<[1], [0], [0], [1], [0, 0, 1, 1], [], []>} : vector<16x128xbf16>, vector<128x128xbf16>, vector<16x128xf32> -> vector<16x128xf32>
    %155 = arith.addf %131, %154 : vector<16x128xf32>
    %156 = arith.addf %1, %155 : vector<16x128xf32>
    %c0_56 = arith.constant 0 : index
    %c1536 = arith.constant 1536 : index
    %157 = vector.load %arg6[%c0_56, %c1536] : memref<1x3712xf32, #tpu.memory_space<vmem>>, vector<1x128xf32>
    %158 = vector.broadcast %157 : vector<1x128xf32> to vector<16x128xf32>
    %159 = arith.addf %156, %158 : vector<16x128xf32>
    %c2 = arith.constant 2 : index
    %c0_57 = arith.constant 0 : index
    %160 = vector.load %arg5[%c2, %c0_57] : memref<6x128xf32, #tpu.memory_space<vmem>>, vector<1x128xf32>
    %c3 = arith.constant 3 : index
    %c0_58 = arith.constant 0 : index
    %161 = vector.load %arg5[%c3, %c0_58] : memref<6x128xf32, #tpu.memory_space<vmem>>, vector<1x128xf32>
    %cst_59 = arith.constant dense<0.000000e+00> : vector<16xf32>
    %162 = vector.multi_reduction <add>, %159, %cst_59 [1] : vector<16x128xf32> to vector<16xf32>
    %163 = vector.shape_cast %162 : vector<16xf32> to vector<16x1xf32>
    %cst_60 = arith.constant 1.280000e+02 : f32
    %164 = vector.broadcast %cst_60 : f32 to vector<16x1xf32>
    %165 = arith.divf %163, %164 : vector<16x1xf32>
    %166 = vector.broadcast %165 : vector<16x1xf32> to vector<16x128xf32>
    %167 = arith.subf %159, %166 : vector<16x128xf32>
    %168 = arith.mulf %167, %167 : vector<16x128xf32>
    %cst_61 = arith.constant dense<0.000000e+00> : vector<16xf32>
    %169 = vector.multi_reduction <add>, %168, %cst_61 [1] : vector<16x128xf32> to vector<16xf32>
    %170 = vector.shape_cast %169 : vector<16xf32> to vector<16x1xf32>
    %cst_62 = arith.constant 1.280000e+02 : f32
    %171 = vector.broadcast %cst_62 : f32 to vector<16x1xf32>
    %172 = arith.divf %170, %171 : vector<16x1xf32>
    %cst_63 = arith.constant 9.99999996E-13 : f32
    %173 = vector.broadcast %cst_63 : f32 to vector<16x1xf32>
    %174 = arith.addf %172, %173 : vector<16x1xf32>
    %175 = math.rsqrt %174 : vector<16x1xf32>
    %176 = vector.broadcast %175 : vector<16x1xf32> to vector<16x128xf32>
    %177 = arith.mulf %167, %176 : vector<16x128xf32>
    %178 = vector.broadcast %160 : vector<1x128xf32> to vector<16x128xf32>
    %179 = arith.mulf %177, %178 : vector<16x128xf32>
    %180 = vector.broadcast %161 : vector<1x128xf32> to vector<16x128xf32>
    %181 = arith.addf %179, %180 : vector<16x128xf32>
    %182 = arith.truncf %181 : vector<16x128xf32> to vector<16x128xbf16>
    %c0_64 = arith.constant 0 : index
    %c0_65 = arith.constant 0 : index
    %183 = vector.load %arg9[%c0_64, %c0_65] : memref<128x512xbf16, #tpu.memory_space<vmem>>, vector<128x512xbf16>
    %cst_66 = arith.constant dense<0.000000e+00> : vector<16x512xf32>
    %184 = tpu.matmul %182, %183, %cst_66 {dimension_numbers = #tpu.dot_dimension_numbers<[1], [0], [0], [1], [0, 0, 1, 1], [], []>} : vector<16x128xbf16>, vector<128x512xbf16>, vector<16x512xf32> -> vector<16x512xf32>
    %c0_67 = arith.constant 0 : index
    %c1664 = arith.constant 1664 : index
    %185 = vector.load %arg6[%c0_67, %c1664] : memref<1x3712xf32, #tpu.memory_space<vmem>>, vector<1x512xf32>
    %186 = vector.broadcast %185 : vector<1x512xf32> to vector<16x512xf32>
    %187 = arith.addf %184, %186 : vector<16x512xf32>
    %c0_68 = arith.constant 0 : index
    %c0_69 = arith.constant 0 : index
    %c0_70 = arith.constant 0 : index
    %188 = vector.load %arg2[%c0_68, %c0_69, %c0_70] : memref<2x16x128xbf16, #tpu.memory_space<vmem>>, vector<2x16x128xbf16>
    %189 = vector.shape_cast %188 : vector<2x16x128xbf16> to vector<32x128xbf16>
    %c0_71 = arith.constant 0 : index
    %c0_72 = arith.constant 0 : index
    %190 = vector.load %arg10[%c0_71, %c0_72] : memref<128x1024xbf16, #tpu.memory_space<vmem>>, vector<128x1024xbf16>
    %cst_73 = arith.constant dense<0.000000e+00> : vector<32x1024xf32>
    %191 = tpu.matmul %189, %190, %cst_73 {dimension_numbers = #tpu.dot_dimension_numbers<[1], [0], [0], [1], [0, 0, 1, 1], [], []>} : vector<32x128xbf16>, vector<128x1024xbf16>, vector<32x1024xf32> -> vector<32x1024xf32>
    %c0_74 = arith.constant 0 : index
    %c2176 = arith.constant 2176 : index
    %192 = vector.load %arg6[%c0_74, %c2176] : memref<1x3712xf32, #tpu.memory_space<vmem>>, vector<1x1024xf32>
    %193 = vector.broadcast %192 : vector<1x1024xf32> to vector<32x1024xf32>
    %194 = arith.addf %191, %193 : vector<32x1024xf32>
    %195 = vector.shape_cast %194 : vector<32x1024xf32> to vector<2x16x1024xf32>
    %196 = arith.truncf %195 : vector<2x16x1024xf32> to vector<2x16x1024xbf16>
    %197 = vector.shape_cast %187 : vector<16x512xf32> to vector<2x8x512xf32>
    %198 = arith.truncf %197 : vector<2x8x512xf32> to vector<2x8x512xbf16>
    %199 = vector.extract_strided_slice %196 {offsets = [0, 0, 0], sizes = [2, 16, 512], strides = [1, 1, 1]} : vector<2x16x1024xbf16> to vector<2x16x512xbf16>
    %200 = vector.extract_strided_slice %196 {offsets = [0, 0, 512], sizes = [2, 16, 512], strides = [1, 1, 1]} : vector<2x16x1024xbf16> to vector<2x16x512xbf16>
    %cst_75 = arith.constant 0.000000e+00 : f32
    %201 = vector.broadcast %cst_75 : f32 to vector<16x128xf32>
    %202 = vector.extract_strided_slice %198 {offsets = [0, 0, 0], sizes = [2, 8, 128], strides = [1, 1, 1]} : vector<2x8x512xbf16> to vector<2x8x128xbf16>
    %203 = vector.extract_strided_slice %199 {offsets = [0, 0, 0], sizes = [2, 16, 128], strides = [1, 1, 1]} : vector<2x16x512xbf16> to vector<2x16x128xbf16>
    "tpu.trace_start"() <{level = 10 : i32, message = "bqd,bkd->bqk"}> : () -> ()
    %cst_76 = arith.constant dense<0.000000e+00> : vector<2x8x16xf32>
    %204 = tpu.matmul %202, %203, %cst_76 {dimension_numbers = #tpu.dot_dimension_numbers<[2], [2], [1], [1], [0, 0, 0, 1, 1, 1], [0], [0]>} : vector<2x8x128xbf16>, vector<2x16x128xbf16>, vector<2x8x16xf32> -> vector<2x8x16xf32>
    "tpu.trace_stop"() : () -> ()
    %205 = vector.broadcast %13 : vector<2x1x16xf32> to vector<2x8x16xf32>
    %206 = arith.addf %204, %205 : vector<2x8x16xf32>
    %cst_77 = arith.constant dense<0xFF800000> : vector<2x8xf32>
    %207 = vector.multi_reduction <maximumf>, %206, %cst_77 [2] : vector<2x8x16xf32> to vector<2x8xf32>
    %208 = vector.shape_cast %207 : vector<2x8xf32> to vector<2x8x1xf32>
    %209 = vector.broadcast %208 : vector<2x8x1xf32> to vector<2x8x16xf32>
    %210 = arith.subf %206, %209 : vector<2x8x16xf32>
    %211 = math.exp %210 : vector<2x8x16xf32>
    %cst_78 = arith.constant dense<0.000000e+00> : vector<2x8xf32>
    %212 = vector.multi_reduction <add>, %211, %cst_78 [2] : vector<2x8x16xf32> to vector<2x8xf32>
    %213 = vector.shape_cast %212 : vector<2x8xf32> to vector<2x8x1xf32>
    %214 = tpu.reciprocal %213 : vector<2x8x1xf32> -> vector<2x8x1xf32>
    %215 = vector.broadcast %214 : vector<2x8x1xf32> to vector<2x8x16xf32>
    %216 = arith.mulf %211, %215 : vector<2x8x16xf32>
    %217 = arith.truncf %216 : vector<2x8x16xf32> to vector<2x8x16xbf16>
    %218 = vector.extract_strided_slice %200 {offsets = [0, 0, 0], sizes = [2, 16, 128], strides = [1, 1, 1]} : vector<2x16x512xbf16> to vector<2x16x128xbf16>
    "tpu.trace_start"() <{level = 10 : i32, message = "bqk,bkd->bqd"}> : () -> ()
    %cst_79 = arith.constant dense<0.000000e+00> : vector<2x8x128xf32>
    %219 = tpu.matmul %217, %218, %cst_79 {dimension_numbers = #tpu.dot_dimension_numbers<[2], [1], [1], [2], [0, 0, 0, 1, 1, 2], [0], [0]>} : vector<2x8x16xbf16>, vector<2x16x128xbf16>, vector<2x8x128xf32> -> vector<2x8x128xf32>
    "tpu.trace_stop"() : () -> ()
    %220 = vector.broadcast %25 : vector<2x1x1xf32> to vector<2x8x128xf32>
    %221 = arith.mulf %219, %220 : vector<2x8x128xf32>
    %222 = vector.shape_cast %221 : vector<2x8x128xf32> to vector<16x128xf32>
    %223 = arith.truncf %222 : vector<16x128xf32> to vector<16x128xbf16>
    %c0_80 = arith.constant 0 : index
    %c0_81 = arith.constant 0 : index
    %224 = vector.load %arg11[%c0_80, %c0_81] : memref<512x128xbf16, #tpu.memory_space<vmem>>, vector<128x128xbf16>
    %cst_82 = arith.constant dense<0.000000e+00> : vector<16x128xf32>
    %225 = tpu.matmul %223, %224, %cst_82 {dimension_numbers = #tpu.dot_dimension_numbers<[1], [0], [0], [1], [0, 0, 1, 1], [], []>} : vector<16x128xbf16>, vector<128x128xbf16>, vector<16x128xf32> -> vector<16x128xf32>
    %226 = arith.addf %201, %225 : vector<16x128xf32>
    %227 = vector.extract_strided_slice %198 {offsets = [0, 0, 128], sizes = [2, 8, 128], strides = [1, 1, 1]} : vector<2x8x512xbf16> to vector<2x8x128xbf16>
    %228 = vector.extract_strided_slice %199 {offsets = [0, 0, 128], sizes = [2, 16, 128], strides = [1, 1, 1]} : vector<2x16x512xbf16> to vector<2x16x128xbf16>
    "tpu.trace_start"() <{level = 10 : i32, message = "bqd,bkd->bqk"}> : () -> ()
    %cst_83 = arith.constant dense<0.000000e+00> : vector<2x8x16xf32>
    %229 = tpu.matmul %227, %228, %cst_83 {dimension_numbers = #tpu.dot_dimension_numbers<[2], [2], [1], [1], [0, 0, 0, 1, 1, 1], [0], [0]>} : vector<2x8x128xbf16>, vector<2x16x128xbf16>, vector<2x8x16xf32> -> vector<2x8x16xf32>
    "tpu.trace_stop"() : () -> ()
    %230 = vector.broadcast %13 : vector<2x1x16xf32> to vector<2x8x16xf32>
    %231 = arith.addf %229, %230 : vector<2x8x16xf32>
    %cst_84 = arith.constant dense<0xFF800000> : vector<2x8xf32>
    %232 = vector.multi_reduction <maximumf>, %231, %cst_84 [2] : vector<2x8x16xf32> to vector<2x8xf32>
    %233 = vector.shape_cast %232 : vector<2x8xf32> to vector<2x8x1xf32>
    %234 = vector.broadcast %233 : vector<2x8x1xf32> to vector<2x8x16xf32>
    %235 = arith.subf %231, %234 : vector<2x8x16xf32>
    %236 = math.exp %235 : vector<2x8x16xf32>
    %cst_85 = arith.constant dense<0.000000e+00> : vector<2x8xf32>
    %237 = vector.multi_reduction <add>, %236, %cst_85 [2] : vector<2x8x16xf32> to vector<2x8xf32>
    %238 = vector.shape_cast %237 : vector<2x8xf32> to vector<2x8x1xf32>
    %239 = tpu.reciprocal %238 : vector<2x8x1xf32> -> vector<2x8x1xf32>
    %240 = vector.broadcast %239 : vector<2x8x1xf32> to vector<2x8x16xf32>
    %241 = arith.mulf %236, %240 : vector<2x8x16xf32>
    %242 = arith.truncf %241 : vector<2x8x16xf32> to vector<2x8x16xbf16>
    %243 = vector.extract_strided_slice %200 {offsets = [0, 0, 128], sizes = [2, 16, 128], strides = [1, 1, 1]} : vector<2x16x512xbf16> to vector<2x16x128xbf16>
    "tpu.trace_start"() <{level = 10 : i32, message = "bqk,bkd->bqd"}> : () -> ()
    %cst_86 = arith.constant dense<0.000000e+00> : vector<2x8x128xf32>
    %244 = tpu.matmul %242, %243, %cst_86 {dimension_numbers = #tpu.dot_dimension_numbers<[2], [1], [1], [2], [0, 0, 0, 1, 1, 2], [0], [0]>} : vector<2x8x16xbf16>, vector<2x16x128xbf16>, vector<2x8x128xf32> -> vector<2x8x128xf32>
    "tpu.trace_stop"() : () -> ()
    %245 = vector.broadcast %25 : vector<2x1x1xf32> to vector<2x8x128xf32>
    %246 = arith.mulf %244, %245 : vector<2x8x128xf32>
    %247 = vector.shape_cast %246 : vector<2x8x128xf32> to vector<16x128xf32>
    %248 = arith.truncf %247 : vector<16x128xf32> to vector<16x128xbf16>
    %c128_87 = arith.constant 128 : index
    %c0_88 = arith.constant 0 : index
    %249 = vector.load %arg11[%c128_87, %c0_88] : memref<512x128xbf16, #tpu.memory_space<vmem>>, vector<128x128xbf16>
    %cst_89 = arith.constant dense<0.000000e+00> : vector<16x128xf32>
    %250 = tpu.matmul %248, %249, %cst_89 {dimension_numbers = #tpu.dot_dimension_numbers<[1], [0], [0], [1], [0, 0, 1, 1], [], []>} : vector<16x128xbf16>, vector<128x128xbf16>, vector<16x128xf32> -> vector<16x128xf32>
    %251 = arith.addf %226, %250 : vector<16x128xf32>
    %252 = vector.extract_strided_slice %198 {offsets = [0, 0, 256], sizes = [2, 8, 128], strides = [1, 1, 1]} : vector<2x8x512xbf16> to vector<2x8x128xbf16>
    %253 = vector.extract_strided_slice %199 {offsets = [0, 0, 256], sizes = [2, 16, 128], strides = [1, 1, 1]} : vector<2x16x512xbf16> to vector<2x16x128xbf16>
    "tpu.trace_start"() <{level = 10 : i32, message = "bqd,bkd->bqk"}> : () -> ()
    %cst_90 = arith.constant dense<0.000000e+00> : vector<2x8x16xf32>
    %254 = tpu.matmul %252, %253, %cst_90 {dimension_numbers = #tpu.dot_dimension_numbers<[2], [2], [1], [1], [0, 0, 0, 1, 1, 1], [0], [0]>} : vector<2x8x128xbf16>, vector<2x16x128xbf16>, vector<2x8x16xf32> -> vector<2x8x16xf32>
    "tpu.trace_stop"() : () -> ()
    %255 = vector.broadcast %13 : vector<2x1x16xf32> to vector<2x8x16xf32>
    %256 = arith.addf %254, %255 : vector<2x8x16xf32>
    %cst_91 = arith.constant dense<0xFF800000> : vector<2x8xf32>
    %257 = vector.multi_reduction <maximumf>, %256, %cst_91 [2] : vector<2x8x16xf32> to vector<2x8xf32>
    %258 = vector.shape_cast %257 : vector<2x8xf32> to vector<2x8x1xf32>
    %259 = vector.broadcast %258 : vector<2x8x1xf32> to vector<2x8x16xf32>
    %260 = arith.subf %256, %259 : vector<2x8x16xf32>
    %261 = math.exp %260 : vector<2x8x16xf32>
    %cst_92 = arith.constant dense<0.000000e+00> : vector<2x8xf32>
    %262 = vector.multi_reduction <add>, %261, %cst_92 [2] : vector<2x8x16xf32> to vector<2x8xf32>
    %263 = vector.shape_cast %262 : vector<2x8xf32> to vector<2x8x1xf32>
    %264 = tpu.reciprocal %263 : vector<2x8x1xf32> -> vector<2x8x1xf32>
    %265 = vector.broadcast %264 : vector<2x8x1xf32> to vector<2x8x16xf32>
    %266 = arith.mulf %261, %265 : vector<2x8x16xf32>
    %267 = arith.truncf %266 : vector<2x8x16xf32> to vector<2x8x16xbf16>
    %268 = vector.extract_strided_slice %200 {offsets = [0, 0, 256], sizes = [2, 16, 128], strides = [1, 1, 1]} : vector<2x16x512xbf16> to vector<2x16x128xbf16>
    "tpu.trace_start"() <{level = 10 : i32, message = "bqk,bkd->bqd"}> : () -> ()
    %cst_93 = arith.constant dense<0.000000e+00> : vector<2x8x128xf32>
    %269 = tpu.matmul %267, %268, %cst_93 {dimension_numbers = #tpu.dot_dimension_numbers<[2], [1], [1], [2], [0, 0, 0, 1, 1, 2], [0], [0]>} : vector<2x8x16xbf16>, vector<2x16x128xbf16>, vector<2x8x128xf32> -> vector<2x8x128xf32>
    "tpu.trace_stop"() : () -> ()
    %270 = vector.broadcast %25 : vector<2x1x1xf32> to vector<2x8x128xf32>
    %271 = arith.mulf %269, %270 : vector<2x8x128xf32>
    %272 = vector.shape_cast %271 : vector<2x8x128xf32> to vector<16x128xf32>
    %273 = arith.truncf %272 : vector<16x128xf32> to vector<16x128xbf16>
    %c256_94 = arith.constant 256 : index
    %c0_95 = arith.constant 0 : index
    %274 = vector.load %arg11[%c256_94, %c0_95] : memref<512x128xbf16, #tpu.memory_space<vmem>>, vector<128x128xbf16>
    %cst_96 = arith.constant dense<0.000000e+00> : vector<16x128xf32>
    %275 = tpu.matmul %273, %274, %cst_96 {dimension_numbers = #tpu.dot_dimension_numbers<[1], [0], [0], [1], [0, 0, 1, 1], [], []>} : vector<16x128xbf16>, vector<128x128xbf16>, vector<16x128xf32> -> vector<16x128xf32>
    %276 = arith.addf %251, %275 : vector<16x128xf32>
    %277 = vector.extract_strided_slice %198 {offsets = [0, 0, 384], sizes = [2, 8, 128], strides = [1, 1, 1]} : vector<2x8x512xbf16> to vector<2x8x128xbf16>
    %278 = vector.extract_strided_slice %199 {offsets = [0, 0, 384], sizes = [2, 16, 128], strides = [1, 1, 1]} : vector<2x16x512xbf16> to vector<2x16x128xbf16>
    "tpu.trace_start"() <{level = 10 : i32, message = "bqd,bkd->bqk"}> : () -> ()
    %cst_97 = arith.constant dense<0.000000e+00> : vector<2x8x16xf32>
    %279 = tpu.matmul %277, %278, %cst_97 {dimension_numbers = #tpu.dot_dimension_numbers<[2], [2], [1], [1], [0, 0, 0, 1, 1, 1], [0], [0]>} : vector<2x8x128xbf16>, vector<2x16x128xbf16>, vector<2x8x16xf32> -> vector<2x8x16xf32>
    "tpu.trace_stop"() : () -> ()
    %280 = vector.broadcast %13 : vector<2x1x16xf32> to vector<2x8x16xf32>
    %281 = arith.addf %279, %280 : vector<2x8x16xf32>
    %cst_98 = arith.constant dense<0xFF800000> : vector<2x8xf32>
    %282 = vector.multi_reduction <maximumf>, %281, %cst_98 [2] : vector<2x8x16xf32> to vector<2x8xf32>
    %283 = vector.shape_cast %282 : vector<2x8xf32> to vector<2x8x1xf32>
    %284 = vector.broadcast %283 : vector<2x8x1xf32> to vector<2x8x16xf32>
    %285 = arith.subf %281, %284 : vector<2x8x16xf32>
    %286 = math.exp %285 : vector<2x8x16xf32>
    %cst_99 = arith.constant dense<0.000000e+00> : vector<2x8xf32>
    %287 = vector.multi_reduction <add>, %286, %cst_99 [2] : vector<2x8x16xf32> to vector<2x8xf32>
    %288 = vector.shape_cast %287 : vector<2x8xf32> to vector<2x8x1xf32>
    %289 = tpu.reciprocal %288 : vector<2x8x1xf32> -> vector<2x8x1xf32>
    %290 = vector.broadcast %289 : vector<2x8x1xf32> to vector<2x8x16xf32>
    %291 = arith.mulf %286, %290 : vector<2x8x16xf32>
    %292 = arith.truncf %291 : vector<2x8x16xf32> to vector<2x8x16xbf16>
    %293 = vector.extract_strided_slice %200 {offsets = [0, 0, 384], sizes = [2, 16, 128], strides = [1, 1, 1]} : vector<2x16x512xbf16> to vector<2x16x128xbf16>
    "tpu.trace_start"() <{level = 10 : i32, message = "bqk,bkd->bqd"}> : () -> ()
    %cst_100 = arith.constant dense<0.000000e+00> : vector<2x8x128xf32>
    %294 = tpu.matmul %292, %293, %cst_100 {dimension_numbers = #tpu.dot_dimension_numbers<[2], [1], [1], [2], [0, 0, 0, 1, 1, 2], [0], [0]>} : vector<2x8x16xbf16>, vector<2x16x128xbf16>, vector<2x8x128xf32> -> vector<2x8x128xf32>
    "tpu.trace_stop"() : () -> ()
    %295 = vector.broadcast %25 : vector<2x1x1xf32> to vector<2x8x128xf32>
    %296 = arith.mulf %294, %295 : vector<2x8x128xf32>
    %297 = vector.shape_cast %296 : vector<2x8x128xf32> to vector<16x128xf32>
    %298 = arith.truncf %297 : vector<16x128xf32> to vector<16x128xbf16>
    %c384_101 = arith.constant 384 : index
    %c0_102 = arith.constant 0 : index
    %299 = vector.load %arg11[%c384_101, %c0_102] : memref<512x128xbf16, #tpu.memory_space<vmem>>, vector<128x128xbf16>
    %cst_103 = arith.constant dense<0.000000e+00> : vector<16x128xf32>
    %300 = tpu.matmul %298, %299, %cst_103 {dimension_numbers = #tpu.dot_dimension_numbers<[1], [0], [0], [1], [0, 0, 1, 1], [], []>} : vector<16x128xbf16>, vector<128x128xbf16>, vector<16x128xf32> -> vector<16x128xf32>
    %301 = arith.addf %276, %300 : vector<16x128xf32>
    %302 = arith.addf %159, %301 : vector<16x128xf32>
    %c0_104 = arith.constant 0 : index
    %c3200 = arith.constant 3200 : index
    %303 = vector.load %arg6[%c0_104, %c3200] : memref<1x3712xf32, #tpu.memory_space<vmem>>, vector<1x128xf32>
    %304 = vector.broadcast %303 : vector<1x128xf32> to vector<16x128xf32>
    %305 = arith.addf %302, %304 : vector<16x128xf32>
    %c4 = arith.constant 4 : index
    %c0_105 = arith.constant 0 : index
    %306 = vector.load %arg5[%c4, %c0_105] : memref<6x128xf32, #tpu.memory_space<vmem>>, vector<1x128xf32>
    %c5 = arith.constant 5 : index
    %c0_106 = arith.constant 0 : index
    %307 = vector.load %arg5[%c5, %c0_106] : memref<6x128xf32, #tpu.memory_space<vmem>>, vector<1x128xf32>
    %cst_107 = arith.constant dense<0.000000e+00> : vector<16xf32>
    %308 = vector.multi_reduction <add>, %305, %cst_107 [1] : vector<16x128xf32> to vector<16xf32>
    %309 = vector.shape_cast %308 : vector<16xf32> to vector<16x1xf32>
    %cst_108 = arith.constant 1.280000e+02 : f32
    %310 = vector.broadcast %cst_108 : f32 to vector<16x1xf32>
    %311 = arith.divf %309, %310 : vector<16x1xf32>
    %312 = vector.broadcast %311 : vector<16x1xf32> to vector<16x128xf32>
    %313 = arith.subf %305, %312 : vector<16x128xf32>
    %314 = arith.mulf %313, %313 : vector<16x128xf32>
    %cst_109 = arith.constant dense<0.000000e+00> : vector<16xf32>
    %315 = vector.multi_reduction <add>, %314, %cst_109 [1] : vector<16x128xf32> to vector<16xf32>
    %316 = vector.shape_cast %315 : vector<16xf32> to vector<16x1xf32>
    %cst_110 = arith.constant 1.280000e+02 : f32
    %317 = vector.broadcast %cst_110 : f32 to vector<16x1xf32>
    %318 = arith.divf %316, %317 : vector<16x1xf32>
    %cst_111 = arith.constant 9.99999996E-13 : f32
    %319 = vector.broadcast %cst_111 : f32 to vector<16x1xf32>
    %320 = arith.addf %318, %319 : vector<16x1xf32>
    %321 = math.rsqrt %320 : vector<16x1xf32>
    %322 = vector.broadcast %321 : vector<16x1xf32> to vector<16x128xf32>
    %323 = arith.mulf %313, %322 : vector<16x128xf32>
    %324 = vector.broadcast %306 : vector<1x128xf32> to vector<16x128xf32>
    %325 = arith.mulf %323, %324 : vector<16x128xf32>
    %326 = vector.broadcast %307 : vector<1x128xf32> to vector<16x128xf32>
    %327 = arith.addf %325, %326 : vector<16x128xf32>
    %328 = arith.truncf %327 : vector<16x128xf32> to vector<16x128xbf16>
    %c0_112 = arith.constant 0 : index
    %c0_113 = arith.constant 0 : index
    %329 = vector.load %arg12[%c0_112, %c0_113] : memref<128x256xbf16, #tpu.memory_space<vmem>>, vector<128x256xbf16>
    %cst_114 = arith.constant dense<0.000000e+00> : vector<16x256xf32>
    %330 = tpu.matmul %328, %329, %cst_114 {dimension_numbers = #tpu.dot_dimension_numbers<[1], [0], [0], [1], [0, 0, 1, 1], [], []>} : vector<16x128xbf16>, vector<128x256xbf16>, vector<16x256xf32> -> vector<16x256xf32>
    %c0_115 = arith.constant 0 : index
    %c3328 = arith.constant 3328 : index
    %331 = vector.load %arg6[%c0_115, %c3328] : memref<1x3712xf32, #tpu.memory_space<vmem>>, vector<1x256xf32>
    %332 = vector.broadcast %331 : vector<1x256xf32> to vector<16x256xf32>
    %333 = arith.addf %330, %332 : vector<16x256xf32>
    %cst_116 = arith.constant 0.000000e+00 : f32
    %334 = vector.broadcast %cst_116 : f32 to vector<16x256xf32>
    %335 = arith.maximumf %333, %334 : vector<16x256xf32>
    %336 = arith.truncf %335 : vector<16x256xf32> to vector<16x256xbf16>
    %c0_117 = arith.constant 0 : index
    %c0_118 = arith.constant 0 : index
    %337 = vector.load %arg13[%c0_117, %c0_118] : memref<256x128xbf16, #tpu.memory_space<vmem>>, vector<256x128xbf16>
    %cst_119 = arith.constant dense<0.000000e+00> : vector<16x128xf32>
    %338 = tpu.matmul %336, %337, %cst_119 {dimension_numbers = #tpu.dot_dimension_numbers<[1], [0], [0], [1], [0, 0, 1, 1], [], []>} : vector<16x256xbf16>, vector<256x128xbf16>, vector<16x128xf32> -> vector<16x128xf32>
    %c0_120 = arith.constant 0 : index
    %c3584 = arith.constant 3584 : index
    %339 = vector.load %arg6[%c0_120, %c3584] : memref<1x3712xf32, #tpu.memory_space<vmem>>, vector<1x128xf32>
    %340 = vector.broadcast %339 : vector<1x128xf32> to vector<16x128xf32>
    %341 = arith.addf %338, %340 : vector<16x128xf32>
    %342 = arith.addf %305, %341 : vector<16x128xf32>
    %343 = vector.shape_cast %342 : vector<16x128xf32> to vector<2x8x128xf32>
    %c0_121 = arith.constant 0 : index
    %c0_122 = arith.constant 0 : index
    %c0_123 = arith.constant 0 : index
    %344 = vector.load %arg14[%c0_121, %c0_122, %c0_123] : memref<2x8x128xf32, #tpu.memory_space<vmem>>, vector<2x8x128xf32>
    tpu.vector_store %arg14[%c0_121, %c0_122, %c0_123], %343 {strides = array<i32>} : memref<2x8x128xf32, #tpu.memory_space<vmem>>, vector<2x8x128xf32>,
    return
  }
  func.func @transform_0(%arg0: i32) -> (i32, i32, i32) {
    %c0_i32 = arith.constant 0 : i32
    %c0_i32_0 = arith.constant 0 : i32
    %c0_i32_1 = arith.constant 0 : i32
    return %arg0, %c0_i32, %c0_i32_0 : i32, i32, i32
  }
  func.func @transform_1(%arg0: i32) -> (i32, i32, i32) {
    %c0_i32 = arith.constant 0 : i32
    %c0_i32_0 = arith.constant 0 : i32
    %c0_i32_1 = arith.constant 0 : i32
    return %arg0, %c0_i32, %c0_i32_0 : i32, i32, i32
  }
  func.func @transform_2(%arg0: i32) -> (i32, i32, i32) {
    %c0_i32 = arith.constant 0 : i32
    %c0_i32_0 = arith.constant 0 : i32
    %c0_i32_1 = arith.constant 0 : i32
    return %arg0, %c0_i32, %c0_i32_0 : i32, i32, i32
  }
  func.func @transform_3(%arg0: i32) -> (i32, i32, i32) {
    %c0_i32 = arith.constant 0 : i32
    %c0_i32_0 = arith.constant 0 : i32
    %c0_i32_1 = arith.constant 0 : i32
    return %arg0, %c0_i32, %c0_i32_0 : i32, i32, i32
  }
  func.func @transform_4(%arg0: i32) -> (i32, i32) {
    %c0_i32 = arith.constant 0 : i32
    %c0_i32_0 = arith.constant 0 : i32
    %c0_i32_1 = arith.constant 0 : i32
    return %c0_i32, %c0_i32_0 : i32, i32
  }
  func.func @transform_5(%arg0: i32) -> (i32, i32) {
    %c0_i32 = arith.constant 0 : i32
    %c0_i32_0 = arith.constant 0 : i32
    %c0_i32_1 = arith.constant 0 : i32
    return %c0_i32, %c0_i32_0 : i32, i32
  }
  func.func @transform_6(%arg0: i32) -> (i32, i32) {
    %c0_i32 = arith.constant 0 : i32
    %c0_i32_0 = arith.constant 0 : i32
    %c0_i32_1 = arith.constant 0 : i32
    return %c0_i32, %c0_i32_0 : i32, i32
  }
  func.func @transform_7(%arg0: i32) -> (i32, i32) {
    %c0_i32 = arith.constant 0 : i32
    %c0_i32_0 = arith.constant 0 : i32
    %c0_i32_1 = arith.constant 0 : i32
    return %c0_i32, %c0_i32_0 : i32, i32
  }
  func.func @transform_8(%arg0: i32) -> (i32, i32) {
    %c0_i32 = arith.constant 0 : i32
    %c0_i32_0 = arith.constant 0 : i32
    %c0_i32_1 = arith.constant 0 : i32
    return %c0_i32, %c0_i32_0 : i32, i32
  }
  func.func @transform_9(%arg0: i32) -> (i32, i32) {
    %c0_i32 = arith.constant 0 : i32
    %c0_i32_0 = arith.constant 0 : i32
    %c0_i32_1 = arith.constant 0 : i32
    return %c0_i32, %c0_i32_0 : i32, i32
  }
  func.func @transform_10(%arg0: i32) -> (i32, i32) {
    %c0_i32 = arith.constant 0 : i32
    %c0_i32_0 = arith.constant 0 : i32
    %c0_i32_1 = arith.constant 0 : i32
    return %c0_i32, %c0_i32_0 : i32, i32
  }
  func.func @transform_11(%arg0: i32) -> (i32, i32) {
    %c0_i32 = arith.constant 0 : i32
    %c0_i32_0 = arith.constant 0 : i32
    %c0_i32_1 = arith.constant 0 : i32
    return %c0_i32, %c0_i32_0 : i32, i32
  }
  func.func @transform_12(%arg0: i32) -> (i32, i32) {
    %c0_i32 = arith.constant 0 : i32
    %c0_i32_0 = arith.constant 0 : i32
    %c0_i32_1 = arith.constant 0 : i32
    return %c0_i32, %c0_i32_0 : i32, i32
  }
  func.func @transform_13(%arg0: i32) -> (i32, i32, i32) {
    %c0_i32 = arith.constant 0 : i32
    %c0_i32_0 = arith.constant 0 : i32
    %c0_i32_1 = arith.constant 0 : i32
    return %arg0, %c0_i32, %c0_i32_0 : i32, i32, i32
  }
}

</mosaic_0001>

<bundles_post_ra>
// kernel: tpu_custom_call.1
= control target key start
LH: loop header
LB: loop body
LE: loop exit
PB: predicated region body
PF: predicated region fallthrough
CT: control target
= control target key end

     0   :  { %18 = vsyncpa [#allocation3], 0  ;;  %s6607_s0 = inlined_call_operand.hbm [shape: f32[2,8,128], index: 0, kind: input, shape index: {}]   ;;  %s6608_s1 = inlined_call_operand.hbm [shape: bf16[2,16,128], index: 1, kind: input, shape index: {}]   ;;  %s6609_s2 = inlined_call_operand.hbm [shape: f32[2,8,8], index: 2, kind: input, shape index: {}]   ;;  %s6610_s3 = inlined_call_operand.vmem [shape: f32[2,1,16], index: 3, kind: input, shape index: {}]   ;;  %s6611_s4 = inlined_call_operand.hbm [shape: f32[6,128], index: 4, kind: input, shape index: {}]   ;;  %s6612_s5 = inlined_call_operand.hbm [shape: f32[1,3712], index: 5, kind: input, shape index: {}]   ;;  %s6613_s6 = inlined_call_operand.hbm [shape: bf16[128,1536], index: 6, kind: input, shape index: {}]   ;;  %s6614_s7 = inlined_call_operand.hbm [shape: bf16[512,128], index: 7, kind: input, shape index: {}]   ;;  %s6615_s8 = inlined_call_operand.hbm [shape: bf16[128,512], index: 8, kind: input, shape index: {}]   ;;  %s6616_s9 = inlined_call_operand.hbm [shape: bf16[128,1024], index: 9, kind: input, shape index: {}]   ;;  %s6617_s10 = inlined_call_operand.hbm [shape: bf16[512,128], index: 10, kind: input, shape index: {}]   ;;  %s6618_s11 = inlined_call_operand.hbm [shape: bf16[128,256], index: 11, kind: input, shape index: {}]   ;;  %s6619_s12 = inlined_call_operand.hbm [shape: bf16[256,128], index: 12, kind: input, shape index: {}]   ;;  %s6620_s13 = inlined_call_operand.hbm [shape: f32[2,8,128], index: 13, kind: output, shape index: {}]  }
   0x1   :  { %19 = vsyncpa [#allocation6], 0 }
   0x2   :  { %20 = vsyncpa [#allocation9], 0 }
   0x3   :  { %21 = vsyncpa [#allocation12], 0 }
   0x4   :  { %22 = vsyncpa [#allocation15], 0 }
   0x5   :  { %23 = vsyncpa [#allocation18], 0 }
   0x6   :  { %24 = vsyncpa [#allocation21], 0  ;;  %s43_s27 = sshll.u32 %s6608_s1, 4  ;;  %s44_s27 = int_to_ptr.hbm [resolvable:$true] %s43_s27 }
   0x7   :  { %25 = vsyncpa [#allocation4], 0  ;;  %s6003_s28 = smov [#allocation5]   ;;  %s72_s15 = sshll.u32 %s6611_s4, 4  ;;  %s73_s15 = int_to_ptr.hbm [resolvable:$true] %s72_s15 }
   0x8   :  { %s45_s29 = sshll.u32 %s6003_s28, 4  ;;  %s6004_s16 = smov 64   ;;  %s46_s29 = int_to_ptr.vmem [resolvable:$true] %s45_s29 }
   0x9   :  { %s6005_s17 = smov 4   ;;  %s6006_s18 = smov [#allocation8]  }
   0xa   :  { %51 = dma.hbm_to_vmem [thread:$0]  %s44_s27, 256, %s46_s29, [#allocation6], %s6004_s16, %s6004_s16, %s6005_s17  }
   0xb   :  { %s74_s19 = sshll.u32 %s6006_s18, 4  ;;  %s93_s21 = sshll.u32 %s6613_s6, 4  ;;  %s75_s19 = int_to_ptr.vmem [resolvable:$true] %s74_s19  ;;  %s94_s21 = int_to_ptr.hbm [resolvable:$true] %s93_s21 }
   0xc   :  { %77 = dma.hbm_to_vmem [thread:$0]  %s73_s15, 128, %s75_s19, [#allocation9]  }
   0xd   :  { %s6007_s22 = smov [#allocation11]   ;;  %s119_s25 = sshll.u32 %s6615_s8, 4  ;;  %s120_s25 = int_to_ptr.hbm [resolvable:$true] %s119_s25 }
   0xe   :  { %s95_s23 = sshll.u32 %s6007_s22, 4  ;;  %s6008_s26 = smov 768   ;;  %s96_s23 = int_to_ptr.vmem [resolvable:$true] %s95_s23 }
   0xf   :  { %s6009_s28 = smov 48   ;;  %s6010_s27 = smov [#allocation14]  }
  0x10   :  { %101 = dma.hbm_to_vmem [thread:$0]  %s94_s21, 12288, %s96_s23, [#allocation12], %s6008_s26, %s6008_s26, %s6009_s28  }
  0x11   :  { %s121_s29 = sshll.u32 %s6010_s27, 4  ;;  %s6011_s30 = smov 256   ;;  %s122_s29 = int_to_ptr.vmem [resolvable:$true] %s121_s29 }
  0x12   :  { %s6012_s14 = smov 16   ;;  %s145_s15 = sshll.u32 %s6617_s10, 4  ;;  %s146_s15 = int_to_ptr.hbm [resolvable:$true] %s145_s15 }
  0x13   :  { %127 = dma.hbm_to_vmem [thread:$0]  %s120_s25, 4096, %s122_s29, [#allocation15], %s6011_s30, %s6011_s30, %s6012_s14  }
  0x14   :  { %s6013_s19 = smov [#allocation17]   ;;  %s30_s22 = sshll.u32 %s6607_s0, 4  ;;  %s31_s22 = int_to_ptr.hbm [resolvable:$true] %s30_s22 }
  0x15   :  { %s147_s20 = sshll.u32 %s6013_s19, 4  ;;  %s6014_s21 = smov [#allocation2]   ;;  %s148_s20 = int_to_ptr.vmem [resolvable:$true] %s147_s20 }
  0x16   :  { %153 = dma.hbm_to_vmem [thread:$0]  %s146_s15, 4096, %s148_s20, [#allocation18], %s6004_s16, %s6004_s16, %s6005_s17  }
  0x17   :  { %s32_s23 = sshll.u32 %s6014_s21, 4  ;;  %s6015_s4 = smov 128   ;;  %s33_s23 = int_to_ptr.vmem [resolvable:$true] %s32_s23 }
  0x18   :  { %s6016_s24 = smov 8   ;;  %s56_s26 = sshll.u32 %s6609_s2, 4  ;;  %s57_s26 = int_to_ptr.hbm [resolvable:$true] %s56_s26 }
  0x19   :  { %38 = dma.hbm_to_vmem [thread:$0]  %s31_s22, 256, %s33_s23, [#allocation3], %s6015_s4, %s6015_s4, %s6016_s24  }
  0x1a   :  { %s6017_s0 = smov [#allocation7]   ;;  %s83_s30 = sshll.u32 %s6612_s5, 4  ;;  %s84_s30 = int_to_ptr.hbm [resolvable:$true] %s83_s30 }
  0x1b   :  { %s58_s28 = sshll.u32 %s6017_s0, 4  ;;  %s6018_s14 = smov [#allocation10]   ;;  %s59_s28 = int_to_ptr.vmem [resolvable:$true] %s58_s28 }
  0x1c   :  { %64 = dma.hbm_to_vmem [thread:$0]  %s57_s26, 256, %s59_s28, [#allocation6], %s6015_s4, %s6015_s4, %s6016_s24  }
  0x1d   :  { %s85_s6 = sshll.u32 %s6018_s14, 4  ;;  %s106_s19 = sshll.u32 %s6614_s7, 4  ;;  %s86_s6 = int_to_ptr.vmem [resolvable:$true] %s85_s6  ;;  %s107_s19 = int_to_ptr.hbm [resolvable:$true] %s106_s19 }
  0x1e   :  { %88 = dma.hbm_to_vmem [thread:$0]  %s84_s30, 464, %s86_s6, [#allocation9]  }
  0x1f   :  { %s132_s1 = sshll.u32 %s6616_s9, 4  ;;  %s6019_s8 = smov [#allocation13]   ;;  %s133_s1 = int_to_ptr.hbm [resolvable:$true] %s132_s1 }
  0x20   :  { %s108_s5 = sshll.u32 %s6019_s8, 4  ;;  %s6020_s22 = smov [#allocation16]   ;;  %s109_s5 = int_to_ptr.vmem [resolvable:$true] %s108_s5 }
  0x21   :  { %114 = dma.hbm_to_vmem [thread:$0]  %s107_s19, 4096, %s109_s5, [#allocation12], %s6004_s16, %s6004_s16, %s6005_s17  }
  0x22   :  { %s134_s21 = sshll.u32 %s6020_s22, 4  ;;  %s6021_s23 = smov 512   ;;  %s135_s21 = int_to_ptr.vmem [resolvable:$true] %s134_s21 }
  0x23   :  { %s6022_s7 = smov 32   ;;  %s158_s26 = sshll.u32 %s6618_s11, 4  ;;  %s159_s26 = int_to_ptr.hbm [resolvable:$true] %s158_s26 }
  0x24   :  { %140 = dma.hbm_to_vmem [thread:$0]  %s133_s1, 8192, %s135_s21, [#allocation15], %s6021_s23, %s6021_s23, %s6022_s7  }
  0x25   :  { %s6023_s9 = smov [#allocation19]   ;;  %s171_s29 = sshll.u32 %s6619_s12, 4  ;;  %s172_s29 = int_to_ptr.hbm [resolvable:$true] %s171_s29 }
  0x26   :  { %s160_s0 = sshll.u32 %s6023_s9, 4  ;;  %s6024_s30 = smov [#allocation20]   ;;  %s161_s0 = int_to_ptr.vmem [resolvable:$true] %s160_s0 }
  0x27   :  { %166 = dma.hbm_to_vmem [thread:$0]  %s159_s26, 2048, %s161_s0, [#allocation18], %s6015_s4, %s6015_s4, %s6016_s24  }
  0x28   :  { %s173_s14 = sshll.u32 %s6024_s30, 4  ;;  %s174_s14 = int_to_ptr.vmem [resolvable:$true] %s173_s14 }
  0x29   :  { %179 = dma.hbm_to_vmem [thread:$0]  %s172_s29, 2048, %s174_s14, [#allocation21], %s6004_s16, %s6004_s16, %s6005_s17  }
  0x2a   :  { %5987 = dma.done.wait [#allocation3], 256  }
  0x2b   :  { %5988 = vsyncadd [#allocation3], 4294967040 }
  0x2c   :  { %5989 = dma.done.wait [#allocation6], 512  }
  0x2d   :  { %5990 = vsyncadd [#allocation6], 4294966784 }
  0x2e   :  { %5991 = dma.done.wait [#allocation9], 592  }
  0x2f   :  { %5992 = vsyncadd [#allocation9], 4294966704 }
  0x30   :  { %5993 = dma.done.wait [#allocation12], 16384  }
  0x31   :  { %5994 = vsyncadd [#allocation12], 4294950912 }
  0x32   :  { %5995 = dma.done.wait [#allocation15], 12288  }
  0x33   :  { %5996 = vsyncadd [#allocation15], 4294955008 }
  0x34   :  { %5997 = dma.done.wait [#allocation18], 6144  }
  0x35   :  { %5998 = vsyncadd [#allocation18], 4294961152 }
  0x36   :  { %5999 = dma.done.wait [#allocation21], 2048  }
  0x37   :  { %6000 = vsyncadd [#allocation21], 4294965248  ;;  %v6156_v0 = vld [vmem:[#allocation2] sm:$0xff]  ;;  %v6159_v1 = vld [vmem:[#allocation2 + $0x8] sm:$0xff]  ;;  %v6025_v2 = vmov 128.0   ;;  %vm1188_vm7 = vcmask 1043456  }
  0x38   :  { %271 = vadd.xlane.f32.xlu0 %v6156_v0  ;;  %5595 = vrcp.f32 %v6025_v2  ;;  %v4432_v6 = vld [vmem:[#allocation11 + $0x2a0] sm:$0xf]  ;;  %v5360_v7 = vld [vmem:[#allocation11 + $0x2cc] sm:$0xf0]  ;;  %v5354_v8 = vld [vmem:[#allocation11 + $0x2a4] sm:$0xf] }
  0x39   :  { %v4433_v9 = vor.u32 %v5360_v7, %v4432_v6  ;;  %v4434_v10 = vld [vmem:[#allocation11 + $0x2d0] sm:$0xf0]  ;;  %v4440_v11 = vld [vmem:[#allocation11 + $0x2a8] sm:$0xf]  ;;  %v5361_v12 = vld [vmem:[#allocation11 + $0x2d4] sm:$0xf0] }
  0x3a   :  { %v4437_v13 = vor.u32 %v5354_v8, %v4434_v10  ;;  %v4441_v14 = vor.u32 %v5361_v12, %v4440_v11  ;;  %v5355_v15 = vld [vmem:[#allocation11 + $0x2ac] sm:$0xf]  ;;  %v4442_v16 = vld [vmem:[#allocation11 + $0x2d8] sm:$0xf0]  ;;  %v4384_v17 = vld [vmem:[#allocation11 + $0x240] sm:$0xf] }
  0x3b   :  { %929 = vmatpush.bf16.msra.mxu0 %v4433_v9  ;;  %v4445_v18 = vor.u32 %v5355_v15, %v4442_v16  ;;  %v5348_v19 = vld [vmem:[#allocation11 + $0x26c] sm:$0xf0]  ;;  %v5342_v20 = vld [vmem:[#allocation11 + $0x244] sm:$0xf]  ;;  %v4386_v21 = vld [vmem:[#allocation11 + $0x270] sm:$0xf0] }
  0x3c   :  { %943 = vmatpush.bf16.msra.mxu1 %v4437_v13  ;;  %957 = vmatpush.bf16.msra.mxu2 %v4441_v14  ;;  %v4385_v22 = vor.u32 %v5348_v19, %v4384_v17  ;;  %v4389_v23 = vor.u32 %v5342_v20, %v4386_v21  ;;  %v4392_v24 = vld [vmem:[#allocation11 + $0x248] sm:$0xf]  ;;  %v5349_v25 = vld [vmem:[#allocation11 + $0x274] sm:$0xf0]  ;;  %v5343_v26 = vld [vmem:[#allocation11 + $0x24c] sm:$0xf] }
  0x3d   :  { %971 = vmatpush.bf16.msra.mxu3 %v4445_v18  ;;  %v4393_v27 = vor.u32 %v5349_v25, %v4392_v24  ;;  %v4394_v28 = vld [vmem:[#allocation11 + $0x278] sm:$0xf0]  ;;  %v4336_v29 = vld [vmem:[#allocation11 + $0x1e0] sm:$0xf]  ;;  %v5336_v30 = vld [vmem:[#allocation11 + $0x20c] sm:$0xf0] }
  0x3e   :  { %v6162_v3 = vpop.eup %5595  ;;  %v4397_v31 = vor.u32 %v5343_v26, %v4394_v28  ;;  %v5330_v32 = vld [vmem:[#allocation11 + $0x1e4] sm:$0xf]  ;;  %v4338_v33 = vld [vmem:[#allocation11 + $0x210] sm:$0xf0]  ;;  %v4344_v34 = vld [vmem:[#allocation11 + $0x1e8] sm:$0xf]  ;;  %v4337_v36 = vor.u32 %v5336_v30, %v4336_v29 }
  0x3f   :  { %v276_v4 = vmul.f32 128.0, %v6162_v3  ;;  %930 = vmatpush.bf16.msra.mxu0 %v4385_v22  ;;  %v5337_v37 = vld [vmem:[#allocation11 + $0x214] sm:$0xf0]  ;;  %v5331_v38 = vld [vmem:[#allocation11 + $0x1ec] sm:$0xf]  ;;  %v4341_v40 = vor.u32 %v5330_v32, %v4338_v33  ;;  %vm280_vm0 = vweird.f32 %v6162_v3  ;;  %vm243_vm9 = vcmask 64512  }
  0x40   :  { %273 = vadd.xlane.f32.xlu0 %v6159_v1  ;;  %v4346_v39 = vld [vmem:[#allocation11 + $0x218] sm:$0xf0]  ;;  %944 = vmatpush.bf16.msra.mxu1 %v4389_v23  ;;  %v4345_v41 = vor.u32 %v5337_v37, %v4344_v34  ;;  %v4288_v42 = vld [vmem:[#allocation11 + $0x180] sm:$0xf]  ;;  %v5324_v43 = vld [vmem:[#allocation11 + $0x1ac] sm:$0xf0] }
  0x41   :  { %v277_v5 = vsub.f32 1.0, %v276_v4  ;;  %958 = vmatpush.bf16.msra.mxu2 %v4393_v27  ;;  %v5318_v44 = vld [vmem:[#allocation11 + $0x184] sm:$0xf]  ;;  %972 = vmatpush.bf16.msra.mxu3 %v4397_v31  ;;  %v4349_v45 = vor.u32 %v5331_v38, %v4346_v39  ;;  %v4290_v46 = vld [vmem:[#allocation11 + $0x1b0] sm:$0xf0]  ;;  %v4289_v52 = vor.u32 %v5324_v43, %v4288_v42  ;;  %s4071_s19 = sshll.u32 %s6620_s13, 4  ;;  %s4072_s19 = int_to_ptr.hbm [resolvable:$true] %s4071_s19 }
  0x42   :  { %v4296_v47 = vld [vmem:[#allocation11 + $0x188] sm:$0xf]  ;;  %v5325_v48 = vld [vmem:[#allocation11 + $0x1b4] sm:$0xf0]  ;;  %v5319_v49 = vld [vmem:[#allocation11 + $0x18c] sm:$0xf]  ;;  %v4293_v53 = vor.u32 %v5318_v44, %v4290_v46 }
  0x43   :  { %v278_v35 = vmul.f32 %v6162_v3, %v277_v5  ;;  %v4298_v50 = vld [vmem:[#allocation11 + $0x1b8] sm:$0xf0]  ;;  %931 = vmatpush.bf16.msra.mxu0 %v4337_v36  ;;  %v4297_v54 = vor.u32 %v5325_v48, %v4296_v47  ;;  %v4240_v55 = vld [vmem:[#allocation11 + $0x120] sm:$0xf]  ;;  %v5312_v56 = vld [vmem:[#allocation11 + $0x14c] sm:$0xf0] }
  0x44   :  { %945 = vmatpush.bf16.msra.mxu1 %v4341_v40  ;;  %v5306_v57 = vld [vmem:[#allocation11 + $0x124] sm:$0xf]  ;;  %v4301_v58 = vor.u32 %v5319_v49, %v4298_v50  ;;  %v4242_v59 = vld [vmem:[#allocation11 + $0x150] sm:$0xf0]  ;;  %v4248_v60 = vld [vmem:[#allocation11 + $0x128] sm:$0xf]  ;;  %v4241_v4 = vor.u32 %v5312_v56, %v4240_v55 }
  0x45   :  { %v279_v51 = vadd.f32 %v6162_v3, %v278_v35  ;;  %959 = vmatpush.bf16.msra.mxu2 %v4345_v41  ;;  %973 = vmatpush.bf16.msra.mxu3 %v4349_v45  ;;  %v5313_v61 = vld [vmem:[#allocation11 + $0x154] sm:$0xf0]  ;;  %v5307_v62 = vld [vmem:[#allocation11 + $0x12c] sm:$0xf]  ;;  %v4250_v63 = vld [vmem:[#allocation11 + $0x158] sm:$0xf0]  ;;  %v4245_v5 = vor.u32 %v5306_v57, %v4242_v59 }
  0x46   :  { %v4249_v6 = vor.u32 %v5313_v61, %v4248_v60  ;;  %v4253_v8 = vor.u32 %v5307_v62, %v4250_v63  ;;  %v4192_v15 = vld [vmem:[#allocation11 + $0xc0] sm:$0xf]  ;;  %v5294_v16 = vld [vmem:[#allocation11 + $0xc4] sm:$0xf]  ;;  %v4194_v18 = vld [vmem:[#allocation11 + $0xf0] sm:$0xf0] }
  0x47   :  { %v6169_v2 = vsel %vm280_vm0, %v6162_v3, %v279_v51  ;;  %932 = vmatpush.bf16.msra.mxu0 %v4289_v52  ;;  %v4200_v19 = vld [vmem:[#allocation11 + $0xc8] sm:$0xf]  ;;  %v5301_v20 = vld [vmem:[#allocation11 + $0xf4] sm:$0xf0]  ;;  %v4197_v21 = vor.u32 %v5294_v16, %v4194_v18  ;;  %v5295_v23 = vld [vmem:[#allocation11 + $0xcc] sm:$0xf] }
  0x48   :  { %946 = vmatpush.bf16.msra.mxu1 %v4293_v53  ;;  %v4201_v22 = vor.u32 %v5301_v20, %v4200_v19  ;;  %v4202_v24 = vld [vmem:[#allocation11 + $0xf8] sm:$0xf0]  ;;  %v5288_v26 = vld [vmem:[#allocation11 + $0x8c] sm:$0xf0]  ;;  %v5282_v27 = vld [vmem:[#allocation11 + $0x64] sm:$0xf] }
  0x49   :  { %960 = vmatpush.bf16.msra.mxu2 %v4297_v54  ;;  %974 = vmatpush.bf16.msra.mxu3 %v4301_v58  ;;  %v4205_v25 = vor.u32 %v5295_v23, %v4202_v24  ;;  %v4146_v29 = vld [vmem:[#allocation11 + $0x90] sm:$0xf0]  ;;  %v4152_v30 = vld [vmem:[#allocation11 + $0x68] sm:$0xf]  ;;  %v5289_v31 = vld [vmem:[#allocation11 + $0x94] sm:$0xf0] }
  0x4a   :  { %v4149_v32 = vor.u32 %v5282_v27, %v4146_v29  ;;  %v4153_v33 = vor.u32 %v5289_v31, %v4152_v30  ;;  %v5283_v34 = vld [vmem:[#allocation11 + $0x6c] sm:$0xf]  ;;  %v4154_v35 = vld [vmem:[#allocation11 + $0x98] sm:$0xf0]  ;;  %v4096_v37 = vld [vmem:[#allocation11] sm:$0xf] }
  0x4b   :  { %933 = vmatpush.bf16.msra.mxu0 %v4241_v4  ;;  %v4157_v36 = vor.u32 %v5283_v34, %v4154_v35  ;;  %v5276_v38 = vld [vmem:[#allocation11 + $0x2c] sm:$0xf0]  ;;  %v5270_v39 = vld [vmem:[#allocation11 + $0x4] sm:$0xf]  ;;  %v4098_v41 = vld [vmem:[#allocation11 + $0x30] sm:$0xf0] }
  0x4c   :  { %947 = vmatpush.bf16.msra.mxu1 %v4245_v5  ;;  %v4097_v40 = vor.u32 %v5276_v38, %v4096_v37  ;;  %v4104_v42 = vld [vmem:[#allocation11 + $0x8] sm:$0xf]  ;;  %v5277_v43 = vld [vmem:[#allocation11 + $0x34] sm:$0xf0]  ;;  %v4101_v44 = vor.u32 %v5270_v39, %v4098_v41  ;;  %v5271_v46 = vld [vmem:[#allocation11 + $0xc] sm:$0xf] }
  0x4d   :  { %961 = vmatpush.bf16.msra.mxu2 %v4249_v6  ;;  %975 = vmatpush.bf16.msra.mxu3 %v4253_v8  ;;  %v4105_v45 = vor.u32 %v5277_v43, %v4104_v42  ;;  %v4106_v47 = vld [vmem:[#allocation11 + $0x38] sm:$0xf0]  ;;  %v4448_v48 = vld [vmem:[#allocation11 + $0x2b0] sm:$0xf]  ;;  %v5362_v50 = vld [vmem:[#allocation11 + $0x2dc] sm:$0xf0] }
  0x4e   :  { %v4109_v49 = vor.u32 %v5271_v46, %v4106_v47  ;;  %v5356_v51 = vld [vmem:[#allocation11 + $0x2b4] sm:$0xf]  ;;  %v4450_v52 = vld [vmem:[#allocation11 + $0x2e0] sm:$0xf0]  ;;  %v4449_v53 = vor.u32 %v5362_v50, %v4448_v48  ;;  %v4456_v55 = vld [vmem:[#allocation11 + $0x2b8] sm:$0xf] }
  0x4f   :  { %v4453_v54 = vor.u32 %v5356_v51, %v4450_v52  ;;  %v5363_v56 = vld [vmem:[#allocation11 + $0x2e4] sm:$0xf0]  ;;  %v5357_v57 = vld [vmem:[#allocation11 + $0x2bc] sm:$0xf]  ;;  %v4458_v59 = vld [vmem:[#allocation11 + $0x2e8] sm:$0xf0] }
  0x50   :  { %948 = vmatpush.bf16.msra.mxu1 %v4197_v21  ;;  %v4457_v58 = vor.u32 %v5363_v56, %v4456_v55  ;;  %v4400_v60 = vld [vmem:[#allocation11 + $0x250] sm:$0xf]  ;;  %v5350_v61 = vld [vmem:[#allocation11 + $0x27c] sm:$0xf0]  ;;  %v4461_v62 = vor.u32 %v5357_v57, %v4458_v59  ;;  %v5344_v4 = vld [vmem:[#allocation11 + $0x254] sm:$0xf] }
  0x51   :  { %962 = vmatpush.bf16.msra.mxu2 %v4201_v22  ;;  %976 = vmatpush.bf16.msra.mxu3 %v4205_v25  ;;  %v4401_v63 = vor.u32 %v5350_v61, %v4400_v60  ;;  %v4402_v5 = vld [vmem:[#allocation11 + $0x280] sm:$0xf0]  ;;  %v4408_v6 = vld [vmem:[#allocation11 + $0x258] sm:$0xf]  ;;  %v5351_v8 = vld [vmem:[#allocation11 + $0x284] sm:$0xf0] }
  0x52   :  { %v4360_v18 = vld [vmem:[#allocation11 + $0x1f8] sm:$0xf]  ;;  %v5339_v19 = vld [vmem:[#allocation11 + $0x224] sm:$0xf0]  ;;  %v5333_v22 = vld [vmem:[#allocation11 + $0x1fc] sm:$0xf] }
  0x53   :  { %v4361_v21 = vor.u32 %v5339_v19, %v4360_v18  ;;  %v4362_v23 = vld [vmem:[#allocation11 + $0x228] sm:$0xf0]  ;;  %v4304_v25 = vld [vmem:[#allocation11 + $0x190] sm:$0xf]  ;;  %v4312_v29 = vld [vmem:[#allocation11 + $0x198] sm:$0xf] }
  0x54   :  { %949 = vmatpush.bf16.msra.mxu1 %v4149_v32  ;;  %v4365_v24 = vor.u32 %v5333_v22, %v4362_v23  ;;  %v5327_v30 = vld [vmem:[#allocation11 + $0x1c4] sm:$0xf0]  ;;  %v4314_v34 = vld [vmem:[#allocation11 + $0x1c8] sm:$0xf0]  ;;  %v5314_v37 = vld [vmem:[#allocation11 + $0x15c] sm:$0xf0] }
  0x55   :  { %963 = vmatpush.bf16.msra.mxu2 %v4153_v33  ;;  %977 = vmatpush.bf16.msra.mxu3 %v4157_v36  ;;  %v4313_v32 = vor.u32 %v5327_v30, %v4312_v29  ;;  %v5321_v33 = vld [vmem:[#allocation11 + $0x19c] sm:$0xf]  ;;  %v4256_v36 = vld [vmem:[#allocation11 + $0x130] sm:$0xf]  ;;  %v5308_v38 = vld [vmem:[#allocation11 + $0x134] sm:$0xf] }
  0x56   :  { %v4317_v35 = vor.u32 %v5321_v33, %v4314_v34  ;;  %v4257_v39 = vor.u32 %v5314_v37, %v4256_v36  ;;  %v4264_v41 = vld [vmem:[#allocation11 + $0x138] sm:$0xf]  ;;  %v5315_v42 = vld [vmem:[#allocation11 + $0x164] sm:$0xf0]  ;;  %v4266_v46 = vld [vmem:[#allocation11 + $0x168] sm:$0xf0] }
  0x57   :  { %v4208_v48 = vld [vmem:[#allocation11 + $0xd0] sm:$0xf]  ;;  %v5296_v50 = vld [vmem:[#allocation11 + $0xd4] sm:$0xf]  ;;  %v4210_v52 = vld [vmem:[#allocation11 + $0x100] sm:$0xf0] }
  0x58   :  { %950 = vmatpush.bf16.msra.mxu1 %v4101_v44  ;;  %v4265_v44 = vor.u32 %v5315_v42, %v4264_v41  ;;  %v4213_v55 = vor.u32 %v5296_v50, %v4210_v52  ;;  %v5297_v57 = vld [vmem:[#allocation11 + $0xdc] sm:$0xf]  ;;  %v4160_v61 = vld [vmem:[#allocation11 + $0x70] sm:$0xf]  ;;  %v4114_v19 = vld [vmem:[#allocation11 + $0x40] sm:$0xf0] }
  0x59   :  { %964 = vmatpush.bf16.msra.mxu2 %v4105_v45  ;;  %978 = vmatpush.bf16.msra.mxu3 %v4109_v49  ;;  %v5309_v45 = vld [vmem:[#allocation11 + $0x13c] sm:$0xf]  ;;  %v5302_v49 = vld [vmem:[#allocation11 + $0xfc] sm:$0xf0]  ;;  %v5586_v41 = vld [vmem:[#allocation8] ss:$0 sm:$0xff] }
  0x5a   :  { %v4269_v47 = vor.u32 %v5309_v45, %v4266_v46  ;;  %v4209_v51 = vor.u32 %v5302_v49, %v4208_v48  ;;  %v5587_v45 = vld [vmem:[#allocation8 + $0x1] ss:$0 sm:$0xff]  ;;  %v4464_v49 = vld [vmem:[#allocation11 + $0x2c0] sm:$0xf]  ;;  %v5364_v50 = vld [vmem:[#allocation11 + $0x2ec] sm:$0xf0] }
  0x5b   :  { %v4466_v52 = vld [vmem:[#allocation11 + $0x2f0] sm:$0xf0] }
  0x5c   :  { %999 = vmatpush.bf16.msrb.mxu1 %v4453_v54  ;;  %v5303_v54 = vld [vmem:[#allocation11 + $0x104] sm:$0xf0] }
  0x5d   :  { %1013 = vmatpush.bf16.msrb.mxu2 %v4457_v58  ;;  %1027 = vmatpush.bf16.msrb.mxu3 %v4461_v62  ;;  %v4218_v58 = vld [vmem:[#allocation11 + $0x108] sm:$0xf0]  ;;  %v5290_v62 = vld [vmem:[#allocation11 + $0x9c] sm:$0xf0] }
  0x5e   :  { %v4221_v59 = vor.u32 %v5297_v57, %v4218_v58  ;;  %v5359_v57 = vld [vmem:[#allocation11 + $0x2cc] sm:$0xf]  ;;  %v4474_v58 = vld [vmem:[#allocation11 + $0x2f8] sm:$0xf0] }
  0xab   :  { %v272_v7 = vpop.xlane.xlu0 %271 }
  0xac   :  { %v282_v9 = vmul.f32 %v6169_v2, %v272_v7  ;;  %v4405_v7 = vor.u32 %v5344_v4, %v4402_v5  ;;  %v4161_v5 = vor.u32 %v5290_v62, %v4160_v61  ;;  %v4416_v61 = vld [vmem:[#allocation11 + $0x260] sm:$0xf]  ;;  %v5352_v62 = vld [vmem:[#allocation11 + $0x28c] sm:$0xf0] }
  0xae   :  { %v6173_v10 = vsub.f32 %v6156_v0, %v282_v9  ;;  %v5300_v0 = vld [vmem:[#allocation11 + $0xec] sm:$0xf0]  ;;  %v5345_v9 = vld [vmem:[#allocation11 + $0x25c] sm:$0xf]  ;;  %1000 = vmatpush.bf16.msrb.mxu1 %v4405_v7  ;;  %v4168_v7 = vld [vmem:[#allocation11 + $0x78] sm:$0xf] }
  0xaf   :  { %v4193_v17 = vor.u32 %v5300_v0, %v4192_v15  ;;  %v5338_v15 = vld [vmem:[#allocation11 + $0x21c] sm:$0xf0]  ;;  %v5332_v0 = vld [vmem:[#allocation11 + $0x1f4] sm:$0xf] }
  0xb0   :  { %v286_v3 = vmul.f32 %v6173_v10, %v6173_v10 }
  0xb1   :  { %934 = vmatpush.bf16.msra.mxu0 %v4193_v17  ;;  %v4354_v17 = vld [vmem:[#allocation11 + $0x220] sm:$0xf0] }
  0xb2   :  { %288 = vadd.xlane.f32.xlu1 %v286_v3  ;;  %v4410_v3 = vld [vmem:[#allocation11 + $0x288] sm:$0xf0]  ;;  %v4357_v20 = vor.u32 %v5332_v0, %v4354_v17  ;;  %v4112_v0 = vld [vmem:[#allocation11 + $0x10] sm:$0xf]  ;;  %v5272_v17 = vld [vmem:[#allocation11 + $0x14] sm:$0xf] }
  0xb3   :  { %v274_v11 = vpop.xlane.xlu0 %273  ;;  %v4117_v22 = vor.u32 %v5272_v17, %v4114_v19  ;;  %v4370_v17 = vld [vmem:[#allocation11 + $0x230] sm:$0xf0]  ;;  %v5341_v19 = vld [vmem:[#allocation11 + $0x234] sm:$0xf0] }
  0xb4   :  { %v283_v12 = vmul.f32 %v6169_v2, %v274_v11  ;;  %v4409_v11 = vor.u32 %v5351_v8, %v4408_v6  ;;  %1001 = vmatpush.bf16.msrb.mxu1 %v4357_v20  ;;  %v4162_v6 = vld [vmem:[#allocation11 + $0xa0] sm:$0xf0]  ;;  %v5291_v8 = vld [vmem:[#allocation11 + $0xa4] sm:$0xf0]  ;;  %v4120_v20 = vld [vmem:[#allocation11 + $0x18] sm:$0xf] }
  0xb6   :  { %v6179_v13 = vsub.f32 %v6159_v1, %v283_v12  ;;  %v4144_v1 = vld [vmem:[#allocation11 + $0x60] sm:$0xf]  ;;  %v4413_v12 = vor.u32 %v5345_v9, %v4410_v3  ;;  %1014 = vmatpush.bf16.msrb.mxu2 %v4409_v11  ;;  %v4169_v3 = vor.u32 %v5291_v8, %v4168_v7  ;;  %v5285_v11 = vld [vmem:[#allocation11 + $0x7c] sm:$0xf]  ;;  %v5353_v7 = vld [vmem:[#allocation11 + $0x294] sm:$0xf0] }
  0xb7   :  { %v4145_v28 = vor.u32 %v5288_v26, %v4144_v1  ;;  %v5326_v1 = vld [vmem:[#allocation11 + $0x1bc] sm:$0xf0]  ;;  %v5320_v26 = vld [vmem:[#allocation11 + $0x194] sm:$0xf]  ;;  %v5347_v8 = vld [vmem:[#allocation11 + $0x26c] sm:$0xf] }
  0xb8   :  { %v287_v14 = vmul.f32 %v6179_v13, %v6179_v13  ;;  %1028 = vmatpush.bf16.msrb.mxu3 %v4413_v12  ;;  %v4305_v27 = vor.u32 %v5326_v1, %v4304_v25  ;;  %v4170_v12 = vld [vmem:[#allocation11 + $0xa8] sm:$0xf0] }
  0xb9   :  { %935 = vmatpush.bf16.msra.mxu0 %v4145_v28  ;;  %v4306_v28 = vld [vmem:[#allocation11 + $0x1c0] sm:$0xf0]  ;;  %v4122_v25 = vld [vmem:[#allocation11 + $0x48] sm:$0xf0] }
  0xba   :  { %290 = vadd.xlane.f32.xlu1 %v287_v14  ;;  %v4352_v14 = vld [vmem:[#allocation11 + $0x1f0] sm:$0xf]  ;;  %1015 = vmatpush.bf16.msrb.mxu2 %v4361_v21  ;;  %v4309_v31 = vor.u32 %v5320_v26, %v4306_v28  ;;  %v5279_v21 = vld [vmem:[#allocation11 + $0x44] sm:$0xf0] }
  0xbb   :  { %v4353_v16 = vor.u32 %v5338_v15, %v4352_v14  ;;  %v4173_v15 = vor.u32 %v5285_v11, %v4170_v12  ;;  %v4121_v23 = vor.u32 %v5279_v21, %v4120_v20  ;;  %v4368_v12 = vld [vmem:[#allocation11 + $0x200] sm:$0xf]  ;;  %v5335_v20 = vld [vmem:[#allocation11 + $0x20c] sm:$0xf]  ;;  %v4378_v21 = vld [vmem:[#allocation11 + $0x238] sm:$0xf0] }
  0xbc   :  { %1029 = vmatpush.bf16.msrb.mxu3 %v4365_v24  ;;  %1002 = vmatpush.bf16.msrb.mxu1 %v4309_v31  ;;  %v5273_v24 = vld [vmem:[#allocation11 + $0x1c] sm:$0xf] }
  0xbd   :  { %936 = vmatpush.bf16.msra.mxu0 %v4097_v40  ;;  %v4258_v40 = vld [vmem:[#allocation11 + $0x160] sm:$0xf0]  ;;  %v4125_v26 = vor.u32 %v5273_v24, %v4122_v25  ;;  %v4320_v24 = vld [vmem:[#allocation11 + $0x1a0] sm:$0xf]  ;;  %v5328_v25 = vld [vmem:[#allocation11 + $0x1cc] sm:$0xf0] }
  0xbe   :  { %1016 = vmatpush.bf16.msrb.mxu2 %v4313_v32  ;;  %v4261_v43 = vor.u32 %v5308_v38, %v4258_v40 }
  0xc0   :  { %1030 = vmatpush.bf16.msrb.mxu3 %v4317_v35  ;;  %1003 = vmatpush.bf16.msrb.mxu1 %v4261_v43 }
  0xc1   :  { %985 = vmatpush.bf16.msrb.mxu0 %v4449_v53  ;;  %v4216_v53 = vld [vmem:[#allocation11 + $0xd8] sm:$0xf] }
  0xc2   :  { %1017 = vmatpush.bf16.msrb.mxu2 %v4265_v44  ;;  %v4217_v56 = vor.u32 %v5303_v54, %v4216_v53  ;;  %v4472_v53 = vld [vmem:[#allocation11 + $0x2c8] sm:$0xf] }
  0xc4   :  { %1031 = vmatpush.bf16.msrb.mxu3 %v4269_v47  ;;  %1004 = vmatpush.bf16.msrb.mxu1 %v4213_v55 }
  0xc5   :  { %986 = vmatpush.bf16.msrb.mxu0 %v4401_v63  ;;  %v5284_v63 = vld [vmem:[#allocation11 + $0x74] sm:$0xf] }
  0xc6   :  { %1018 = vmatpush.bf16.msrb.mxu2 %v4217_v56  ;;  %v4165_v9 = vor.u32 %v5284_v63, %v4162_v6  ;;  %v5365_v56 = vld [vmem:[#allocation11 + $0x2f4] sm:$0xf0]  ;;  %v4424_v6 = vld [vmem:[#allocation11 + $0x268] sm:$0xf] }
  0xc7   :  { %v4473_v63 = vor.u32 %v5365_v56, %v4472_v53  ;;  %v4232_v53 = vld [vmem:[#allocation11 + $0xe8] sm:$0xf]  ;;  %v4234_v56 = vld [vmem:[#allocation11 + $0x118] sm:$0xf0] }
  0xc8   :  { %1032 = vmatpush.bf16.msrb.mxu3 %v4221_v59  ;;  %1005 = vmatpush.bf16.msrb.mxu1 %v4165_v9  ;;  %v4465_v59 = vor.u32 %v5364_v50, %v4464_v49  ;;  %v4426_v9 = vld [vmem:[#allocation11 + $0x298] sm:$0xf0] }
  0xc9   :  { %987 = vmatpush.bf16.msrb.mxu0 %v4353_v16  ;;  %v5278_v16 = vld [vmem:[#allocation11 + $0x3c] sm:$0xf0] }
  0xca   :  { %1019 = vmatpush.bf16.msrb.mxu2 %v4169_v3  ;;  %v4113_v18 = vor.u32 %v5278_v16, %v4112_v0  ;;  %v4417_v3 = vor.u32 %v5352_v62, %v4416_v61  ;;  %v4429_v0 = vor.u32 %v5347_v8, %v4426_v9  ;;  %v5334_v16 = vld [vmem:[#allocation11 + $0x204] sm:$0xf] }
  0xcc   :  { %1033 = vmatpush.bf16.msrb.mxu3 %v4173_v15  ;;  %1006 = vmatpush.bf16.msrb.mxu1 %v4117_v22  ;;  %v4425_v15 = vor.u32 %v5353_v7, %v4424_v6  ;;  %v5287_v6 = vld [vmem:[#allocation11 + $0x8c] sm:$0xf]  ;;  %v4186_v7 = vld [vmem:[#allocation11 + $0xb8] sm:$0xf0] }
  0xcd   :  { %988 = vmatpush.bf16.msrb.mxu0 %v4305_v27 }
  0xce   :  { %1020 = vmatpush.bf16.msrb.mxu2 %v4121_v23  ;;  %v4373_v23 = vor.u32 %v5334_v16, %v4370_v17  ;;  %v4136_v16 = vld [vmem:[#allocation11 + $0x28] sm:$0xf]  ;;  %v5281_v17 = vld [vmem:[#allocation11 + $0x54] sm:$0xf0] }
  0xd0   :  { %1034 = vmatpush.bf16.msrb.mxu3 %v4125_v26  ;;  %v4381_v26 = vor.u32 %v5335_v20, %v4378_v21 }
  0xd1   :  { %989 = vmatpush.bf16.msrb.mxu0 %v4257_v39 }
  0xd5   :  { %990 = vmatpush.bf16.msrb.mxu0 %v4209_v51  ;;  %v5358_v51 = vld [vmem:[#allocation11 + $0x2c4] sm:$0xf] }
  0xd9   :  { %991 = vmatpush.bf16.msrb.mxu0 %v4161_v5  ;;  %v4418_v5 = vld [vmem:[#allocation11 + $0x290] sm:$0xf0] }
  0xdd   :  { %992 = vmatpush.bf16.msrb.mxu0 %v4113_v18  ;;  %v4376_v18 = vld [vmem:[#allocation11 + $0x208] sm:$0xf] }
 0x125   :  { %v289_v60 = vpop.xlane.xlu1 %288 }
 0x126   :  { %v292_v4 = vmul.f32 %v289_v60, %v6169_v2  ;;  %v4469_v60 = vor.u32 %v5358_v51, %v4466_v52  ;;  %v5298_v51 = vld [vmem:[#allocation11 + $0xe4] sm:$0xf]  ;;  %v4226_v52 = vld [vmem:[#allocation11 + $0x110] sm:$0xf0] }
 0x128   :  { %v294_v14 = vadd.f32 1e-12, %v292_v4  ;;  %v4477_v4 = vor.u32 %v5359_v57, %v4474_v58  ;;  %v4229_v58 = vor.u32 %v5298_v51, %v4226_v52 }
 0x12a   :  { %5597 = vrsqrt.f32 %v294_v14  ;;  %vm302_vm2 = vweird.f32 %v294_v14 }
 0x12d   :  { %v291_v1 = vpop.xlane.xlu1 %290 }
 0x12e   :  { %v293_v27 = vmul.f32 %v291_v1, %v6169_v2  ;;  %v4377_v1 = vor.u32 %v5341_v19, %v4376_v18  ;;  %v5275_v18 = vld [vmem:[#allocation11 + $0x2c] sm:$0xf]  ;;  %v4138_v19 = vld [vmem:[#allocation11 + $0x58] sm:$0xf0] }
 0x130   :  { %v5598_v28 = vpop.eup %5597  ;;  %v295_v29 = vadd.f32 1e-12, %v293_v27  ;;  %v5322_v27 = vld [vmem:[#allocation11 + $0x1a4] sm:$0xf] }
 0x131   :  { %v297_v30 = vmul.f32 %v5598_v28, %v294_v14  ;;  %vm303_vm1 = vweird.f32 %v5598_v28  ;;  %v5340_v14 = vld [vmem:[#allocation11 + $0x22c] sm:$0xf0] }
 0x132   :  { %5599 = vrsqrt.f32 %v295_v29  ;;  %vm304_vm3 = vmor %vm302_vm2, %vm303_vm1  ;;  %vm312_vm5 = vweird.f32 %v295_v29  ;;  %v4369_v22 = vor.u32 %v5340_v14, %v4368_v12  ;;  %v4189_v14 = vor.u32 %v5287_v6, %v4186_v7 }
 0x133   :  { %v298_v31 = vmul.f32 %v5598_v28, %v297_v30  ;;  %v5329_v30 = vld [vmem:[#allocation11 + $0x1d4] sm:$0xf0] }
 0x135   :  { %v299_v32 = vmul.f32 0.5, %v298_v31  ;;  %v5323_v31 = vld [vmem:[#allocation11 + $0x1ac] sm:$0xf] }
 0x137   :  { %v300_v33 = vsub.f32 1.5, %v299_v32  ;;  %v4330_v32 = vld [vmem:[#allocation11 + $0x1d8] sm:$0xf0] }
 0x138   :  { %v5600_v34 = vpop.eup %5599 }
 0x139   :  { %v301_v35 = vmul.f32 %v5598_v28, %v300_v33  ;;  %v307_v36 = vmul.f32 %v5600_v34, %v295_v29  ;;  %vm313_vm4 = vweird.f32 %v5600_v34  ;;  %v4328_v29 = vld [vmem:[#allocation11 + $0x1a8] sm:$0xf]  ;;  %v4321_v33 = vor.u32 %v5328_v25, %v4320_v24 }
 0x13a   :  { %vm314_vm6 = vmor %vm312_vm5, %vm313_vm4 }
 0x13b   :  { %v308_v37 = vmul.f32 %v5600_v34, %v307_v36  ;;  %v305_v38 = vsel %vm304_vm3, %v5598_v28, %v301_v35  ;;  %v4322_v28 = vld [vmem:[#allocation11 + $0x1d0] sm:$0xf0]  ;;  %v4272_v35 = vld [vmem:[#allocation11 + $0x140] sm:$0xf]  ;;  %v5316_v36 = vld [vmem:[#allocation11 + $0x16c] sm:$0xf0] }
 0x13c   :  { %v316_v42 = vmul.f32 %v305_v38, %v6173_v10  ;;  %v4333_v38 = vor.u32 %v5323_v31, %v4330_v32 }
 0x13d   :  { %v309_v39 = vmul.f32 0.5, %v308_v37  ;;  %v4329_v37 = vor.u32 %v5329_v30, %v4328_v29 }
 0x13e   :  { %v319_v46 = vmul.f32 %v5586_v41, %v316_v42  ;;  %v5317_v42 = vld [vmem:[#allocation11 + $0x174] sm:$0xf0] }
 0x13f   :  { %v310_v40 = vsub.f32 1.5, %v309_v39  ;;  %v5310_v39 = vld [vmem:[#allocation11 + $0x144] sm:$0xf] }
 0x140   :  { %v322_v54 = vadd.f32 %v5587_v45, %v319_v46 }
 0x141   :  { %v311_v43 = vmul.f32 %v5600_v34, %v310_v40  ;;  %v4274_v40 = vld [vmem:[#allocation11 + $0x170] sm:$0xf0] }
 0x142   :  { %v4277_v46 = vor.u32 %v5310_v39, %v4274_v40 }
 0x143   :  { %v315_v44 = vsel %vm314_vm6, %v5600_v34, %v311_v43  ;;  %v4325_v34 = vor.u32 %v5322_v27, %v4322_v28  ;;  %v5311_v43 = vld [vmem:[#allocation11 + $0x14c] sm:$0xf] }
 0x144   :  { %v317_v47 = vmul.f32 %v315_v44, %v6179_v13  ;;  %v5346_v13 = vld [vmem:[#allocation11 + $0x264] sm:$0xf]  ;;  %v4282_v44 = vld [vmem:[#allocation11 + $0x178] sm:$0xf0] }
 0x145   :  { %v4421_v11 = vor.u32 %v5346_v13, %v4418_v5  ;;  %v4285_v50 = vor.u32 %v5311_v43, %v4282_v44  ;;  %v4184_v13 = vld [vmem:[#allocation11 + $0x88] sm:$0xf]  ;;  %v5293_v5 = vld [vmem:[#allocation11 + $0xb4] sm:$0xf0] }
 0x146   :  { %v320_v48 = vmul.f32 %v5586_v41, %v317_v47  ;;  %v4280_v41 = vld [vmem:[#allocation11 + $0x148] sm:$0xf]  ;;  %v4224_v47 = vld [vmem:[#allocation11 + $0xe0] sm:$0xf]  ;;  %v4185_v12 = vor.u32 %v5293_v5, %v4184_v13 }
 0x147   :  { %v4281_v49 = vor.u32 %v5317_v42, %v4280_v41 }
 0x148   :  { %v323_v55 = vadd.f32 %v5587_v45, %v320_v48  ;;  %v4273_v45 = vor.u32 %v5316_v36, %v4272_v35  ;;  %v5304_v48 = vld [vmem:[#allocation11 + $0x10c] sm:$0xf0] }
 0x149   :  { %v4225_v57 = vor.u32 %v5304_v48, %v4224_v47 }
 0x14a   :  { %v6187_v10 = vpack.c.bf16 %v323_v55, %v322_v54  ;;  %v5305_v54 = vld [vmem:[#allocation11 + $0x114] sm:$0xf0]  ;;  %v5299_v55 = vld [vmem:[#allocation11 + $0xec] sm:$0xf] }
 0x14b   :  { %v4233_v61 = vor.u32 %v5305_v54, %v4232_v53  ;;  %v4237_v62 = vor.u32 %v5299_v55, %v4234_v56  ;;  %v6219_v56 = vld [vmem:[#allocation10 + $0x8] sm:$0xf] }
 0x14c   :  { %937 = vmatmul.bf16.vlgmr.msra.gmra.mxu0 %v6187_v10  ;;  %951 = vmatmul.bf16.vlgmr.msra.gmra.mxu1 %v6187_v10 }
 0x14d   :  { %965 = vmatmul.bf16.vlgmr.msra.gmra.mxu2 %v6187_v10  ;;  %979 = vmatmul.bf16.vlgmr.msra.gmra.mxu3 %v6187_v10 }
 0x14e   :  { %1041 = vmatpush.bf16.msra.mxu0 %v4465_v59  ;;  %1055 = vmatpush.bf16.msra.mxu1 %v4469_v60  ;;  %v4176_v59 = vld [vmem:[#allocation11 + $0x80] sm:$0xf]  ;;  %v5292_v60 = vld [vmem:[#allocation11 + $0xac] sm:$0xf0] }
 0x14f   :  { %1069 = vmatpush.bf16.msra.mxu2 %v4473_v63  ;;  %1083 = vmatpush.bf16.msra.mxu3 %v4477_v4  ;;  %v5286_v63 = vld [vmem:[#allocation11 + $0x84] sm:$0xf]  ;;  %v4178_v4 = vld [vmem:[#allocation11 + $0xb0] sm:$0xf0]  ;;  %v4177_v8 = vor.u32 %v5292_v60, %v4176_v59 }
 0x150   :  { %v4181_v9 = vor.u32 %v5286_v63, %v4178_v4  ;;  %v434_v63 = vperm.slane %v6219_v56, 1 }
 0x152   :  { %1042 = vmatpush.bf16.msra.mxu0 %v4417_v3  ;;  %1056 = vmatpush.bf16.msra.mxu1 %v4421_v11  ;;  %v4128_v3 = vld [vmem:[#allocation11 + $0x20] sm:$0xf]  ;;  %v5280_v11 = vld [vmem:[#allocation11 + $0x4c] sm:$0xf0] }
 0x153   :  { %1070 = vmatpush.bf16.msra.mxu2 %v4425_v15  ;;  %1084 = vmatpush.bf16.msra.mxu3 %v4429_v0  ;;  %v5274_v15 = vld [vmem:[#allocation11 + $0x24] sm:$0xf]  ;;  %v4130_v0 = vld [vmem:[#allocation11 + $0x50] sm:$0xf0]  ;;  %v4129_v20 = vor.u32 %v5280_v11, %v4128_v3 }
 0x154   :  { %v4133_v21 = vor.u32 %v5274_v15, %v4130_v0 }
 0x156   :  { %1043 = vmatpush.bf16.msra.mxu0 %v4369_v22  ;;  %1057 = vmatpush.bf16.msra.mxu1 %v4373_v23  ;;  %v4137_v22 = vor.u32 %v5281_v17, %v4136_v16  ;;  %v4141_v23 = vor.u32 %v5275_v18, %v4138_v19  ;;  %v435_v17 = vperm.slane %v6219_v56, 2  ;;  %v436_v18 = vperm.slane %v6219_v56, 3  ;;  %v5372_v19 = vld [vmem:[#allocation13 + $0x30] sm:$0xff] }
 0x157   :  { %1071 = vmatpush.bf16.msra.mxu2 %v4377_v1  ;;  %1085 = vmatpush.bf16.msra.mxu3 %v4381_v26  ;;  %v6201_v1 = vld [vmem:[#allocation10] sm:$0xff] }
 0x158   :  { %v427_v26 = vperm.slane %v6201_v1, 2  ;;  %v428_v27 = vperm.slane %v6201_v1, 3  ;;  %v430_v35 = vperm.slane %v6201_v1, 5  ;;  %v425_v42 = vperm.slane %v6201_v1, 0 }
 0x159   :  { %v426_v43 = vperm.slane %v6201_v1, 1 }
 0x15a   :  { %1044 = vmatpush.bf16.msra.mxu0 %v4321_v33  ;;  %1058 = vmatpush.bf16.msra.mxu1 %v4325_v34 }
 0x15b   :  { %1072 = vmatpush.bf16.msra.mxu2 %v4329_v37  ;;  %1086 = vmatpush.bf16.msra.mxu3 %v4333_v38 }
 0x15c   :  { %993 = vmatmul.bf16.vlgmr.msrb.gmra.mxu0 %v6187_v10  ;;  %1007 = vmatmul.bf16.vlgmr.msrb.gmra.mxu1 %v6187_v10 }
 0x15d   :  { %1021 = vmatmul.bf16.vlgmr.msrb.gmra.mxu2 %v6187_v10  ;;  %1035 = vmatmul.bf16.vlgmr.msrb.gmra.mxu3 %v6187_v10 }
 0x15e   :  { %1045 = vmatpush.bf16.msra.mxu0 %v4273_v45  ;;  %1059 = vmatpush.bf16.msra.mxu1 %v4277_v46 }
 0x15f   :  { %1073 = vmatpush.bf16.msra.mxu2 %v4281_v49  ;;  %1087 = vmatpush.bf16.msra.mxu3 %v4285_v50 }
 0x162   :  { %1046 = vmatpush.bf16.msra.mxu0 %v4225_v57  ;;  %1060 = vmatpush.bf16.msra.mxu1 %v4229_v58  ;;  %v431_v57 = vperm.slane %v6201_v1, 6  ;;  %v432_v58 = vperm.slane %v6201_v1, 7 }
 0x163   :  { %1074 = vmatpush.bf16.msra.mxu2 %v4233_v61  ;;  %1088 = vmatpush.bf16.msra.mxu3 %v4237_v62  ;;  %v433_v62 = vperm.slane %v6219_v56, 0 }
 0x166   :  { %1047 = vmatpush.bf16.msra.mxu0 %v4177_v8  ;;  %1061 = vmatpush.bf16.msra.mxu1 %v4181_v9  ;;  %v5373_v9 = vld [vmem:[#allocation13 + $0x38] sm:$0xff] }
 0x167   :  { %1075 = vmatpush.bf16.msra.mxu2 %v4185_v12  ;;  %1089 = vmatpush.bf16.msra.mxu3 %v4189_v14 }
 0x16a   :  { %1048 = vmatpush.bf16.msra.mxu0 %v4129_v20  ;;  %1062 = vmatpush.bf16.msra.mxu1 %v4133_v21 }
 0x16b   :  { %1076 = vmatpush.bf16.msra.mxu2 %v4137_v22  ;;  %1090 = vmatpush.bf16.msra.mxu3 %v4141_v23 }
 0x16d   :  { %1049 = vmatmul.bf16.vlgmr.msra.gmra.mxu0 %v6187_v10  ;;  %1063 = vmatmul.bf16.vlgmr.msra.gmra.mxu1 %v6187_v10 }
 0x16e   :  { %1077 = vmatmul.bf16.vlgmr.msra.gmra.mxu2 %v6187_v10  ;;  %1091 = vmatmul.bf16.vlgmr.msra.gmra.mxu3 %v6187_v10  ;;  %v429_v10 = vperm.slane %v6201_v1, 4 }
 0x1c9   :  { %v938_v24 = vpop.f32.mrf.mxu0  ;;  %v952_v25 = vpop.f32.mrf.mxu1 }
 0x1ca   :  { %v939_v46 = vadd.f32 %v938_v24, %v425_v42  ;;  %v953_v47 = vadd.f32 %v952_v25, %v426_v43 }
 0x1cc   :  { %v1097_v54 = vpack.c.bf16 %v953_v47, %v939_v46 }
 0x1d0   :  { %v966_v28 = vpop.f32.mrf.mxu2  ;;  %v980_v29 = vpop.f32.mrf.mxu3 }
 0x1d1   :  { %v967_v30 = vadd.f32 %v966_v28, %v427_v26  ;;  %v981_v31 = vadd.f32 %v980_v29, %v428_v27  ;;  %v940_v32 = vpop.f32.mrf.mxu0  ;;  %v954_v33 = vpop.f32.mrf.mxu1 }
 0x1d2   :  { %v941_v60 = vadd.f32 %v940_v32, %v425_v42  ;;  %v955_v61 = vadd.f32 %v954_v33, %v426_v43  ;;  %v5371_v32 = vld [vmem:[#allocation13 + $0x28] sm:$0xff]  ;;  %v1244_v33 = vrot.slane %v1097_v54, 4 }
 0x1d3   :  { %v6209_v34 = vpack.c.bf16 %v981_v31, %v967_v30 }
 0x1d4   :  { %v1103_v3 = vpack.c.bf16 %v955_v61, %v941_v60  ;;  %v6247_v61 = vld [vmem:[#allocation7] sm:$0xff] }
 0x1d5   :  { %vm235_vm8 = vcmp.gt.f32.partialorder %v6247_v61, 0.0 }
 0x1d8   :  { %v6213_v36 = vpop.f32.mrf.mxu2  ;;  %v6215_v37 = vpop.f32.mrf.mxu3 }
 0x1d9   :  { %v994_v38 = vpop.f32.mrf.mxu0  ;;  %v1008_v39 = vpop.f32.mrf.mxu1 }
 0x1da   :  { %v995_v40 = vadd.f32 %v994_v38, %v429_v10  ;;  %v1009_v41 = vadd.f32 %v1008_v39, %v430_v35 }
 0x1dc   :  { %v1099_v44 = vpack.c.bf16 %v1009_v41, %v995_v40  ;;  %v5370_v41 = vld [vmem:[#allocation13 + $0x20] sm:$0xff] }
 0x1de   :  { %v1247_v45 = vrot.slane %v1099_v44, 4  ;;  %1116 = vmatpush.bf16.xpose.msrb.mxu0 %v1099_v44 }
 0x1e0   :  { %v1022_v48 = vpop.f32.mrf.mxu2  ;;  %v1036_v49 = vpop.f32.mrf.mxu3 }
 0x1e1   :  { %v996_v50 = vpop.f32.mrf.mxu0  ;;  %v1010_v51 = vpop.f32.mrf.mxu1  ;;  %v1023_v15 = vadd.f32 %v1022_v48, %v431_v57  ;;  %v1037_v0 = vadd.f32 %v1036_v49, %v432_v58 }
 0x1e2   :  { %v997_v52 = vadd.f32 %v996_v50, %v429_v10  ;;  %v1011_v53 = vadd.f32 %v1010_v51, %v430_v35  ;;  %v5369_v51 = vld [vmem:[#allocation13 + $0x18] sm:$0xff] }
 0x1e3   :  { %v1100_v22 = vpack.c.bf16 %v1037_v0, %v1023_v15 }
 0x1e4   :  { %v1105_v55 = vpack.c.bf16 %v1011_v53, %v997_v52  ;;  %v1263_v52 = vrot.slane %v1103_v3, 4 }
 0x1e5   :  { %1117 = vmatmul.bf16.vlgmr.msrb.gmra.mxu0 %v1097_v54  ;;  %v5368_v54 = vld [vmem:[#allocation13 + $0x10] sm:$0xff]  ;;  %v1717_v60 = vrot.slane %v1100_v22, 4 }
 0x1e6   :  { %1256 = vmatpush.bf16.xpose.msra.mxu0 %v1247_v45  ;;  %v1266_v59 = vrot.slane %v1105_v55, 4  ;;  %1129 = vmatpush.bf16.xpose.msrb.mxu1 %v1105_v55 }
 0x1e8   :  { %v1024_v4 = vpop.f32.mrf.mxu2  ;;  %v1038_v13 = vpop.f32.mrf.mxu3 }
 0x1e9   :  { %v1025_v5 = vadd.f32 %v1024_v4, %v431_v57  ;;  %v1039_v6 = vadd.f32 %v1038_v13, %v432_v58  ;;  %v5367_v58 = vld [vmem:[#allocation13 + $0x8] sm:$0xff]  ;;  %v6253_v13 = vld [vmem:[#allocation7 + $0x8] sm:$0xff] }
 0x1ea   :  { %v1050_v7 = vpop.f32.mrf.mxu0  ;;  %v1064_v8 = vpop.f32.mrf.mxu1  ;;  %vm236_vm10 = vcmp.gt.f32.partialorder %v6253_v13, 0.0 }
 0x1eb   :  { %v6225_v11 = vpack.c.bf16 %v1039_v6, %v1025_v5  ;;  %v1051_v12 = vadd.f32 %v1050_v7, %v433_v62  ;;  %v1065_v14 = vadd.f32 %v1064_v8, %v434_v63 }
 0x1ed   :  { %v1101_v16 = vpack.c.bf16 %v1065_v14, %v1051_v12  ;;  %1130 = vmatmul.bf16.vlgmr.msrb.gmra.mxu1 %v1103_v3 }
 0x1ee   :  { %1275 = vmatpush.bf16.xpose.msra.mxu1 %v1266_v59  ;;  %v5366_v59 = vld [vmem:[#allocation13] sm:$0xff] }
 0x1ef   :  { %v1332_v20 = vrot.slane %v1101_v16, 4  ;;  %v1190_v21 = vsel %vm1188_vm7, %v1101_v16, 0 }
 0x1f0   :  { %1199 = vmatpush.bf16.msrb.mxu3 %v1190_v21 }
 0x1f1   :  { %v1078_v23 = vpop.f32.mrf.mxu2  ;;  %v1092_v24 = vpop.f32.mrf.mxu3  ;;  %v1337_v25 = vsel %vm1188_vm7, %v1332_v20, 0 }
 0x1f2   :  { %v1079_v28 = vadd.f32 %v1078_v23, %v435_v17  ;;  %v1093_v29 = vadd.f32 %v1092_v24, %v436_v18  ;;  %v1052_v30 = vpop.f32.mrf.mxu0  ;;  %v1066_v31 = vpop.f32.mrf.mxu1  ;;  %1346 = vmatpush.bf16.msrb.mxu2 %v1337_v25 }
 0x1f3   :  { %v1053_v10 = vadd.f32 %v1052_v30, %v433_v62  ;;  %v1067_v35 = vadd.f32 %v1066_v31, %v434_v63  ;;  %v6026_v62 = vmov -1e+09  }
 0x1f4   :  { %v1102_v38 = vpack.c.bf16 %v1093_v29, %v1079_v28  ;;  %v6251_v63 = vsel %vm235_vm8, 0.0, %v6026_v62  ;;  %v6259_v7 = vsel %vm236_vm10, 0.0, %v6026_v62 }
 0x1f5   :  { %v1107_v39 = vpack.c.bf16 %v1067_v35, %v1053_v10  ;;  %1257 = vmatmul.bf16.vlgmr.msra.gmra.mxu0 %v1244_v33 }
 0x1f6   :  { %1502 = vmatpush.bf16.msrb.mxu1 %v5373_v9  ;;  %1523 = vmatpush.bf16.xpose.msra.mxu2 %v1100_v22  ;;  %v1802_v40 = vrot.slane %v1102_v38, 4  ;;  %v6232_v42 = vsel %vm1188_vm7, %v1102_v38, 0 }
 0x1f7   :  { %v1209_v43 = vsel %vm1188_vm7, %v1107_v39, 0  ;;  %v1353_v44 = vrot.slane %v1107_v39, 4 }
 0x1f8   :  { %1218 = vmatpush.bf16.msra.mxu3 %v1209_v43  ;;  %v6236_v45 = vsel %vm1188_vm7, %v1802_v40, 0 }
 0x1f9   :  { %v1080_v46 = vpop.f32.mrf.mxu2  ;;  %v1094_v47 = vpop.f32.mrf.mxu3  ;;  %v6239_v48 = vsel %vm1188_vm7, %v1353_v44, 0 }
 0x1fa   :  { %1503 = vmatpush.bf16.msrb.mxu1 %v5372_v19  ;;  %v1081_v49 = vadd.f32 %v1080_v46, %v435_v17  ;;  %v1095_v50 = vadd.f32 %v1094_v47, %v436_v18 }
 0x1fc   :  { %v1108_v53 = vpack.c.bf16 %v1095_v50, %v1081_v49 }
 0x1fd   :  { %1276 = vmatmul.bf16.vlgmr.msra.gmra.mxu1 %v1263_v52 }
 0x1fe   :  { %1504 = vmatpush.bf16.msrb.mxu1 %v5371_v32  ;;  %v6242_v55 = vsel %vm1188_vm7, %v1108_v53, 0  ;;  %v1823_v56 = vrot.slane %v1108_v53, 4 }
 0x200   :  { %v6245_v57 = vsel %vm1188_vm7, %v1823_v56, 0 }
 0x202   :  { %1505 = vmatpush.bf16.msrb.mxu1 %v5370_v41 }
 0x206   :  { %1506 = vmatpush.bf16.msrb.mxu1 %v5369_v51 }
 0x20a   :  { %1507 = vmatpush.bf16.msrb.mxu1 %v5368_v54 }
 0x20e   :  { %1508 = vmatpush.bf16.msrb.mxu1 %v5367_v58 }
 0x212   :  { %1509 = vmatpush.bf16.msrb.mxu1 %v5366_v59 }
 0x216   :  { %1726 = vmatpush.bf16.xpose.msra.mxu1 %v1717_v60 }
 0x262   :  { %v1118_v4 = vpop.f32.mrf.mxu0 }
 0x263   :  { %v1119_v5 = vadd.f32 %v1118_v4, %v6251_v63 }
 0x265   :  { %v1135_v6 = vsel %vm243_vm9, %v1119_v5, -inf }
 0x266   :  { %1136 = vmax.xlane.f32.xlu0 %v1135_v6 }
 0x26a   :  { %v1120_v8 = vpop.f32.mrf.mxu0  ;;  %v1131_v9 = vpop.f32.mrf.mxu1 }
 0x26b   :  { %v1132_v3 = vadd.f32 %v1131_v9, %v6259_v7  ;;  %v247_v8 = vsel %vm243_vm9, %v6253_v13, -inf }
 0x26d   :  { %v1138_v12 = vsel %vm243_vm9, %v1132_v3, -inf }
 0x26e   :  { %1139 = vmax.xlane.f32.xlu1 %v1138_v12 }
 0x272   :  { %v1133_v14 = vpop.f32.mrf.mxu1  ;;  %v1258_v15 = vpop.f32.mrf.mxu0 }
 0x273   :  { %v1259_v0 = vadd.f32 %v1258_v15, %v6251_v63 }
 0x275   :  { %v1281_v16 = vsel %vm243_vm9, %v1259_v0, -inf }
 0x276   :  { %1282 = vmax.xlane.f32.xlu2 %v1281_v16 }
 0x27a   :  { %v1260_v17 = vpop.f32.mrf.mxu0  ;;  %v1277_v18 = vpop.f32.mrf.mxu1 }
 0x27b   :  { %v1278_v19 = vadd.f32 %v1277_v18, %v6259_v7 }
 0x27d   :  { %v1284_v20 = vsel %vm243_vm9, %v1278_v19, -inf }
 0x27e   :  { %1285 = vmax.xlane.f32.xlu1 %v1284_v20 }
 0x282   :  { %v1279_v21 = vpop.f32.mrf.mxu1 }
 0x2d9   :  { %v1137_v25 = vpop.xlane.xlu0 %1136 }
 0x2da   :  { %v1141_v31 = vsub.f32 %v1119_v5, %v1137_v25 }
 0x2dc   :  { %v1143_v10 = vmul.f32 1.442695, %v1141_v31 }
 0x2e1   :  { %v1140_v22 = vpop.xlane.xlu1 %1139 }
 0x2e2   :  { %v1142_v23 = vsub.f32 %v1132_v3, %v1140_v22 }
 0x2e4   :  { %v1145_v24 = vmul.f32 1.442695, %v1142_v23 }
 0x2e6   :  { %5601 = vpow2.f32 %v1145_v24 }
 0x2e9   :  { %v1283_v28 = vpop.xlane.xlu2 %1282 }
 0x2ea   :  { %v1287_v29 = vsub.f32 %v1259_v0, %v1283_v28 }
 0x2ec   :  { %v6267_v30 = vpop.eup %5601  ;;  %v1289_v32 = vmul.f32 1.442695, %v1287_v29 }
 0x2ed   :  { %v1150_v33 = vsel %vm243_vm9, %v6267_v30, 0.0 }
 0x2ee   :  { %5603 = vpow2.f32 %v1289_v32  ;;  %1151 = vadd.xlane.f32.xlu0 %v1150_v33 }
 0x2ef   :  { %5605 = vpow2.f32 %v1143_v10 }
 0x2f1   :  { %v1286_v35 = vpop.xlane.xlu1 %1285 }
 0x2f2   :  { %v1288_v38 = vsub.f32 %v1278_v19, %v1286_v35 }
 0x2f4   :  { %v5604_v39 = vpop.eup %5603  ;;  %v1291_v40 = vmul.f32 1.442695, %v1288_v38 }
 0x2f5   :  { %v1293_v41 = vsel %vm243_vm9, %v5604_v39, 0.0  ;;  %v5606_v43 = vpop.eup %5605 }
 0x2f6   :  { %5607 = vpow2.f32 %v1291_v40  ;;  %1294 = vadd.xlane.f32.xlu2 %v1293_v41  ;;  %v1147_v47 = vsel %vm243_vm9, %v5606_v43, 0.0 }
 0x2fc   :  { %v6272_v44 = vpop.eup %5607 }
 0x2fd   :  { %v1296_v46 = vsel %vm243_vm9, %v6272_v44, 0.0 }
 0x2fe   :  { %1297 = vadd.xlane.f32.xlu0 %v1296_v46  ;;  %1148 = vadd.xlane.f32.xlu2 %v1147_v47 }
 0x306   :  { %248 = vmax.xlane.f32.xlu0 %v247_v8  ;;  %v5379_v8 = vld [vmem:[#allocation13 + $0x68] sm:$0xff] }
 0x361   :  { %v1152_v50 = vpop.xlane.xlu0 %1151 }
 0x362   :  { %v1178_v33 = vand.u32 2147483648, %v1152_v50  ;;  %vm1172_vm4 = vweird.f32 %v1152_v50  ;;  %v1176_v10 = vand.u32 2147483647, %v1152_v50 }
 0x364   :  { %v1179_v38 = vor.u32 1.1754944e-38, %v1178_v33  ;;  %vm1177_vm6 = vcmp.eq.f32.partialorder %v1176_v10, 8.507059e+37 }
 0x369   :  { %v1295_v49 = vpop.xlane.xlu2 %1294 }
 0x36a   :  { %5609 = vrcp.f32 %v1295_v49  ;;  %v1310_v56 = vand.u32 2147483648, %v1295_v49  ;;  %v1308_v59 = vand.u32 2147483647, %v1295_v49  ;;  %vm1304_vm12 = vweird.f32 %v1295_v49 }
 0x36b   :  { %5611 = vrcp.f32 %v1152_v50 }
 0x36c   :  { %v1311_v6 = vor.u32 1.1754944e-38, %v1310_v56  ;;  %vm1309_vm14 = vcmp.eq.f32.partialorder %v1308_v59, 8.507059e+37 }
 0x370   :  { %v5610_v51 = vpop.eup %5609 }
 0x371   :  { %v1300_v52 = vmul.f32 %v5610_v51, %v1295_v49  ;;  %v1149_v53 = vpop.xlane.xlu2 %1148  ;;  %vm1305_vm11 = vweird.f32 %v5610_v51  ;;  %v5612_v60 = vpop.eup %5611 }
 0x372   :  { %5613 = vrcp.f32 %v1149_v53  ;;  %vm1306_vm13 = vmor %vm1304_vm12, %vm1305_vm11  ;;  %v1168_v14 = vmul.f32 %v5612_v60, %v1152_v50  ;;  %v1164_v16 = vand.u32 2147483648, %v1149_v53  ;;  %v1162_v18 = vand.u32 2147483647, %v1149_v53  ;;  %v1298_v22 = vpop.xlane.xlu0 %1297 }
 0x373   :  { %v1301_v54 = vsub.f32 1.0, %v1300_v52  ;;  %vm1158_vm0 = vweird.f32 %v1149_v53  ;;  %5615 = vrcp.f32 %v1298_v22  ;;  %vm1173_vm3 = vweird.f32 %v5612_v60 }
 0x374   :  { %v1169_v20 = vsub.f32 1.0, %v1168_v14  ;;  %v1165_v13 = vor.u32 1.1754944e-38, %v1164_v16  ;;  %vm1163_vm2 = vcmp.eq.f32.partialorder %v1162_v18, 8.507059e+37  ;;  %vm1174_vm5 = vmor %vm1172_vm4, %vm1173_vm3  ;;  %vm1318_vm8 = vweird.f32 %v1298_v22  ;;  %v5376_v16 = vld [vmem:[#allocation13 + $0x50] sm:$0xff] }
 0x375   :  { %v1302_v58 = vmul.f32 %v5610_v51, %v1301_v54  ;;  %v1322_v50 = vand.u32 2147483647, %v1298_v22 }
 0x376   :  { %v1170_v25 = vmul.f32 %v5612_v60, %v1169_v20 }
 0x377   :  { %v1303_v4 = vadd.f32 %v5610_v51, %v1302_v58  ;;  %vm1323_vm11 = vcmp.eq.f32.partialorder %v1322_v50, 8.507059e+37 }
 0x378   :  { %v5614_v5 = vpop.eup %5613  ;;  %v1171_v31 = vadd.f32 %v5612_v60, %v1170_v25 }
 0x379   :  { %v1307_v9 = vsel %vm1306_vm13, %v5610_v51, %v1303_v4  ;;  %v1154_v3 = vmul.f32 %v5614_v5, %v1149_v53  ;;  %vm1159_vm15 = vweird.f32 %v5614_v5  ;;  %v5616_v32 = vpop.eup %5615 }
 0x37a   :  { %v1312_v12 = vsel %vm1309_vm14, %v1311_v6, %v1307_v9  ;;  %vm1160_vm1 = vmor %vm1158_vm0, %vm1159_vm15  ;;  %v1175_v35 = vsel %vm1174_vm5, %v5612_v60, %v1171_v31  ;;  %vm1319_vm7 = vweird.f32 %v5616_v32  ;;  %v249_v20 = vpop.xlane.xlu0 %248 }
 0x37b   :  { %v1327_v15 = vmul.f32 %v5604_v39, %v1312_v12  ;;  %v1155_v0 = vsub.f32 1.0, %v1154_v3  ;;  %v1736_v39 = vrot.slane %v6225_v11, 4  ;;  %v1180_v40 = vsel %vm1177_vm6, %v1179_v38, %v1175_v35  ;;  %vm1320_vm10 = vmor %vm1318_vm8, %vm1319_vm7  ;;  %v5378_v3 = vld [vmem:[#allocation13 + $0x60] sm:$0xff]  ;;  %v5377_v12 = vld [vmem:[#allocation13 + $0x58] sm:$0xff] }
 0x37c   :  { %vm251_vm12 = vcmp.gt.f32.partialorder %v249_v20, 0.0  ;;  %v5386_v20 = vld [vmem:[#allocation13 + $0xa0] sm:$0xff] }
 0x37d   :  { %v1156_v17 = vmul.f32 %v5614_v5, %v1155_v0  ;;  %v1329_v19 = vpack.c.bf16 %v1327_v15, %v1327_v15 }
 0x37f   :  { %v1157_v21 = vadd.f32 %v5614_v5, %v1156_v17  ;;  %4480 = vmatmul.msk.bf16.vlgmr.msrb.gmra.mxu2 %vm243_vm9, %v1329_v19  ;;  %v5375_v17 = vld [vmem:[#allocation13 + $0x48] sm:$0xff] }
 0x380   :  { %1605 = vmatpush.bf16.msrb.mxu2 %v6232_v42  ;;  %v1314_v42 = vmul.f32 %v5616_v32, %v1298_v22 }
 0x381   :  { %v1161_v23 = vsel %vm1160_vm1, %v5614_v5, %v1157_v21 }
 0x382   :  { %v1166_v24 = vsel %vm1163_vm2, %v1165_v13, %v1161_v23  ;;  %v1315_v41 = vsub.f32 1.0, %v1314_v42 }
 0x383   :  { %v1181_v28 = vmul.f32 %v5606_v43, %v1166_v24  ;;  %v1182_v43 = vmul.f32 %v6267_v30, %v1180_v40  ;;  %v969_v30 = vadd.f32 %v6213_v36, %v427_v26 }
 0x384   :  { %v1316_v46 = vmul.f32 %v5616_v32, %v1315_v41 }
 0x385   :  { %v1183_v29 = vpack.c.bf16 %v1181_v28, %v1181_v28  ;;  %v1184_v47 = vpack.c.bf16 %v1182_v43, %v1182_v43 }
 0x386   :  { %v1317_v49 = vadd.f32 %v5616_v32, %v1316_v46 }
 0x387   :  { %4478 = vmatmul.msk.bf16.vlgmr.msrb.gmra.mxu3 %vm243_vm9, %v1183_v29 }
 0x388   :  { %1367 = vmatpush.bf16.msrb.mxu3 %v6239_v48  ;;  %v1324_v48 = vand.u32 2147483648, %v1298_v22  ;;  %v1321_v51 = vsel %vm1320_vm10, %v5616_v32, %v1317_v49  ;;  %v6027_v22 = vmov 0.0  }
 0x389   :  { %v6306_v13 = vsel %vm251_vm12, 1.0, %v6027_v22 }
 0x38a   :  { %v1325_v52 = vor.u32 1.1754944e-38, %v1324_v48 }
 0x38c   :  { %v1326_v53 = vsel %vm1323_vm11, %v1325_v52, %v1321_v51 }
 0x38d   :  { %v1328_v54 = vmul.f32 %v6272_v44, %v1326_v53 }
 0x38f   :  { %1524 = vmatmul.bf16.vlgmr.msra.gmra.mxu2 %v6209_v34  ;;  %v1330_v56 = vpack.c.bf16 %v1328_v54, %v1328_v54 }
 0x390   :  { %1745 = vmatpush.bf16.xpose.msra.mxu2 %v1736_v39  ;;  %v1714_v39 = vrot.slane %v6209_v34, 4 }
 0x397   :  { %4479 = vmatmul.msk.bf16.vlgmr.msra.gmra.mxu3 %vm243_vm9, %v1184_v47 }
 0x398   :  { %1536 = vmatpush.bf16.xpose.msra.mxu3 %v6225_v11  ;;  %v983_v11 = vadd.f32 %v6215_v37, %v428_v27  ;;  %v244_v27 = vsel %vm243_vm9, %v6247_v61, -inf  ;;  %v5381_v37 = vld [vmem:[#allocation13 + $0x78] sm:$0xff]  ;;  %v5374_v61 = vld [vmem:[#allocation13 + $0x40] sm:$0xff] }
 0x399   :  { %1440 = vmatpush.bf16.msrb.mxu0 %v5381_v37  ;;  %v5389_v37 = vld [vmem:[#allocation13 + $0xb8] sm:$0xff] }
 0x39a   :  { %v6297_v58 = vpack.c.bf16 %v983_v11, %v969_v30 }
 0x3a7   :  { %4481 = vmatmul.msk.bf16.vlgmr.msrb.gmra.mxu3 %vm243_vm9, %v1330_v56 }
 0x3a8   :  { %1624 = vmatpush.bf16.msrb.mxu3 %v6242_v55 }
 0x3b7   :  { %1537 = vmatmul.bf16.vlgmr.msra.gmra.mxu3 %v6297_v58 }
 0x3b8   :  { %1816 = vmatpush.bf16.msra.mxu3 %v6236_v45  ;;  %v5380_v45 = vld [vmem:[#allocation13 + $0x70] sm:$0xff] }
 0x3b9   :  { %1441 = vmatpush.bf16.msrb.mxu0 %v5380_v45 }
 0x3bd   :  { %1442 = vmatpush.bf16.msrb.mxu0 %v5379_v8 }
 0x3c1   :  { %1443 = vmatpush.bf16.msrb.mxu0 %v5378_v3  ;;  %v5388_v3 = vld [vmem:[#allocation13 + $0xb0] sm:$0xff] }
 0x3c5   :  { %1444 = vmatpush.bf16.msrb.mxu0 %v5377_v12 }
 0x3c9   :  { %1445 = vmatpush.bf16.msrb.mxu0 %v5376_v16  ;;  %v5387_v16 = vld [vmem:[#allocation13 + $0xa8] sm:$0xff] }
 0x3cd   :  { %1446 = vmatpush.bf16.msrb.mxu0 %v5375_v17 }
 0x3d1   :  { %1447 = vmatpush.bf16.msrb.mxu0 %v5374_v61 }
 0x3d5   :  { %1697 = vmatpush.bf16.msra.mxu0 %v5389_v37  ;;  %v5393_v37 = vld [vmem:[#allocation13 + $0xd8] sm:$0xff] }
 0x3d9   :  { %1698 = vmatpush.bf16.msra.mxu0 %v5388_v3 }
 0x3dd   :  { %1699 = vmatpush.bf16.msra.mxu0 %v5387_v16 }
 0x3e1   :  { %1700 = vmatpush.bf16.msra.mxu0 %v5386_v20 }
 0x402   :  { %v1348_v44 = vpop.f32.mrf.mxu2 }
 0x40a   :  { %v1201_v59 = vpop.f32.mrf.mxu3  ;;  %v1350_v60 = vpop.f32.mrf.mxu2 }
 0x412   :  { %v1203_v4 = vpop.f32.mrf.mxu3  ;;  %v1525_v5 = vpop.f32.mrf.mxu2 }
 0x413   :  { %v1526_v55 = vadd.f32 %v1525_v5, %v6251_v63 }
 0x415   :  { %v1542_v6 = vsel %vm243_vm9, %v1526_v55, -inf }
 0x416   :  { %1543 = vmax.xlane.f32.xlu2 %v1542_v6  ;;  %v1733_v6 = vrot.slane %v6297_v58, 4 }
 0x41a   :  { %v1220_v26 = vpop.f32.mrf.mxu3  ;;  %v1527_v1 = vpop.f32.mrf.mxu2 }
 0x41b   :  { %v1225_v28 = vmul.f32 %v6306_v13, %v1220_v26 }
 0x41e   :  { %245 = vmax.xlane.f32.xlu2 %v244_v27 }
 0x422   :  { %v1222_v36 = vpop.f32.mrf.mxu3 }
 0x42a   :  { %v1369_v9 = vpop.f32.mrf.mxu3 }
 0x42b   :  { %v1374_v29 = vmul.f32 %v6306_v13, %v1369_v9 }
 0x432   :  { %v1371_v14 = vpop.f32.mrf.mxu3 }
 0x43a   :  { %v1538_v15 = vpop.f32.mrf.mxu3 }
 0x43b   :  { %v1539_v42 = vadd.f32 %v1538_v15, %v6259_v7 }
 0x43d   :  { %v1545_v38 = vsel %vm243_vm9, %v1539_v42, -inf }
 0x442   :  { %v1540_v0 = vpop.f32.mrf.mxu3 }
 0x489   :  { %v1544_v18 = vpop.xlane.xlu2 %1543 }
 0x48a   :  { %v1548_v19 = vsub.f32 %v1526_v55, %v1544_v18 }
 0x48c   :  { %v1550_v21 = vmul.f32 1.442695, %v1548_v19 }
 0x48e   :  { %5617 = vpow2.f32 %v1550_v21 }
 0x491   :  { %v246_v23 = vpop.xlane.xlu2 %245 }
 0x492   :  { %vm250_vm13 = vcmp.gt.f32.partialorder %v246_v23, 0.0 }
 0x493   :  { %v6309_v24 = vsel %vm250_vm13, 1.0, %v6027_v22 }
 0x494   :  { %v5618_v25 = vpop.eup %5617  ;;  %v1224_v31 = vmul.f32 %v6309_v24, %v1201_v59  ;;  %v1373_v32 = vmul.f32 %v6309_v24, %v1348_v44 }
 0x495   :  { %v1554_v33 = vsel %vm243_vm9, %v5618_v25, 0.0 }
 0x496   :  { %1555 = vadd.xlane.f32.xlu1 %v1554_v33  ;;  %v1375_v10 = vpack.c.bf16 %v1374_v29, %v1373_v32  ;;  %v1226_v35 = vpack.c.bf16 %v1225_v28, %v1224_v31 }
 0x498   :  { %1448 = vmatmul.bf16.vlgmr.msrb.gmra.mxu0 %v1375_v10  ;;  %1510 = vmatmul.bf16.vlgmr.msrb.gmra.mxu1 %v1226_v35  ;;  %v5385_v10 = vld [vmem:[#allocation13 + $0x98] sm:$0xff]  ;;  %v5384_v35 = vld [vmem:[#allocation13 + $0x90] sm:$0xff] }
 0x499   :  { %1837 = vmatpush.bf16.msrb.mxu1 %v6245_v57  ;;  %1701 = vmatpush.bf16.msra.mxu0 %v5385_v10 }
 0x49d   :  { %1702 = vmatpush.bf16.msra.mxu0 %v5384_v35 }
 0x49e   :  { %1546 = vmax.xlane.f32.xlu1 %v1545_v38  ;;  %v5382_v38 = vld [vmem:[#allocation13 + $0x80] sm:$0xff] }
 0x4a8   :  { %1727 = vmatmul.bf16.vlgmr.msra.gmra.mxu1 %v1714_v39 }
 0x509   :  { %v1556_v40 = vpop.xlane.xlu1 %1555 }
 0x50a   :  { %5619 = vrcp.f32 %v1556_v40  ;;  %v1571_v48 = vand.u32 2147483648, %v1556_v40  ;;  %v1569_v52 = vand.u32 2147483647, %v1556_v40  ;;  %vm1565_vm15 = vweird.f32 %v1556_v40 }
 0x50c   :  { %v1572_v34 = vor.u32 1.1754944e-38, %v1571_v48  ;;  %vm1570_vm1 = vcmp.eq.f32.partialorder %v1569_v52, 8.507059e+37 }
 0x510   :  { %v5620_v41 = vpop.eup %5619 }
 0x511   :  { %v1561_v43 = vmul.f32 %v5620_v41, %v1556_v40  ;;  %v1547_v46 = vpop.xlane.xlu1 %1546  ;;  %vm1566_vm14 = vweird.f32 %v5620_v41 }
 0x512   :  { %v1549_v47 = vsub.f32 %v1539_v42, %v1547_v46  ;;  %vm1567_vm0 = vmor %vm1565_vm15, %vm1566_vm14  ;;  %v5383_v42 = vld [vmem:[#allocation13 + $0x88] sm:$0xff] }
 0x513   :  { %v1562_v49 = vsub.f32 1.0, %v1561_v43  ;;  %1703 = vmatpush.bf16.msra.mxu0 %v5383_v42 }
 0x514   :  { %v1552_v50 = vmul.f32 1.442695, %v1549_v47 }
 0x515   :  { %v1563_v51 = vmul.f32 %v5620_v41, %v1562_v49  ;;  %v6320_v53 = vpop.f32.mrf.mxu1 }
 0x516   :  { %5621 = vpow2.f32 %v1552_v50 }
 0x517   :  { %v1564_v57 = vadd.f32 %v5620_v41, %v1563_v51  ;;  %1704 = vmatpush.bf16.msra.mxu0 %v5382_v38 }
 0x519   :  { %v1568_v54 = vsel %vm1567_vm0, %v5620_v41, %v1564_v57 }
 0x51a   :  { %v1573_v56 = vsel %vm1570_vm1, %v1572_v34, %v1568_v54 }
 0x51b   :  { %v1588_v30 = vmul.f32 %v5618_v25, %v1573_v56 }
 0x51c   :  { %v5622_v11 = vpop.eup %5621 }
 0x51d   :  { %v6322_v44 = vpop.f32.mrf.mxu1  ;;  %v1557_v59 = vsel %vm243_vm9, %v5622_v11, 0.0  ;;  %v1590_v60 = vpack.c.bf16 %v1588_v30, %v1588_v30 }
 0x51e   :  { %1558 = vadd.xlane.f32.xlu1 %v1557_v59 }
 0x51f   :  { %4546 = vmatmul.msk.bf16.vlgmr.msrb.gmra.mxu2 %vm243_vm9, %v1590_v60 }
 0x525   :  { %v1728_v4 = vpop.f32.mrf.mxu1 }
 0x526   :  { %v1729_v5 = vadd.f32 %v1728_v4, %v6251_v63 }
 0x528   :  { %v1751_v55 = vsel %vm243_vm9, %v1729_v5, -inf }
 0x529   :  { %1752 = vmax.xlane.f32.xlu2 %v1751_v55 }
 0x52d   :  { %v1730_v26 = vpop.f32.mrf.mxu1 }
 0x52e   :  { %v5396_v26 = vld [vmem:[#allocation13 + $0xf0] sm:$0xff] }
 0x52f   :  { %1746 = vmatmul.bf16.vlgmr.msra.gmra.mxu2 %v1733_v6  ;;  %v5397_v6 = vld [vmem:[#allocation13 + $0xf8] sm:$0xff] }
 0x530   :  { %1910 = vmatpush.bf16.msrb.mxu2 %v5397_v6 }
 0x534   :  { %1911 = vmatpush.bf16.msrb.mxu2 %v5396_v26 }
 0x591   :  { %v1559_v1 = vpop.xlane.xlu1 %1558 }
 0x592   :  { %5623 = vrcp.f32 %v1559_v1  ;;  %v1585_v8 = vand.u32 2147483648, %v1559_v1  ;;  %v1583_v63 = vand.u32 2147483647, %v1559_v1  ;;  %vm1579_vm3 = vweird.f32 %v1559_v1 }
 0x594   :  { %v1586_v58 = vor.u32 1.1754944e-38, %v1585_v8  ;;  %vm1584_vm5 = vcmp.eq.f32.partialorder %v1583_v63, 8.507059e+37 }
 0x598   :  { %v5624_v27 = vpop.eup %5623 }
 0x599   :  { %v1575_v36 = vmul.f32 %v5624_v27, %v1559_v1  ;;  %vm1580_vm2 = vweird.f32 %v5624_v27  ;;  %v5395_v1 = vld [vmem:[#allocation13 + $0xe8] sm:$0xff] }
 0x59a   :  { %vm1581_vm4 = vmor %vm1579_vm3, %vm1580_vm2  ;;  %1912 = vmatpush.bf16.msrb.mxu2 %v5395_v1 }
 0x59b   :  { %v1576_v45 = vsub.f32 1.0, %v1575_v36  ;;  %v5394_v36 = vld [vmem:[#allocation13 + $0xe0] sm:$0xff] }
 0x59c   :  { %v1753_v9 = vpop.xlane.xlu2 %1752 }
 0x59d   :  { %v1577_v12 = vmul.f32 %v5624_v27, %v1576_v45  ;;  %v1757_v14 = vsub.f32 %v1729_v5, %v1753_v9  ;;  %v5392_v9 = vld [vmem:[#allocation13 + $0xd0] sm:$0xff] }
 0x59e   :  { %1913 = vmatpush.bf16.msrb.mxu2 %v5394_v36 }
 0x59f   :  { %v1578_v15 = vadd.f32 %v5624_v27, %v1577_v12  ;;  %v1759_v0 = vmul.f32 1.442695, %v1757_v14 }
 0x5a1   :  { %v1582_v17 = vsel %vm1581_vm4, %v5624_v27, %v1578_v15  ;;  %5625 = vpow2.f32 %v1759_v0  ;;  %v5391_v0 = vld [vmem:[#allocation13 + $0xc8] sm:$0xff] }
 0x5a2   :  { %v1587_v61 = vsel %vm1584_vm5, %v1586_v58, %v1582_v17  ;;  %v1607_v18 = vpop.f32.mrf.mxu2  ;;  %1914 = vmatpush.bf16.msrb.mxu2 %v5393_v37  ;;  %vm2875_vm5 = vcmask 130048  }
 0x5a3   :  { %v1589_v19 = vmul.f32 %v5622_v11, %v1587_v61  ;;  %v1630_v52 = vmul.f32 %v6309_v24, %v1607_v18 }
 0x5a5   :  { %v1591_v21 = vpack.c.bf16 %v1589_v19, %v1589_v19 }
 0x5a6   :  { %1915 = vmatpush.bf16.msrb.mxu2 %v5392_v9  ;;  %v5418_v9 = vld [vmem:[#allocation14 + $0xa4] sm:$0xf] }
 0x5a7   :  { %v5626_v23 = vpop.eup %5625  ;;  %4547 = vmatmul.msk.bf16.vlgmr.msrb.gmra.mxu3 %vm243_vm9, %v1591_v21  ;;  %v5390_v21 = vld [vmem:[#allocation13 + $0xc0] sm:$0xff] }
 0x5a8   :  { %v1763_v25 = vsel %vm243_vm9, %v5626_v23, 0.0 }
 0x5a9   :  { %1764 = vadd.xlane.f32.xlu2 %v1763_v25 }
 0x5aa   :  { %v1609_v28 = vpop.f32.mrf.mxu2  ;;  %1916 = vmatpush.bf16.msrb.mxu2 %v5391_v0  ;;  %v5414_v0 = vld [vmem:[#allocation14 + $0x84] sm:$0xf] }
 0x5ae   :  { %1917 = vmatpush.bf16.msrb.mxu2 %v5390_v21  ;;  %v4738_v21 = vld [vmem:[#allocation14 + $0xf8] sm:$0xf0] }
 0x5b2   :  { %v1747_v29 = vpop.f32.mrf.mxu2 }
 0x5b3   :  { %v1748_v31 = vadd.f32 %v1747_v29, %v6259_v7 }
 0x5b5   :  { %v1754_v32 = vsel %vm243_vm9, %v1748_v31, -inf }
 0x5b6   :  { %1755 = vmax.xlane.f32.xlu0 %v1754_v32  ;;  %v1449_v32 = vpop.f32.mrf.mxu0 }
 0x5b7   :  { %v1512_v35 = vadd.f32 %v6320_v53, %v1449_v32  ;;  %v4728_v53 = vld [vmem:[#allocation14 + $0xe0] sm:$0xf]  ;;  %v4666_v32 = vld [vmem:[#allocation14 + $0x70] sm:$0xf0] }
 0x5ba   :  { %v1749_v33 = vpop.f32.mrf.mxu2 }
 0x5be   :  { %v1451_v33 = vpop.f32.mrf.mxu0 }
 0x61c   :  { %v1765_v39 = vpop.xlane.xlu2 %1764 }
 0x61d   :  { %5627 = vrcp.f32 %v1765_v39  ;;  %v1780_v46 = vand.u32 2147483648, %v1765_v39  ;;  %v1778_v7 = vand.u32 2147483647, %v1765_v39  ;;  %vm1774_vm7 = vweird.f32 %v1765_v39 }
 0x61f   :  { %v1781_v57 = vor.u32 1.1754944e-38, %v1780_v46  ;;  %vm1779_vm10 = vcmp.eq.f32.partialorder %v1778_v7, 8.507059e+37 }
 0x623   :  { %v5628_v40 = vpop.eup %5627 }
 0x624   :  { %v1770_v41 = vmul.f32 %v5628_v40, %v1765_v39  ;;  %vm1775_vm6 = vweird.f32 %v5628_v40 }
 0x625   :  { %vm1776_vm8 = vmor %vm1774_vm7, %vm1775_vm6 }
 0x626   :  { %v1771_v43 = vsub.f32 1.0, %v1770_v41  ;;  %v5673_v41 = vld [vmem:[#allocation2] sm:$0xff] }
 0x628   :  { %v1772_v47 = vmul.f32 %v5628_v40, %v1771_v43 }
 0x629   :  { %v1756_v49 = vpop.xlane.xlu0 %1755 }
 0x62a   :  { %v1773_v48 = vadd.f32 %v5628_v40, %v1772_v47  ;;  %v1758_v50 = vsub.f32 %v1748_v31, %v1756_v49  ;;  %v1626_v51 = vpop.f32.mrf.mxu3  ;;  %v1514_v47 = vadd.f32 %v6322_v44, %v1451_v33  ;;  %v5424_v44 = vld [vmem:[#allocation14 + $0xcc] sm:$0xf0]  ;;  %v4720_v33 = vld [vmem:[#allocation14 + $0xc8] sm:$0xf] }
 0x62b   :  { %v1631_v34 = vmul.f32 %v6306_v13, %v1626_v51 }
 0x62c   :  { %v1777_v54 = vsel %vm1776_vm8, %v5628_v40, %v1773_v48  ;;  %v1761_v56 = vmul.f32 1.442695, %v1758_v50  ;;  %v5588_v40 = vld [vmem:[#allocation10 + $0xc] ss:$0 sm:$0xff]  ;;  %v5674_v48 = vld [vmem:[#allocation2 + $0x8] sm:$0xff] }
 0x62d   :  { %v1782_v30 = vsel %vm1779_vm10, %v1781_v57, %v1777_v54  ;;  %v1632_v11 = vpack.c.bf16 %v1631_v34, %v1630_v52  ;;  %v5428_v52 = vld [vmem:[#allocation14 + $0xec] sm:$0xf0]  ;;  %v5426_v57 = vld [vmem:[#allocation14 + $0xe4] sm:$0xf]  ;;  %v4730_v54 = vld [vmem:[#allocation14 + $0xf0] sm:$0xf0] }
 0x62e   :  { %v1797_v59 = vmul.f32 %v5626_v23, %v1782_v30  ;;  %5629 = vpow2.f32 %v1761_v56  ;;  %v4729_v34 = vor.u32 %v5428_v52, %v4728_v53  ;;  %v4712_v56 = vld [vmem:[#allocation14 + $0xc0] sm:$0xf]  ;;  %v4733_v30 = vor.u32 %v5426_v57, %v4730_v54  ;;  %v5419_v53 = vld [vmem:[#allocation14 + $0xac] sm:$0xf]  ;;  %v4706_v52 = vld [vmem:[#allocation14 + $0xb8] sm:$0xf0] }
 0x62f   :  { %1705 = vmatmul.bf16.vlgmr.msra.gmra.mxu0 %v1632_v11  ;;  %v5422_v11 = vld [vmem:[#allocation14 + $0xc4] sm:$0xf]  ;;  %v4709_v57 = vor.u32 %v5419_v53, %v4706_v52  ;;  %v5404_v54 = vld [vmem:[#allocation14 + $0x2c] sm:$0xf0]  ;;  %v4624_v52 = vld [vmem:[#allocation14 + $0x8] sm:$0xf] }
 0x630   :  { %v1799_v60 = vpack.c.bf16 %v1797_v59, %v1797_v59  ;;  %v4714_v59 = vld [vmem:[#allocation14 + $0xd0] sm:$0xf0]  ;;  %2185 = vmatpush.bf16.msrb.mxu3 %v4729_v34  ;;  %2199 = vmatpush.bf16.msrb.mxu0 %v4733_v30  ;;  %v4632_v34 = vld [vmem:[#allocation14 + $0x20] sm:$0xf]  ;;  %v4914_v53 = vld [vmem:[#allocation16 + $0x160] sm:$0xf0] }
 0x631   :  { %v4634_v30 = vld [vmem:[#allocation14 + $0x30] sm:$0xf0] }
 0x632   :  { %v1628_v4 = vpop.f32.mrf.mxu3  ;;  %4580 = vmatmul.msk.bf16.vlgmr.msra.gmra.mxu3 %vm243_vm9, %v1799_v60  ;;  %v4713_v60 = vor.u32 %v5424_v44, %v4712_v56  ;;  %v5402_v56 = vld [vmem:[#allocation14 + $0x24] sm:$0xf]  ;;  %v4633_v44 = vor.u32 %v5404_v54, %v4632_v34  ;;  %v5401_v34 = vld [vmem:[#allocation14 + $0x14] sm:$0xf0]  ;;  %v5399_v54 = vld [vmem:[#allocation14 + $0xc] sm:$0xf] }
 0x633   :  { %v4717_v4 = vor.u32 %v5422_v11, %v4714_v59  ;;  %v4688_v11 = vld [vmem:[#allocation14 + $0x88] sm:$0xf]  ;;  %v5417_v59 = vld [vmem:[#allocation14 + $0x94] sm:$0xf0] }
 0x634   :  { %v5630_v5 = vpop.eup %5629  ;;  %2186 = vmatpush.bf16.msrb.mxu3 %v4713_v60  ;;  %v4637_v60 = vor.u32 %v5402_v56, %v4634_v30  ;;  %v4626_v56 = vld [vmem:[#allocation14 + $0x18] sm:$0xf0]  ;;  %v4625_v30 = vor.u32 %v5401_v34, %v4624_v52 }
 0x635   :  { %v1766_v55 = vsel %vm243_vm9, %v5630_v5, 0.0  ;;  %2200 = vmatpush.bf16.msrb.mxu0 %v4717_v4  ;;  %v4689_v4 = vor.u32 %v5417_v59, %v4688_v11  ;;  %v4629_v11 = vor.u32 %v5399_v54, %v4626_v56  ;;  %v4880_v59 = vld [vmem:[#allocation16 + $0x100] sm:$0xf]  ;;  %v5590_v34 = vld [vmem:[#allocation8 + $0x3] ss:$0 sm:$0xff] }
 0x636   :  { %1767 = vadd.xlane.f32.xlu0 %v1766_v55  ;;  %v4992_v56 = vld [vmem:[#allocation16 + $0x1d0] sm:$0xf] }
 0x6a9   :  { %v1768_v27 = vpop.xlane.xlu0 %1767 }
 0x6aa   :  { %5631 = vrcp.f32 %v1768_v27  ;;  %v1794_v12 = vand.u32 2147483648, %v1768_v27  ;;  %v1792_v14 = vand.u32 2147483647, %v1768_v27  ;;  %vm1788_vm12 = vweird.f32 %v1768_v27 }
 0x6ac   :  { %v1795_v16 = vor.u32 1.1754944e-38, %v1794_v12  ;;  %vm1793_vm14 = vcmp.eq.f32.partialorder %v1792_v14, 8.507059e+37  ;;  %v1706_v10 = vpop.f32.mrf.mxu0  ;;  %v4698_v12 = vld [vmem:[#allocation14 + $0xb0] sm:$0xf0]  ;;  %v4680_v14 = vld [vmem:[#allocation14 + $0x80] sm:$0xf] }
 0x6ad   :  { %v1711_v42 = vadd.f32 %v1706_v10, %v1512_v35  ;;  %v5425_v10 = vld [vmem:[#allocation14 + $0xd4] sm:$0xf0] }
 0x6b0   :  { %v5632_v45 = vpop.eup %5631 }
 0x6b1   :  { %v1784_v8 = vmul.f32 %v5632_v45, %v1768_v27  ;;  %vm1789_vm11 = vweird.f32 %v5632_v45 }
 0x6b2   :  { %vm1790_vm13 = vmor %vm1788_vm12, %vm1789_vm11 }
 0x6b3   :  { %v1785_v3 = vsub.f32 1.0, %v1784_v8  ;;  %v5420_v8 = vld [vmem:[#allocation14 + $0xac] sm:$0xf0] }
 0x6b4   :  { %v1708_v46 = vpop.f32.mrf.mxu0 }
 0x6b5   :  { %v1786_v63 = vmul.f32 %v5632_v45, %v1785_v3  ;;  %v1818_v15 = vpop.f32.mrf.mxu3 }
 0x6b6   :  { %v1843_v25 = vmul.f32 %v6309_v24, %v1818_v15  ;;  %v5416_v15 = vld [vmem:[#allocation14 + $0x8c] sm:$0xf0] }
 0x6b7   :  { %v1787_v58 = vadd.f32 %v5632_v45, %v1786_v63  ;;  %v4701_v63 = vor.u32 %v5418_v9, %v4698_v12  ;;  %v4672_v9 = vld [vmem:[#allocation14 + $0x68] sm:$0xf] }
 0x6b9   :  { %v1791_v17 = vsel %vm1790_vm13, %v5632_v45, %v1787_v58  ;;  %v4696_v45 = vld [vmem:[#allocation14 + $0xa0] sm:$0xf]  ;;  %2201 = vmatpush.bf16.msrb.mxu0 %v4701_v63  ;;  %v4681_v58 = vor.u32 %v5416_v15, %v4680_v14  ;;  %v5411_v14 = vld [vmem:[#allocation14 + $0x6c] sm:$0xf]  ;;  %v4674_v15 = vld [vmem:[#allocation14 + $0x78] sm:$0xf0] }
 0x6ba   :  { %v1796_v61 = vsel %vm1793_vm14, %v1795_v16, %v1791_v17  ;;  %v4697_v3 = vor.u32 %v5420_v8, %v4696_v45  ;;  %v4682_v16 = vld [vmem:[#allocation14 + $0x90] sm:$0xf0]  ;;  %v4736_v17 = vld [vmem:[#allocation14 + $0xe8] sm:$0xf] }
 0x6bb   :  { %v1798_v18 = vmul.f32 %v5630_v5, %v1796_v61  ;;  %v5429_v61 = vld [vmem:[#allocation14 + $0xf4] sm:$0xf0]  ;;  %v4618_v8 = vld [vmem:[#allocation14 + $0x10] sm:$0xf0] }
 0x6bc   :  { %2187 = vmatpush.bf16.msrb.mxu3 %v4697_v3  ;;  %v5413_v3 = vld [vmem:[#allocation14 + $0x74] sm:$0xf0] }
 0x6bd   :  { %v1820_v19 = vpop.f32.mrf.mxu3  ;;  %v1800_v20 = vpack.c.bf16 %v1798_v18, %v1798_v18  ;;  %v4685_v18 = vor.u32 %v5414_v0, %v4682_v16  ;;  %v4673_v63 = vor.u32 %v5413_v3, %v4672_v9  ;;  %v4976_v0 = vld [vmem:[#allocation16 + $0x1c0] sm:$0xf]  ;;  %v4850_v9 = vld [vmem:[#allocation16 + $0xe0] sm:$0xf0] }
 0x6be   :  { %v4737_v19 = vor.u32 %v5429_v61, %v4736_v17  ;;  %v5492_v16 = vld [vmem:[#allocation16 + $0x1dc] sm:$0xf0]  ;;  %v5488_v17 = vld [vmem:[#allocation16 + $0x1c4] sm:$0xf] }
 0x6bf   :  { %4581 = vmatmul.msk.bf16.vlgmr.msrb.gmra.mxu1 %vm243_vm9, %v1800_v20  ;;  %v5427_v20 = vld [vmem:[#allocation14 + $0xec] sm:$0xf]  ;;  %2202 = vmatpush.bf16.msrb.mxu0 %v4685_v18  ;;  %v4978_v61 = vld [vmem:[#allocation16 + $0x1e0] sm:$0xf0]  ;;  %v4977_v18 = vor.u32 %v5492_v16, %v4976_v0  ;;  %v4816_v3 = vld [vmem:[#allocation16 + $0x80] sm:$0xf] }
 0x6c0   :  { %2188 = vmatpush.bf16.msrb.mxu3 %v4681_v58  ;;  %2213 = vmatpush.bf16.msra.mxu1 %v4737_v19  ;;  %v4677_v58 = vor.u32 %v5411_v14, %v4674_v15  ;;  %v4981_v19 = vor.u32 %v5488_v17, %v4978_v61  ;;  %v5452_v14 = vld [vmem:[#allocation16 + $0x9c] sm:$0xf0]  ;;  %v5448_v15 = vld [vmem:[#allocation16 + $0x84] sm:$0xf] }
 0x6c1   :  { %v4818_v0 = vld [vmem:[#allocation16 + $0xa0] sm:$0xf0]  ;;  %v4817_v61 = vor.u32 %v5452_v14, %v4816_v3  ;;  %v4930_v3 = vld [vmem:[#allocation16 + $0x170] sm:$0xf0] }
 0x73c   :  { %v1839_v23 = vpop.f32.mrf.mxu1 }
 0x73d   :  { %v1844_v28 = vmul.f32 %v6306_v13, %v1839_v23  ;;  %v1712_v13 = vadd.f32 %v1708_v46, %v1514_v47  ;;  %v4741_v23 = vor.u32 %v5427_v20, %v4738_v21  ;;  %v5406_v46 = vld [vmem:[#allocation14 + $0x44] sm:$0xf]  ;;  %v4656_v20 = vld [vmem:[#allocation14 + $0x48] sm:$0xf]  ;;  %v5409_v21 = vld [vmem:[#allocation14 + $0x54] sm:$0xf0] }
 0x73f   :  { %v1845_v29 = vpack.c.bf16 %v1844_v28, %v1843_v25  ;;  %v4664_v25 = vld [vmem:[#allocation14 + $0x60] sm:$0xf]  ;;  %v5412_v28 = vld [vmem:[#allocation14 + $0x6c] sm:$0xf0]  ;;  %2227 = vmatpush.bf16.msra.mxu2 %v4741_v23  ;;  %v5407_v23 = vld [vmem:[#allocation14 + $0x4c] sm:$0xf] }
 0x741   :  { %1918 = vmatmul.bf16.vlgmr.msrb.gmra.mxu2 %v1845_v29  ;;  %v5410_v29 = vld [vmem:[#allocation14 + $0x64] sm:$0xf] }
 0x742   :  { %v4669_v35 = vor.u32 %v5410_v29, %v4666_v32  ;;  %v4944_v29 = vld [vmem:[#allocation16 + $0x180] sm:$0xf] }
 0x744   :  { %v1841_v31 = vpop.f32.mrf.mxu1  ;;  %2203 = vmatpush.bf16.msrb.mxu0 %v4669_v35  ;;  %v4946_v35 = vld [vmem:[#allocation16 + $0x1a0] sm:$0xf0] }
 0x745   :  { %v4665_v31 = vor.u32 %v5412_v28, %v4664_v25  ;;  %v4657_v25 = vor.u32 %v5409_v21, %v4656_v20  ;;  %v4658_v28 = vld [vmem:[#allocation14 + $0x58] sm:$0xf0]  ;;  %v5444_v20 = vld [vmem:[#allocation16 + $0x5c] sm:$0xf0]  ;;  %v5440_v21 = vld [vmem:[#allocation16 + $0x44] sm:$0xf] }
 0x746   :  { %v4661_v32 = vor.u32 %v5407_v23, %v4658_v28  ;;  %v4786_v23 = vld [vmem:[#allocation16 + $0x60] sm:$0xf0] }
 0x747   :  { %2189 = vmatpush.bf16.msrb.mxu3 %v4665_v31  ;;  %v5484_v31 = vld [vmem:[#allocation16 + $0x19c] sm:$0xf0] }
 0x7c4   :  { %v1919_v38 = vpop.f32.mrf.mxu2 }
 0x7c5   :  { %v1924_v39 = vadd.f32 %v1919_v38, %v1711_v42  ;;  %v4721_v42 = vor.u32 %v5425_v10, %v4720_v33  ;;  %v5423_v38 = vld [vmem:[#allocation14 + $0xcc] sm:$0xf]  ;;  %v4945_v33 = vor.u32 %v5484_v31, %v4944_v29  ;;  %v5480_v10 = vld [vmem:[#allocation16 + $0x184] sm:$0xf]  ;;  %v4789_v31 = vor.u32 %v5440_v21, %v4786_v23  ;;  %v6364_v21 = vld [vmem:[#allocation5] sm:$0xff] }
 0x7c7   :  { %v1926_v43 = vadd.f32 %v5673_v41, %v1924_v39  ;;  %v4722_v39 = vld [vmem:[#allocation14 + $0xd8] sm:$0xf0]  ;;  %2214 = vmatpush.bf16.msra.mxu1 %v4721_v42  ;;  %v4648_v41 = vld [vmem:[#allocation14 + $0x40] sm:$0xf]  ;;  %v4949_v42 = vor.u32 %v5480_v10, %v4946_v35  ;;  %v5432_v10 = vld [vmem:[#allocation16 + $0x4] sm:$0xf] }
 0x7c8   :  { %v4754_v35 = vld [vmem:[#allocation16 + $0x20] sm:$0xf0] }
 0x7c9   :  { %v6342_v24 = vadd.f32 %v5588_v40, %v1926_v43  ;;  %v5408_v43 = vld [vmem:[#allocation14 + $0x4c] sm:$0xf0] }
 0x7ca   :  { %v4649_v47 = vor.u32 %v5408_v43, %v4648_v41 }
 0x7cb   :  { %1936 = vadd.xlane.f32.xlu1 %v6342_v24 }
 0x7cc   :  { %v1921_v7 = vpop.f32.mrf.mxu2  ;;  %2190 = vmatpush.bf16.msrb.mxu3 %v4649_v47  ;;  %v4912_v47 = vld [vmem:[#allocation16 + $0x140] sm:$0xf] }
 0x7cd   :  { %v1925_v49 = vadd.f32 %v1921_v7, %v1712_v13  ;;  %v4650_v13 = vld [vmem:[#allocation14 + $0x50] sm:$0xf0]  ;;  %v4704_v7 = vld [vmem:[#allocation14 + $0xa8] sm:$0xf] }
 0x7cf   :  { %v1927_v50 = vadd.f32 %v5674_v48, %v1925_v49  ;;  %v5421_v49 = vld [vmem:[#allocation14 + $0xb4] sm:$0xf0]  ;;  %v4653_v48 = vor.u32 %v5406_v46, %v4650_v13  ;;  %v4642_v46 = vld [vmem:[#allocation14 + $0x38] sm:$0xf0]  ;;  %v5476_v13 = vld [vmem:[#allocation16 + $0x15c] sm:$0xf0] }
 0x7d0   :  { %2191 = vmatpush.bf16.msrb.mxu3 %v4633_v44 }
 0x7d1   :  { %v6345_v51 = vadd.f32 %v5588_v40, %v1927_v50  ;;  %v4725_v40 = vor.u32 %v5423_v38, %v4722_v39  ;;  %v4705_v50 = vor.u32 %v5421_v49, %v4704_v7  ;;  %2204 = vmatpush.bf16.msrb.mxu0 %v4653_v48  ;;  %v4640_v38 = vld [vmem:[#allocation14 + $0x28] sm:$0xf]  ;;  %v5405_v39 = vld [vmem:[#allocation14 + $0x34] sm:$0xf0]  ;;  %v4913_v48 = vor.u32 %v5476_v13, %v4912_v47 }
 0x7d2   :  { %v4641_v43 = vor.u32 %v5405_v39, %v4640_v38 }
 0x7d3   :  { %1938 = vadd.xlane.f32.xlu2 %v6345_v51  ;;  %2228 = vmatpush.bf16.msra.mxu2 %v4725_v40  ;;  %v5403_v40 = vld [vmem:[#allocation14 + $0x2c] sm:$0xf] }
 0x7d4   :  { %2215 = vmatpush.bf16.msra.mxu1 %v4705_v50  ;;  %v4645_v49 = vor.u32 %v5403_v40, %v4642_v46  ;;  %v5472_v50 = vld [vmem:[#allocation16 + $0x144] sm:$0xf] }
 0x7d5   :  { %2205 = vmatpush.bf16.msrb.mxu0 %v4637_v60  ;;  %v5468_v60 = vld [vmem:[#allocation16 + $0x11c] sm:$0xf0] }
 0x7d7   :  { %2229 = vmatpush.bf16.msra.mxu2 %v4709_v57  ;;  %v4917_v57 = vor.u32 %v5472_v50, %v4914_v53 }
 0x7d8   :  { %2216 = vmatpush.bf16.msra.mxu1 %v4689_v4  ;;  %v4881_v4 = vor.u32 %v5468_v60, %v4880_v59 }
 0x7dc   :  { %2217 = vmatpush.bf16.msra.mxu1 %v4673_v63 }
 0x7e0   :  { %2218 = vmatpush.bf16.msra.mxu1 %v4657_v25 }
 0x7e4   :  { %2219 = vmatpush.bf16.msra.mxu1 %v4641_v43  ;;  %v4757_v43 = vor.u32 %v5432_v10, %v4754_v35  ;;  %v4800_v10 = vld [vmem:[#allocation16 + $0x50] sm:$0xf] }
 0x7e8   :  { %2220 = vmatpush.bf16.msra.mxu1 %v4625_v30  ;;  %v5490_v30 = vld [vmem:[#allocation16 + $0x1d4] sm:$0xf] }
 0x83e   :  { %v1937_v5 = vpop.xlane.xlu1 %1936 }
 0x83f   :  { %v1940_v55 = vmul.f32 %v1937_v5, %v6169_v2  ;;  %v5415_v5 = vld [vmem:[#allocation14 + $0x8c] sm:$0xf] }
 0x841   :  { %v6350_v6 = vsub.f32 %v6342_v24, %v1940_v55  ;;  %v4690_v55 = vld [vmem:[#allocation14 + $0x98] sm:$0xf0] }
 0x843   :  { %v1944_v26 = vmul.f32 %v6350_v6, %v6350_v6 }
 0x845   :  { %1946 = vadd.xlane.f32.xlu0 %v1944_v26  ;;  %v4693_v26 = vor.u32 %v5415_v5, %v4690_v55  ;;  %v5464_v5 = vld [vmem:[#allocation16 + $0x104] sm:$0xf] }
 0x846   :  { %v1939_v1 = vpop.xlane.xlu2 %1938  ;;  %v4882_v55 = vld [vmem:[#allocation16 + $0x120] sm:$0xf0] }
 0x847   :  { %v1941_v27 = vmul.f32 %v1939_v1, %v6169_v2  ;;  %v4616_v1 = vld [vmem:[#allocation14] sm:$0xf]  ;;  %2230 = vmatpush.bf16.msra.mxu2 %v4693_v26  ;;  %v4885_v26 = vor.u32 %v5464_v5, %v4882_v55  ;;  %v4960_v55 = vld [vmem:[#allocation16 + $0x190] sm:$0xf] }
 0x849   :  { %v6356_v36 = vsub.f32 %v6345_v51, %v1941_v27  ;;  %v5400_v27 = vld [vmem:[#allocation14 + $0xc] sm:$0xf0] }
 0x84a   :  { %v4617_v45 = vor.u32 %v5400_v27, %v4616_v1  ;;  %v4848_v1 = vld [vmem:[#allocation16 + $0xc0] sm:$0xf] }
 0x84b   :  { %v1945_v37 = vmul.f32 %v6356_v36, %v6356_v36  ;;  %2231 = vmatpush.bf16.msra.mxu2 %v4677_v58  ;;  %v5460_v27 = vld [vmem:[#allocation16 + $0xdc] sm:$0xf0] }
 0x84c   :  { %2192 = vmatpush.bf16.msrb.mxu3 %v4617_v45 }
 0x84d   :  { %1948 = vadd.xlane.f32.xlu1 %v1945_v37  ;;  %v5398_v37 = vld [vmem:[#allocation14 + $0x4] sm:$0xf] }
 0x84e   :  { %v4621_v12 = vor.u32 %v5398_v37, %v4618_v8  ;;  %v5456_v37 = vld [vmem:[#allocation16 + $0xc4] sm:$0xf]  ;;  %v4849_v8 = vor.u32 %v5460_v27, %v4848_v1  ;;  %v5482_v1 = vld [vmem:[#allocation16 + $0x194] sm:$0xf] }
 0x84f   :  { %2232 = vmatpush.bf16.msra.mxu2 %v4661_v32  ;;  %v4853_v63 = vor.u32 %v5456_v37, %v4850_v9  ;;  %v4752_v32 = vld [vmem:[#allocation16] sm:$0xf]  ;;  %v4962_v27 = vld [vmem:[#allocation16 + $0x1b0] sm:$0xf0]  ;;  %v4928_v37 = vld [vmem:[#allocation16 + $0x150] sm:$0xf] }
 0x850   :  { %2206 = vmatpush.bf16.msrb.mxu0 %v4621_v12  ;;  %2659 = vmatpush.bf16.msra.mxu3 %v4977_v18  ;;  %v4821_v18 = vor.u32 %v5448_v15, %v4818_v0  ;;  %v5474_v9 = vld [vmem:[#allocation16 + $0x154] sm:$0xf]  ;;  %v5470_v15 = vld [vmem:[#allocation16 + $0x12c] sm:$0xf0] }
 0x851   :  { %v4933_v14 = vor.u32 %v5474_v9, %v4930_v3  ;;  %v5466_v0 = vld [vmem:[#allocation16 + $0x114] sm:$0xf] }
 0x853   :  { %2233 = vmatpush.bf16.msra.mxu2 %v4645_v49 }
 0x854   :  { %2678 = vmatpush.bf16.msra.mxu0 %v4981_v19  ;;  %2660 = vmatpush.bf16.msra.mxu3 %v4945_v33  ;;  %v4784_v19 = vld [vmem:[#allocation16 + $0x40] sm:$0xf] }
 0x855   :  { %v4785_v29 = vor.u32 %v5444_v20, %v4784_v19  ;;  %v5436_v33 = vld [vmem:[#allocation16 + $0x1c] sm:$0xf0]  ;;  %v5458_v19 = vld [vmem:[#allocation16 + $0xd4] sm:$0xf] }
 0x856   :  { %v4753_v39 = vor.u32 %v5436_v33, %v4752_v32  ;;  %v4866_v20 = vld [vmem:[#allocation16 + $0xf0] sm:$0xf0] }
 0x857   :  { %2234 = vmatpush.bf16.msra.mxu2 %v4629_v11  ;;  %v4994_v11 = vld [vmem:[#allocation16 + $0x1f0] sm:$0xf0] }
 0x858   :  { %2679 = vmatpush.bf16.msra.mxu0 %v4949_v42  ;;  %2661 = vmatpush.bf16.msra.mxu3 %v4913_v48  ;;  %v5589_v48 = vld [vmem:[#allocation8 + $0x2] ss:$0 sm:$0xff]  ;;  %v4834_v32 = vld [vmem:[#allocation16 + $0xb0] sm:$0xf0] }
 0x85c   :  { %2680 = vmatpush.bf16.msra.mxu0 %v4917_v57  ;;  %2662 = vmatpush.bf16.msra.mxu3 %v4881_v4 }
 0x860   :  { %2681 = vmatpush.bf16.msra.mxu0 %v4885_v26  ;;  %2663 = vmatpush.bf16.msra.mxu3 %v4849_v8  ;;  %v5486_v26 = vld [vmem:[#allocation16 + $0x1ac] sm:$0xf0] }
 0x861   :  { %v5478_v8 = vld [vmem:[#allocation16 + $0x16c] sm:$0xf0] }
 0x864   :  { %2682 = vmatpush.bf16.msra.mxu0 %v4853_v63  ;;  %2664 = vmatpush.bf16.msra.mxu3 %v4817_v61  ;;  %v4896_v63 = vld [vmem:[#allocation16 + $0x110] sm:$0xf] }
 0x868   :  { %2683 = vmatpush.bf16.msra.mxu0 %v4821_v18  ;;  %2665 = vmatpush.bf16.msra.mxu3 %v4785_v29  ;;  %v5462_v18 = vld [vmem:[#allocation16 + $0xec] sm:$0xf0] }
 0x869   :  { %v5454_v29 = vld [vmem:[#allocation16 + $0xac] sm:$0xf0] }
 0x86c   :  { %2684 = vmatpush.bf16.msra.mxu0 %v4789_v31  ;;  %2666 = vmatpush.bf16.msra.mxu3 %v4753_v39  ;;  %v5450_v31 = vld [vmem:[#allocation16 + $0x94] sm:$0xf] }
 0x86d   :  { %v4837_v35 = vor.u32 %v5450_v31, %v4834_v32  ;;  %v4802_v39 = vld [vmem:[#allocation16 + $0x70] sm:$0xf0] }
 0x870   :  { %2685 = vmatpush.bf16.msra.mxu0 %v4757_v43 }
 0x8b8   :  { %v1947_v41 = vpop.xlane.xlu0 %1946 }
 0x8b9   :  { %v1950_v7 = vmul.f32 %v1947_v41, %v6169_v2 }
 0x8bb   :  { %v1952_v44 = vadd.f32 1e-12, %v1950_v7 }
 0x8bd   :  { %5633 = vrsqrt.f32 %v1952_v44  ;;  %vm1960_vm15 = vweird.f32 %v1952_v44 }
 0x8c0   :  { %v1949_v45 = vpop.xlane.xlu1 %1948 }
 0x8c1   :  { %v1951_v12 = vmul.f32 %v1949_v45, %v6169_v2  ;;  %v4965_v45 = vor.u32 %v5482_v1, %v4962_v27 }
 0x8c3   :  { %v5634_v58 = vpop.eup %5633  ;;  %v1953_v16 = vadd.f32 1e-12, %v1951_v12  ;;  %v4929_v12 = vor.u32 %v5478_v8, %v4928_v37  ;;  %v5445_v37 = vld [vmem:[#allocation16 + $0x64] sm:$0xf0] }
 0x8c4   :  { %v1955_v17 = vmul.f32 %v5634_v58, %v1952_v44  ;;  %vm1961_vm9 = vweird.f32 %v5634_v58  ;;  %v5494_v44 = vld [vmem:[#allocation16 + $0x1ec] sm:$0xf0] }
 0x8c5   :  { %5635 = vrsqrt.f32 %v1953_v16  ;;  %vm1962_vm0 = vmor %vm1960_vm15, %vm1961_vm9  ;;  %vm1970_vm2 = vweird.f32 %v1953_v16  ;;  %v4993_v5 = vor.u32 %v5494_v44, %v4992_v56  ;;  %v4920_v56 = vld [vmem:[#allocation16 + $0x148] sm:$0xf] }
 0x8c6   :  { %v1956_v25 = vmul.f32 %v5634_v58, %v1955_v17  ;;  %v4864_v17 = vld [vmem:[#allocation16 + $0xd0] sm:$0xf]  ;;  %v5477_v44 = vld [vmem:[#allocation16 + $0x164] sm:$0xf0] }
 0x8c7   :  { %v4865_v23 = vor.u32 %v5462_v18, %v4864_v17  ;;  %v5495_v17 = vld [vmem:[#allocation16 + $0x1f4] sm:$0xf0] }
 0x8c8   :  { %v1957_v28 = vmul.f32 0.5, %v1956_v25  ;;  %v4832_v25 = vld [vmem:[#allocation16 + $0x90] sm:$0xf] }
 0x8c9   :  { %v4833_v33 = vor.u32 %v5454_v29, %v4832_v25  ;;  %v4968_v25 = vld [vmem:[#allocation16 + $0x198] sm:$0xf] }
 0x8ca   :  { %v1958_v42 = vsub.f32 1.5, %v1957_v28  ;;  %v4869_v28 = vor.u32 %v5458_v19, %v4866_v20 }
 0x8cb   :  { %v5636_v38 = vpop.eup %5635 }
 0x8cc   :  { %v1959_v40 = vmul.f32 %v5634_v58, %v1958_v42  ;;  %v1965_v41 = vmul.f32 %v5636_v38, %v1953_v16  ;;  %vm1971_vm1 = vweird.f32 %v5636_v38  ;;  %v4897_v16 = vor.u32 %v5470_v15, %v4896_v63  ;;  %v5446_v42 = vld [vmem:[#allocation16 + $0x6c] sm:$0xf0]  ;;  %v4760_v63 = vld [vmem:[#allocation16 + $0x8] sm:$0xf] }
 0x8cd   :  { %vm1972_vm3 = vmor %vm1970_vm2, %vm1971_vm1 }
 0x8ce   :  { %v1966_v46 = vmul.f32 %v5636_v38, %v1965_v41  ;;  %v1963_v47 = vsel %vm1962_vm0, %v5634_v58, %v1959_v40  ;;  %v4898_v58 = vld [vmem:[#allocation16 + $0x130] sm:$0xf0]  ;;  %v4801_v40 = vor.u32 %v5446_v42, %v4800_v10  ;;  %v4768_v41 = vld [vmem:[#allocation16 + $0x10] sm:$0xf]  ;;  %v4936_v10 = vld [vmem:[#allocation16 + $0x158] sm:$0xf] }
 0x8cf   :  { %v1974_v49 = vmul.f32 %v1963_v47, %v6350_v6  ;;  %v4997_v6 = vor.u32 %v5490_v30, %v4994_v11  ;;  %v4901_v61 = vor.u32 %v5466_v0, %v4898_v58  ;;  %v5434_v47 = vld [vmem:[#allocation16 + $0x14] sm:$0xf]  ;;  %v4921_v30 = vor.u32 %v5477_v44, %v4920_v56  ;;  %v4888_v11 = vld [vmem:[#allocation16 + $0x108] sm:$0xf]  ;;  %v4840_v44 = vld [vmem:[#allocation16 + $0x98] sm:$0xf] }
 0x8d0   :  { %v1967_v13 = vmul.f32 0.5, %v1966_v46  ;;  %v5438_v46 = vld [vmem:[#allocation16 + $0x2c] sm:$0xf0] }
 0x8d1   :  { %v1977_v57 = vmul.f32 %v5589_v48, %v1974_v49 }
 0x8d2   :  { %v1968_v7 = vsub.f32 1.5, %v1967_v13  ;;  %v4770_v13 = vld [vmem:[#allocation16 + $0x30] sm:$0xf0] }
 0x8d3   :  { %v1980_v59 = vadd.f32 %v5590_v34, %v1977_v57  ;;  %v4773_v49 = vor.u32 %v5434_v47, %v4770_v13  ;;  %v4952_v57 = vld [vmem:[#allocation16 + $0x188] sm:$0xf]  ;;  %v6393_v47 = vld [vmem:[#allocation10 + $0x11] sm:$0xff] }
 0x8d4   :  { %v1969_v50 = vmul.f32 %v5636_v38, %v1968_v7  ;;  %v4769_v7 = vor.u32 %v5438_v46, %v4768_v41  ;;  %v5471_v46 = vld [vmem:[#allocation16 + $0x134] sm:$0xf0] }
 0x8d6   :  { %v1973_v53 = vsel %vm1972_vm3, %v5636_v38, %v1969_v50  ;;  %v5442_v38 = vld [vmem:[#allocation16 + $0x54] sm:$0xf]  ;;  %v4984_v50 = vld [vmem:[#allocation16 + $0x1c8] sm:$0xf]  ;;  %vm256_vm3 = vcmask 122880  }
 0x8d7   :  { %v1975_v52 = vmul.f32 %v1973_v53, %v6356_v36  ;;  %v4961_v36 = vor.u32 %v5486_v26, %v4960_v55  ;;  %v4805_v43 = vor.u32 %v5442_v38, %v4802_v39  ;;  %v5493_v53 = vld [vmem:[#allocation16 + $0x1e4] sm:$0xf0] }
 0x8d8   :  { %v5453_v26 = vld [vmem:[#allocation16 + $0xa4] sm:$0xf0] }
 0x8d9   :  { %v1978_v54 = vmul.f32 %v5589_v48, %v1975_v52  ;;  %v6368_v48 = vld [vmem:[#allocation5 + $0x8] sm:$0xff]  ;;  %v4985_v52 = vor.u32 %v5493_v53, %v4984_v50  ;;  %v2311_v50 = vperm.slane %v6393_v47, 0  ;;  %v4872_v53 = vld [vmem:[#allocation16 + $0xd8] sm:$0xf] }
 0x8db   :  { %v1981_v60 = vadd.f32 %v5590_v34, %v1978_v54  ;;  %2697 = vmatpush.bf16.msrb.mxu1 %v4985_v52  ;;  %v5485_v34 = vld [vmem:[#allocation16 + $0x1a4] sm:$0xf0]  ;;  %v5463_v52 = vld [vmem:[#allocation16 + $0xf4] sm:$0xf0] }
 0x8dc   :  { %v4953_v54 = vor.u32 %v5485_v34, %v4952_v57  ;;  %v4873_v34 = vor.u32 %v5463_v52, %v4872_v53 }
 0x8dd   :  { %v1982_v4 = vpack.c.bf16 %v1981_v60, %v1980_v59  ;;  %v5469_v59 = vld [vmem:[#allocation16 + $0x124] sm:$0xf0] }
 0x8de   :  { %v4889_v60 = vor.u32 %v5469_v59, %v4888_v11 }
 0x8df   :  { %2193 = vmatmul.bf16.vlgmr.msrb.gmra.mxu3 %v1982_v4  ;;  %2207 = vmatmul.bf16.vlgmr.msrb.gmra.mxu0 %v1982_v4 }
 0x8e0   :  { %2221 = vmatmul.bf16.vlgmr.msra.gmra.mxu1 %v1982_v4  ;;  %2235 = vmatmul.bf16.vlgmr.msra.gmra.mxu2 %v1982_v4  ;;  %v4856_v4 = vld [vmem:[#allocation16 + $0xc8] sm:$0xf] }
 0x8e1   :  { %2735 = vmatpush.bf16.msrb.mxu3 %v4993_v5  ;;  %2754 = vmatpush.bf16.msrb.mxu0 %v4997_v6  ;;  %v5461_v5 = vld [vmem:[#allocation16 + $0xe4] sm:$0xf0] }
 0x8e2   :  { %2698 = vmatpush.bf16.msrb.mxu1 %v4953_v54  ;;  %v4857_v55 = vor.u32 %v5461_v5, %v4856_v4  ;;  %v4824_v6 = vld [vmem:[#allocation16 + $0x88] sm:$0xf] }
 0x8e3   :  { %v4825_v1 = vor.u32 %v5453_v26, %v4824_v6  ;;  %v5447_v6 = vld [vmem:[#allocation16 + $0x74] sm:$0xf0] }
 0x8e5   :  { %2736 = vmatpush.bf16.msrb.mxu3 %v4961_v36  ;;  %2755 = vmatpush.bf16.msrb.mxu0 %v4965_v45  ;;  %v4792_v36 = vld [vmem:[#allocation16 + $0x48] sm:$0xf]  ;;  %v6378_v45 = vld [vmem:[#allocation10 + $0xd] sm:$0xf] }
 0x8e6   :  { %2699 = vmatpush.bf16.msrb.mxu1 %v4921_v30  ;;  %v4793_v8 = vor.u32 %v5445_v37, %v4792_v36  ;;  %v2019_v3 = vperm.slane %v6378_v45, 2  ;;  %v5455_v30 = vld [vmem:[#allocation16 + $0xb4] sm:$0xf0] }
 0x8e7   :  { %v4841_v11 = vor.u32 %v5455_v30, %v4840_v44  ;;  %v5465_v30 = vld [vmem:[#allocation16 + $0x10c] sm:$0xf] }
 0x8e9   :  { %2737 = vmatpush.bf16.msrb.mxu3 %v4929_v12  ;;  %2756 = vmatpush.bf16.msrb.mxu0 %v4933_v14  ;;  %v2020_v12 = vperm.slane %v6378_v45, 3  ;;  %v5437_v14 = vld [vmem:[#allocation16 + $0x24] sm:$0xf0] }
 0x8ea   :  { %2700 = vmatpush.bf16.msrb.mxu1 %v4889_v60  ;;  %v4761_v15 = vor.u32 %v5437_v14, %v4760_v63 }
 0x8ed   :  { %2738 = vmatpush.bf16.msrb.mxu3 %v4897_v16  ;;  %2757 = vmatpush.bf16.msrb.mxu0 %v4901_v61  ;;  %v5000_v16 = vld [vmem:[#allocation16 + $0x1d8] sm:$0xf] }
 0x8ee   :  { %2701 = vmatpush.bf16.msrb.mxu1 %v4857_v55  ;;  %v5001_v20 = vor.u32 %v5495_v17, %v5000_v16  ;;  %v4808_v55 = vld [vmem:[#allocation16 + $0x58] sm:$0xf] }
 0x8ef   :  { %2667 = vmatmul.bf16.vlgmr.msra.gmra.mxu3 %v6364_v21  ;;  %2686 = vmatmul.bf16.vlgmr.msra.gmra.mxu0 %v6364_v21 }
 0x8f1   :  { %2739 = vmatpush.bf16.msrb.mxu3 %v4865_v23  ;;  %2758 = vmatpush.bf16.msrb.mxu0 %v4869_v28  ;;  %v5487_v28 = vld [vmem:[#allocation16 + $0x1b4] sm:$0xf0] }
 0x8f2   :  { %2702 = vmatpush.bf16.msrb.mxu1 %v4825_v1  ;;  %v4969_v29 = vor.u32 %v5487_v28, %v4968_v25  ;;  %v4809_v1 = vor.u32 %v5447_v6, %v4808_v55 }
 0x8f5   :  { %2740 = vmatpush.bf16.msrb.mxu3 %v4833_v33  ;;  %2759 = vmatpush.bf16.msrb.mxu0 %v4837_v35  ;;  %v5479_v35 = vld [vmem:[#allocation16 + $0x174] sm:$0xf0] }
 0x8f6   :  { %2703 = vmatpush.bf16.msrb.mxu1 %v4793_v8 }
 0x8f9   :  { %2741 = vmatpush.bf16.msrb.mxu3 %v4801_v40  ;;  %2760 = vmatpush.bf16.msrb.mxu0 %v4805_v43  ;;  %v4937_v40 = vor.u32 %v5479_v35, %v4936_v10  ;;  %v4904_v43 = vld [vmem:[#allocation16 + $0x118] sm:$0xf] }
 0x8fa   :  { %2704 = vmatpush.bf16.msrb.mxu1 %v4761_v15  ;;  %v4905_v13 = vor.u32 %v5471_v46, %v4904_v43  ;;  %v2018_v15 = vperm.slane %v6378_v45, 1 }
 0x8fd   :  { %2742 = vmatpush.bf16.msrb.mxu3 %v4769_v7  ;;  %2761 = vmatpush.bf16.msrb.mxu0 %v4773_v49  ;;  %v2312_v49 = vperm.slane %v6393_v47, 1 }
 0x8fe   :  { %2705 = vmatmul.bf16.vlgmr.msrb.gmra.mxu1 %v6364_v21 }
 0x8ff   :  { %2672 = vmatmul.bf16.gmra.mxu3 %v6368_v48  ;;  %2691 = vmatmul.bf16.gmra.mxu0 %v6368_v48 }
 0x900   :  { %2773 = vmatpush.bf16.msra.mxu1 %v5001_v20 }
 0x904   :  { %2774 = vmatpush.bf16.msra.mxu1 %v4969_v29 }
 0x908   :  { %2775 = vmatpush.bf16.msra.mxu1 %v4937_v40 }
 0x90c   :  { %2776 = vmatpush.bf16.msra.mxu1 %v4905_v13  ;;  %v5473_v13 = vld [vmem:[#allocation16 + $0x14c] sm:$0xf] }
 0x90e   :  { %2710 = vmatmul.bf16.gmra.mxu1 %v6368_v48 }
 0x90f   :  { %2743 = vmatmul.bf16.vlgmr.msrb.gmra.mxu3 %v6364_v21  ;;  %2762 = vmatmul.bf16.vlgmr.msrb.gmra.mxu0 %v6364_v21 }
 0x910   :  { %2777 = vmatpush.bf16.msra.mxu1 %v4873_v34 }
 0x914   :  { %2778 = vmatpush.bf16.msra.mxu1 %v4841_v11  ;;  %v4890_v11 = vld [vmem:[#allocation16 + $0x128] sm:$0xf0] }
 0x918   :  { %2779 = vmatpush.bf16.msra.mxu1 %v4809_v1  ;;  %v4858_v1 = vld [vmem:[#allocation16 + $0xe8] sm:$0xf0] }
 0x91f   :  { %2748 = vmatmul.bf16.gmra.mxu3 %v6368_v48  ;;  %2767 = vmatmul.bf16.gmra.mxu0 %v6368_v48 }
 0x95c   :  { %v6376_v27 = vpop.f32.mrf.mxu0 }
 0x95d   :  { %v2222_v9 = vpop.f32.mrf.mxu1 }
 0x95e   :  { %v2223_v61 = vadd.f32 %v2222_v9, %v2019_v3  ;;  %v4776_v9 = vld [vmem:[#allocation16 + $0x18] sm:$0xf] }
 0x962   :  { %v6382_v0 = vpop.f32.mrf.mxu3 }
 0x963   :  { %v2236_v58 = vpop.f32.mrf.mxu2 }
 0x964   :  { %v2237_v18 = vadd.f32 %v2236_v58, %v2020_v12  ;;  %v6384_v19 = vpop.f32.mrf.mxu0 }
 0x965   :  { %v2224_v31 = vpop.f32.mrf.mxu1  ;;  %v2211_v55 = vadd.f32 %v6384_v19, %v2018_v15 }
 0x966   :  { %v6386_v23 = vpack.c.bf16 %v2237_v18, %v2223_v61  ;;  %v2225_v42 = vadd.f32 %v2224_v31, %v2019_v3  ;;  %v5439_v3 = vld [vmem:[#allocation16 + $0x34] sm:$0xf0]  ;;  %v2209_v61 = vadd.f32 %v6376_v27, %v2018_v15  ;;  %v5489_v31 = vld [vmem:[#allocation16 + $0x1cc] sm:$0xf] }
 0x967   :  { %v4777_v63 = vor.u32 %v5439_v3, %v4776_v9 }
 0x969   :  { %2780 = vmatpush.bf16.msra.mxu1 %v4777_v63  ;;  %v4826_v63 = vld [vmem:[#allocation16 + $0xa8] sm:$0xf0] }
 0x96a   :  { %v6389_v32 = vpop.f32.mrf.mxu3 }
 0x96b   :  { %v2238_v33 = vpop.f32.mrf.mxu2 }
 0x96c   :  { %v2239_v38 = vadd.f32 %v2238_v33, %v2020_v12  ;;  %v2687_v39 = vpop.f32.mrf.mxu0  ;;  %v2017_v12 = vperm.slane %v6378_v45, 0  ;;  %2781 = vmatmul.bf16.vlgmr.msra.gmra.mxu1 %v6364_v21  ;;  %v4986_v45 = vld [vmem:[#allocation16 + $0x1e8] sm:$0xf0] }
 0x96d   :  { %v2688_v54 = vadd.f32 %v2687_v39, %v2312_v49  ;;  %v5481_v33 = vld [vmem:[#allocation16 + $0x18c] sm:$0xf] }
 0x96e   :  { %v6391_v41 = vpack.c.bf16 %v2239_v38, %v2225_v42  ;;  %v2195_v16 = vadd.f32 %v6382_v0, %v2017_v12  ;;  %v4989_v0 = vor.u32 %v5489_v31, %v4986_v45  ;;  %v4954_v38 = vld [vmem:[#allocation16 + $0x1a8] sm:$0xf0] }
 0x96f   :  { %v4957_v43 = vor.u32 %v5481_v33, %v4954_v38  ;;  %v5433_v38 = vld [vmem:[#allocation16 + $0xc] sm:$0xf] }
 0x970   :  { %v6403_v25 = vpack.c.bf16 %v2209_v61, %v2195_v16  ;;  %2716 = vmatpush.bf16.msrb.mxu2 %v4989_v0 }
 0x972   :  { %v2668_v7 = vpop.f32.mrf.mxu3 }
 0x973   :  { %v2669_v56 = vadd.f32 %v2668_v7, %v2311_v50  ;;  %v4922_v7 = vld [vmem:[#allocation16 + $0x168] sm:$0xf0] }
 0x974   :  { %v2689_v57 = vpop.f32.mrf.mxu0  ;;  %2717 = vmatpush.bf16.msrb.mxu2 %v4957_v43 }
 0x975   :  { %v2811_v60 = vpack.c.bf16 %v2688_v54, %v2669_v56  ;;  %v2690_v4 = vadd.f32 %v2689_v57, %v2312_v49  ;;  %v6407_v54 = vperm.slane %v6393_v47, 4 }
 0x977   :  { %v2839_v37 = vunpack.c.l.b16 %v2811_v60  ;;  %v2994_v39 = vrot.slane %v2811_v60, 4 }
 0x979   :  { %v2996_v57 = vunpack.c.l.b16 %v2994_v39  ;;  %v4762_v39 = vld [vmem:[#allocation16 + $0x28] sm:$0xf0] }
 0x97a   :  { %v2670_v59 = vpop.f32.mrf.mxu3  ;;  %v4765_v43 = vor.u32 %v5433_v38, %v4762_v39  ;;  %v6445_v39 = vld [vmem:[%s6610_s3 + $0x1] sm:$0x1] }
 0x97b   :  { %v2671_v5 = vadd.f32 %v2670_v59, %v2311_v50  ;;  %v2197_v59 = vadd.f32 %v6389_v32, %v2017_v12  ;;  %v5449_v12 = vld [vmem:[#allocation16 + $0x8c] sm:$0xf]  ;;  %vm240_vm6 = vcmp.gt.f32.partialorder %v6445_v39, 0.0 }
 0x97c   :  { %v2692_v26 = vpop.f32.mrf.mxu0  ;;  %2786 = vmatmul.bf16.gmra.mxu1 %v6368_v48 }
 0x97d   :  { %v2815_v36 = vpack.c.bf16 %v2690_v4, %v2671_v5  ;;  %v2693_v18 = vadd.f32 %v2692_v26, %v2312_v49  ;;  %v4893_v5 = vor.u32 %v5465_v30, %v4890_v11  ;;  %v5457_v26 = vld [vmem:[#allocation16 + $0xcc] sm:$0xf]  ;;  %v5459_v11 = vld [vmem:[#allocation16 + $0xdc] sm:$0xf] }
 0x97e   :  { %v4861_v32 = vor.u32 %v5457_v26, %v4858_v1 }
 0x97f   :  { %v2840_v8 = vunpack.c.l.b16 %v2815_v36  ;;  %v2995_v28 = vrot.slane %v2815_v36, 4  ;;  %v6417_v36 = vpack.c.bf16 %v2211_v55, %v2197_v59  ;;  %v4874_v59 = vld [vmem:[#allocation16 + $0xf8] sm:$0xf0] }
 0x980   :  { %v5443_v55 = vld [vmem:[#allocation16 + $0x5c] sm:$0xf] }
 0x981   :  { %v2841_v14 = vpack.c.b16 %v2840_v8, %v2839_v37  ;;  %v2997_v46 = vunpack.c.l.b16 %v2995_v28 }
 0x982   :  { %v2673_v58 = vpop.f32.mrf.mxu3 }
 0x983   :  { %2850 = vmatpush.bf16.xpose.msra.mxu3 %v2841_v14  ;;  %v2674_v20 = vadd.f32 %v2673_v58, %v2311_v50  ;;  %v2998_v56 = vpack.c.b16 %v2997_v46, %v2996_v57  ;;  %v5475_v57 = vld [vmem:[#allocation16 + $0x15c] sm:$0xf] }
 0x984   :  { %v2694_v17 = vpop.f32.mrf.mxu0 }
 0x985   :  { %v2819_v10 = vpack.c.bf16 %v2693_v18, %v2674_v20  ;;  %v2695_v35 = vadd.f32 %v2694_v17, %v2312_v49  ;;  %v6410_v49 = vperm.slane %v6393_v47, 5  ;;  %v4829_v17 = vor.u32 %v5449_v12, %v4826_v63  ;;  %v5441_v18 = vld [vmem:[#allocation16 + $0x4c] sm:$0xf] }
 0x986   :  { %v4794_v20 = vld [vmem:[#allocation16 + $0x68] sm:$0xf0] }
 0x987   :  { %v2858_v53 = vunpack.c.l.b16 %v2819_v10  ;;  %v3016_v15 = vrot.slane %v2819_v10, 4  ;;  %v5491_v10 = vld [vmem:[#allocation16 + $0x1dc] sm:$0xf] }
 0x989   :  { %v3018_v45 = vunpack.c.l.b16 %v3016_v15 }
 0x98a   :  { %v2675_v29 = vpop.f32.mrf.mxu3  ;;  %2851 = vmatmul.bf16.vlgmr.msra.gmra.mxu3 %v6403_v25 }
 0x98b   :  { %v2676_v42 = vadd.f32 %v2675_v29, %v2311_v50  ;;  %v4925_v50 = vor.u32 %v5473_v13, %v4922_v7  ;;  %v5483_v13 = vld [vmem:[#allocation16 + $0x19c] sm:$0xf] }
 0x98c   :  { %v2763_v27 = vpop.f32.mrf.mxu0  ;;  %v4970_v7 = vld [vmem:[#allocation16 + $0x1b8] sm:$0xf0] }
 0x98d   :  { %v2823_v40 = vpack.c.bf16 %v2695_v35, %v2676_v42  ;;  %v2764_v4 = vadd.f32 %v2763_v27, %v6410_v49  ;;  %2718 = vmatpush.bf16.msrb.mxu2 %v4925_v50  ;;  %v4797_v42 = vor.u32 %v5441_v18, %v4794_v20 }
 0x98f   :  { %v2859_v52 = vunpack.c.l.b16 %v2823_v40  ;;  %v3017_v9 = vrot.slane %v2823_v40, 4  ;;  %v5002_v40 = vld [vmem:[#allocation16 + $0x1f8] sm:$0xf0] }
 0x990   :  { %v5005_v46 = vor.u32 %v5491_v10, %v5002_v40 }
 0x991   :  { %v2860_v34 = vpack.c.b16 %v2859_v52, %v2858_v53  ;;  %2719 = vmatpush.bf16.msrb.mxu2 %v4893_v5  ;;  %v3019_v61 = vunpack.c.l.b16 %v3017_v9  ;;  %v2992_v53 = vrot.slane %v6403_v25, 4  ;;  %v4973_v52 = vor.u32 %v5483_v13, %v4970_v7 }
 0x992   :  { %v2744_v44 = vpop.f32.mrf.mxu3  ;;  %v4877_v25 = vor.u32 %v5459_v11, %v4874_v59 }
 0x993   :  { %2869 = vmatpush.bf16.xpose.msra.mxu0 %v2860_v34  ;;  %v2745_v60 = vadd.f32 %v2744_v44, %v6407_v54  ;;  %v3020_v0 = vpack.c.b16 %v3019_v61, %v3018_v45  ;;  %v4938_v34 = vld [vmem:[#allocation16 + $0x178] sm:$0xf0] }
 0x994   :  { %v2765_v6 = vpop.f32.mrf.mxu0  ;;  %v4941_v50 = vor.u32 %v5475_v57, %v4938_v34  ;;  %v4906_v44 = vld [vmem:[#allocation16 + $0x138] sm:$0xf0] }
 0x995   :  { %v2813_v37 = vpack.c.bf16 %v2764_v4, %v2745_v60  ;;  %v2766_v8 = vadd.f32 %v2765_v6, %v6410_v49  ;;  %2720 = vmatpush.bf16.msrb.mxu2 %v4861_v32  ;;  %v5451_v60 = vld [vmem:[#allocation16 + $0x9c] sm:$0xf] }
 0x996   :  { %v4842_v4 = vld [vmem:[#allocation16 + $0xb8] sm:$0xf0] }
 0x997   :  { %v3085_v14 = vrot.slane %v2813_v37, 4  ;;  %v2928_v58 = vunpack.c.l.b16 %v2813_v37  ;;  %v4845_v5 = vor.u32 %v5451_v60, %v4842_v4  ;;  %v4810_v6 = vld [vmem:[#allocation16 + $0x78] sm:$0xf0] }
 0x998   :  { %v4813_v1 = vor.u32 %v5443_v55, %v4810_v6  ;;  %v4778_v32 = vld [vmem:[#allocation16 + $0x38] sm:$0xf0] }
 0x999   :  { %v3087_v28 = vunpack.c.l.b16 %v3085_v14  ;;  %2721 = vmatpush.bf16.msrb.mxu2 %v4829_v17 }
 0x99a   :  { %v2746_v3 = vpop.f32.mrf.mxu3  ;;  %2870 = vmatmul.bf16.vlgmr.msra.gmra.mxu0 %v6417_v36 }
 0x99b   :  { %3007 = vmatpush.bf16.xpose.msrb.mxu0 %v2998_v56  ;;  %v2747_v19 = vadd.f32 %v2746_v3, %v6407_v54  ;;  %v5467_v56 = vld [vmem:[#allocation16 + $0x11c] sm:$0xf] }
 0x99c   :  { %v4909_v30 = vor.u32 %v5467_v56, %v4906_v44  ;;  %v2768_v37 = vpop.f32.mrf.mxu0 }
 0x99d   :  { %v2817_v16 = vpack.c.bf16 %v2766_v8, %v2747_v19  ;;  %2722 = vmatpush.bf16.msrb.mxu2 %v4797_v42  ;;  %v5435_v8 = vld [vmem:[#allocation16 + $0x1c] sm:$0xf]  ;;  %v2769_v12 = vadd.f32 %v2768_v37, %v6410_v49 }
 0x99e   :  { %v4781_v9 = vor.u32 %v5435_v8, %v4778_v32  ;;  %v6465_v32 = vperm.slane %v6393_v47, 2 }
 0x99f   :  { %v2929_v29 = vunpack.c.l.b16 %v2817_v16  ;;  %v3086_v31 = vrot.slane %v2817_v16, 4 }
 0x9a1   :  { %v2930_v33 = vpack.c.b16 %v2929_v29, %v2928_v58  ;;  %v3088_v35 = vunpack.c.l.b16 %v3086_v31  ;;  %2723 = vmatpush.bf16.msrb.mxu2 %v4765_v43 }
 0x9a2   :  { %v2749_v26 = vpop.f32.mrf.mxu3 }
 0x9a3   :  { %v3089_v27 = vpack.c.b16 %v3088_v35, %v3087_v28  ;;  %2942 = vmatpush.bf16.msrb.mxu1 %v2930_v33  ;;  %v2750_v3 = vadd.f32 %v2749_v26, %v6407_v54  ;;  %v2706_v26 = vpop.f32.mrf.mxu1 }
 0x9a4   :  { %2724 = vmatmul.bf16.vlgmr.msrb.gmra.mxu2 %v6364_v21  ;;  %v2770_v15 = vpop.f32.mrf.mxu0 }
 0x9a5   :  { %2792 = vmatpush.bf16.msra.mxu2 %v5005_v46  ;;  %v2821_v63 = vpack.c.bf16 %v2769_v12, %v2750_v3  ;;  %v2771_v16 = vadd.f32 %v2770_v15, %v6410_v49 }
 0x9a7   :  { %3029 = vmatpush.bf16.xpose.msra.mxu1 %v3020_v0  ;;  %v3107_v58 = vrot.slane %v2821_v63, 4  ;;  %v2950_v17 = vunpack.c.l.b16 %v2821_v63 }
 0x9a9   :  { %2793 = vmatpush.bf16.msra.mxu2 %v4973_v52  ;;  %v3109_v18 = vunpack.c.l.b16 %v3107_v58 }
 0x9aa   :  { %3008 = vmatmul.bf16.vlgmr.msrb.gmra.mxu0 %v2992_v53  ;;  %v2751_v14 = vpop.f32.mrf.mxu3 }
 0x9ab   :  { %v2752_v19 = vadd.f32 %v2751_v14, %v6407_v54  ;;  %v2708_v63 = vpop.f32.mrf.mxu1 }
 0x9ac   :  { %v2709_v58 = vadd.f32 %v2708_v63, %v6465_v32 }
 0x9ad   :  { %2794 = vmatpush.bf16.msra.mxu2 %v4941_v50  ;;  %v2825_v61 = vpack.c.bf16 %v2771_v16, %v2752_v19  ;;  %v2707_v19 = vadd.f32 %v2706_v26, %v6465_v32 }
 0x9af   :  { %v2951_v20 = vunpack.c.l.b16 %v2825_v61  ;;  %v3108_v28 = vrot.slane %v2825_v61, 4 }
 0x9b1   :  { %2795 = vmatpush.bf16.msra.mxu2 %v4909_v30  ;;  %v2952_v29 = vpack.c.b16 %v2951_v20, %v2950_v17  ;;  %v3110_v31 = vunpack.c.l.b16 %v3108_v28 }
 0x9b3   :  { %v3111_v45 = vpack.c.b16 %v3110_v31, %v3109_v18  ;;  %2964 = vmatpush.bf16.msrb.mxu3 %v2952_v29 }
 0x9b4   :  { %2729 = vmatmul.bf16.gmra.mxu2 %v6368_v48 }
 0x9b5   :  { %2796 = vmatpush.bf16.msra.mxu2 %v4877_v25 }
 0x9b7   :  { %3123 = vmatpush.bf16.msra.mxu3 %v3111_v45 }
 0x9b9   :  { %2797 = vmatpush.bf16.msra.mxu2 %v4845_v5 }
 0x9bd   :  { %2798 = vmatpush.bf16.msra.mxu2 %v4813_v1 }
 0x9c1   :  { %2799 = vmatpush.bf16.msra.mxu2 %v4781_v9  ;;  %v6468_v9 = vperm.slane %v6393_v47, 3 }
 0x9c4   :  { %2800 = vmatmul.bf16.vlgmr.msra.gmra.mxu2 %v6364_v21  ;;  %v6434_v21 = vld [vmem:[%s6610_s3] sm:$0x1]  ;;  %s6028_s3 = smov [#allocation22]  }
 0x9c5   :  { %3101 = vmatpush.bf16.msrb.mxu2 %v3089_v27  ;;  %vm239_vm4 = vcmp.gt.f32.partialorder %v6434_v21, 0.0  ;;  %v242_v27 = vsel %vm240_vm6, 0.0, %v6026_v62  ;;  %s4069_s6 = sshll.u32 %s6028_s3, 4  ;;  %s4070_s6 = int_to_ptr.vmem [resolvable:$true] %s4069_s6 }
 0x9c6   :  { %v241_v54 = vsel %vm239_vm4, 0.0, %v6026_v62  ;;  %v6450_v43 = vperm.slane %v242_v27, 0 }
 0x9c7   :  { %v6438_v49 = vperm.slane %v241_v54, 0 }
 0x9d4   :  { %2805 = vmatmul.bf16.gmra.mxu2 %v6368_v48 }
 0xa0d   :  { %v2852_v33 = vpop.f32.mrf.mxu3 }
 0xa0e   :  { %v2853_v35 = vadd.f32 %v2852_v33, %v6438_v49 }
 0xa10   :  { %v2876_v42 = vsel %vm2875_vm5, %v2853_v35, -inf }
 0xa11   :  { %2877 = vmax.xlane.f32.xlu2 %v2876_v42 }
 0xa15   :  { %v2854_v0 = vpop.f32.mrf.mxu3 }
 0xa16   :  { %v5503_v0 = vld [vmem:[#allocation17 + $0x38] sm:$0xff] }
 0xa17   :  { %v2871_v48 = vpop.f32.mrf.mxu0 }
 0xa18   :  { %v2872_v13 = vadd.f32 %v2871_v48, %v6450_v43 }
 0xa1a   :  { %v2879_v53 = vsel %vm2875_vm5, %v2872_v13, -inf }
 0xa1f   :  { %v2873_v38 = vpop.f32.mrf.mxu0 }
 0xa20   :  { %v5502_v38 = vld [vmem:[#allocation17 + $0x30] sm:$0xff] }
 0xa27   :  { %v3009_v10 = vpop.f32.mrf.mxu0  ;;  %v2725_v1 = vpop.f32.mrf.mxu2 }
 0xa28   :  { %v3010_v40 = vadd.f32 %v3009_v10, %v6438_v49  ;;  %v2726_v15 = vadd.f32 %v2725_v1, %v6468_v9  ;;  %v5501_v10 = vld [vmem:[#allocation17 + $0x28] sm:$0xff] }
 0xa2a   :  { %v3035_v46 = vsel %vm2875_vm5, %v3010_v40, -inf  ;;  %v6474_v18 = vpack.c.bf16 %v2726_v15, %v2707_v19 }
 0xa2b   :  { %3036 = vmax.xlane.f32.xlu0 %v3035_v46  ;;  %v2711_v46 = vpop.f32.mrf.mxu1 }
 0xa2c   :  { %v3274_v31 = vunpack.c.l.b16 %v6474_v18 }
 0xa2f   :  { %v3011_v7 = vpop.f32.mrf.mxu0  ;;  %v2727_v14 = vpop.f32.mrf.mxu2 }
 0xa30   :  { %v2728_v16 = vadd.f32 %v2727_v14, %v6468_v9  ;;  %v5497_v14 = vld [vmem:[#allocation17 + $0x8] sm:$0xff] }
 0xa32   :  { %v6476_v20 = vpack.c.bf16 %v2728_v16, %v2709_v58 }
 0xa33   :  { %2880 = vmax.xlane.f32.xlu0 %v2879_v53 }
 0xa34   :  { %v3275_v45 = vunpack.c.l.b16 %v6476_v20 }
 0xa84   :  { %v2878_v52 = vpop.xlane.xlu2 %2877 }
 0xa85   :  { %v2882_v57 = vsub.f32 %v2853_v35, %v2878_v52  ;;  %v3276_v35 = vpack.c.b16 %v3275_v45, %v3274_v31  ;;  %v2318_v31 = vperm.slane %v6393_v47, 7 }
 0xa87   :  { %v2884_v34 = vmul.f32 1.442695, %v2882_v57  ;;  %3285 = vmatpush.bf16.xpose.msra.mxu2 %v3276_v35  ;;  %v5499_v57 = vld [vmem:[#allocation17 + $0x18] sm:$0xff] }
 0xa89   :  { %5637 = vpow2.f32 %v2884_v34  ;;  %v3014_v34 = vrot.slane %v6417_v36, 4  ;;  %v2712_v36 = vadd.f32 %v2711_v46, %v6465_v32 }
 0xa8f   :  { %v5638_v50 = vpop.eup %5637 }
 0xa90   :  { %v2888_v62 = vsel %vm2875_vm5, %v5638_v50, 0.0 }
 0xa91   :  { %2889 = vadd.xlane.f32.xlu1 %v2888_v62 }
 0xa9e   :  { %v3037_v56 = vpop.xlane.xlu0 %3036 }
 0xa9f   :  { %v3041_v44 = vsub.f32 %v3010_v40, %v3037_v56  ;;  %v5500_v40 = vld [vmem:[#allocation17 + $0x20] sm:$0xff] }
 0xaa1   :  { %v3043_v30 = vmul.f32 1.442695, %v3041_v44 }
 0xaa3   :  { %5639 = vpow2.f32 %v3043_v30  ;;  %v3490_v30 = vrot.slane %v6474_v18, 4 }
 0xaa5   :  { %v3492_v58 = vunpack.c.l.b16 %v3490_v30 }
 0xaa6   :  { %v2881_v11 = vpop.xlane.xlu0 %2880 }
 0xaa7   :  { %v2883_v59 = vsub.f32 %v2872_v13, %v2881_v11  ;;  %v2730_v13 = vpop.f32.mrf.mxu2  ;;  %v5498_v11 = vld [vmem:[#allocation17 + $0x10] sm:$0xff] }
 0xaa9   :  { %v6456_v25 = vpop.eup %5639  ;;  %v2886_v60 = vmul.f32 1.442695, %v2883_v59 }
 0xaaa   :  { %v3047_v4 = vsel %vm2875_vm5, %v6456_v25, 0.0 }
 0xaab   :  { %5641 = vpow2.f32 %v2886_v60  ;;  %3048 = vadd.xlane.f32.xlu2 %v3047_v4  ;;  %v3491_v4 = vrot.slane %v6476_v20, 4 }
 0xaad   :  { %v3493_v16 = vunpack.c.l.b16 %v3491_v4 }
 0xab1   :  { %v6460_v5 = vpop.eup %5641 }
 0xab2   :  { %v2891_v55 = vsel %vm2875_vm5, %v6460_v5, 0.0 }
 0xab3   :  { %2892 = vadd.xlane.f32.xlu1 %v2891_v55  ;;  %v2713_v55 = vpop.f32.mrf.mxu1 }
 0xab4   :  { %v2714_v1 = vadd.f32 %v2713_v55, %v6465_v32 }
 0xb04   :  { %v2890_v6 = vpop.xlane.xlu1 %2889 }
 0xb05   :  { %5643 = vrcp.f32 %v2890_v6  ;;  %v2905_v12 = vand.u32 2147483648, %v2890_v6  ;;  %v2903_v61 = vand.u32 2147483647, %v2890_v6  ;;  %vm2899_vm8 = vweird.f32 %v2890_v6 }
 0xb07   :  { %v2906_v29 = vor.u32 1.1754944e-38, %v2905_v12  ;;  %vm2904_vm11 = vcmp.eq.f32.partialorder %v2903_v61, 8.507059e+37 }
 0xb0b   :  { %v5644_v37 = vpop.eup %5643 }
 0xb0c   :  { %v2895_v8 = vmul.f32 %v5644_v37, %v2890_v6  ;;  %vm2900_vm7 = vweird.f32 %v5644_v37  ;;  %v2732_v6 = vpop.f32.mrf.mxu2 }
 0xb0d   :  { %vm2901_vm10 = vmor %vm2899_vm8, %vm2900_vm7 }
 0xb0e   :  { %v2896_v3 = vsub.f32 1.0, %v2895_v8  ;;  %v2733_v8 = vadd.f32 %v2732_v6, %v6468_v9 }
 0xb10   :  { %v2897_v17 = vmul.f32 %v5644_v37, %v2896_v3  ;;  %v2824_v18 = vpack.c.bf16 %v2733_v8, %v2714_v1 }
 0xb12   :  { %v2898_v28 = vadd.f32 %v5644_v37, %v2897_v17 }
 0xb14   :  { %v2902_v54 = vsel %vm2901_vm10, %v5644_v37, %v2898_v28  ;;  %v2731_v37 = vadd.f32 %v2730_v13, %v6468_v9  ;;  %v5496_v9 = vld [vmem:[#allocation17] sm:$0xff] }
 0xb15   :  { %v2907_v33 = vsel %vm2904_vm11, %v2906_v29, %v2902_v54  ;;  %v2317_v29 = vperm.slane %v6393_v47, 6  ;;  %v3494_v54 = vpack.c.b16 %v3493_v16, %v3492_v58 }
 0xb16   :  { %v2922_v42 = vmul.f32 %v5638_v50, %v2907_v33  ;;  %v2820_v61 = vpack.c.bf16 %v2731_v37, %v2712_v36  ;;  %v2801_v33 = vpop.f32.mrf.mxu2 }
 0xb18   :  { %v2924_v48 = vpack.c.bf16 %v2922_v42, %v2922_v42  ;;  %v3293_v42 = vunpack.c.l.b16 %v2820_v61  ;;  %v3512_v13 = vrot.slane %v2820_v61, 4 }
 0xb1a   :  { %5006 = vmatmul.msk.bf16.vlgmr.msrb.gmra.mxu1 %vm2875_vm5, %v2924_v48 }
 0xb1b   :  { %3258 = vmatpush.bf16.msrb.mxu1 %v5503_v0  ;;  %v3294_v0 = vunpack.c.l.b16 %v2824_v18 }
 0xb1d   :  { %v3295_v47 = vpack.c.b16 %v3294_v0, %v3293_v42 }
 0xb1e   :  { %v3049_v27 = vpop.xlane.xlu2 %3048 }
 0xb1f   :  { %5645 = vrcp.f32 %v3049_v27  ;;  %3259 = vmatpush.bf16.msrb.mxu1 %v5502_v38  ;;  %v3064_v62 = vand.u32 2147483648, %v3049_v27  ;;  %v3062_v44 = vand.u32 2147483647, %v3049_v27  ;;  %vm3058_vm13 = vweird.f32 %v3049_v27 }
 0xb21   :  { %v3065_v60 = vor.u32 1.1754944e-38, %v3064_v62  ;;  %vm3063_vm9 = vcmp.eq.f32.partialorder %v3062_v44, 8.507059e+37 }
 0xb23   :  { %3260 = vmatpush.bf16.msrb.mxu1 %v5501_v10  ;;  %v2802_v10 = vadd.f32 %v2801_v33, %v2318_v31 }
 0xb25   :  { %v5646_v7 = vpop.eup %5645 }
 0xb26   :  { %v3054_v53 = vmul.f32 %v5646_v7, %v3049_v27  ;;  %v2893_v52 = vpop.xlane.xlu1 %2892  ;;  %vm3059_vm12 = vweird.f32 %v5646_v7 }
 0xb27   :  { %5647 = vrcp.f32 %v2893_v52  ;;  %3261 = vmatpush.bf16.msrb.mxu1 %v5500_v40  ;;  %vm3060_vm14 = vmor %vm3058_vm13, %vm3059_vm12  ;;  %v2919_v17 = vand.u32 2147483648, %v2893_v52  ;;  %v2917_v28 = vand.u32 2147483647, %v2893_v52  ;;  %vm2913_vm0 = vweird.f32 %v2893_v52 }
 0xb28   :  { %v3055_v50 = vsub.f32 1.0, %v3054_v53 }
 0xb29   :  { %v2920_v35 = vor.u32 1.1754944e-38, %v2919_v17  ;;  %vm2918_vm2 = vcmp.eq.f32.partialorder %v2917_v28, 8.507059e+37 }
 0xb2a   :  { %v3056_v56 = vmul.f32 %v5646_v7, %v3055_v50  ;;  %3030 = vmatmul.bf16.vlgmr.msra.gmra.mxu1 %v3014_v34 }
 0xb2b   :  { %3262 = vmatpush.bf16.msrb.mxu1 %v5499_v57  ;;  %v2803_v57 = vpop.f32.mrf.mxu2 }
 0xb2c   :  { %v3057_v59 = vadd.f32 %v5646_v7, %v3056_v56  ;;  %v2804_v62 = vadd.f32 %v2803_v57, %v2318_v31  ;;  %v3514_v56 = vunpack.c.l.b16 %v3512_v13 }
 0xb2d   :  { %v5648_v26 = vpop.eup %5647 }
 0xb2e   :  { %v3061_v3 = vsel %vm3060_vm14, %v5646_v7, %v3057_v59  ;;  %v2909_v12 = vmul.f32 %v5648_v26, %v2893_v52  ;;  %vm2914_vm15 = vweird.f32 %v5648_v26  ;;  %v3513_v7 = vrot.slane %v2824_v18, 4 }
 0xb2f   :  { %v3066_v63 = vsel %vm3063_vm9, %v3065_v60, %v3061_v3  ;;  %3263 = vmatpush.bf16.msrb.mxu1 %v5498_v11  ;;  %vm2915_vm1 = vmor %vm2913_vm0, %vm2914_vm15 }
 0xb30   :  { %v3081_v19 = vmul.f32 %v6456_v25, %v3066_v63  ;;  %v2910_v15 = vsub.f32 1.0, %v2909_v12  ;;  %v2782_v25 = vpop.f32.mrf.mxu1  ;;  %v3515_v44 = vunpack.c.l.b16 %v3513_v7 }
 0xb31   :  { %v2783_v27 = vadd.f32 %v2782_v25, %v2317_v29 }
 0xb32   :  { %v3083_v20 = vpack.c.bf16 %v3081_v19, %v3081_v19  ;;  %v2911_v32 = vmul.f32 %v5648_v26, %v2910_v15  ;;  %v3516_v4 = vpack.c.b16 %v3515_v44, %v3514_v56 }
 0xb33   :  { %3264 = vmatpush.bf16.msrb.mxu1 %v5497_v14  ;;  %v2814_v53 = vpack.c.bf16 %v2802_v10, %v2783_v27  ;;  %v2806_v37 = vpop.f32.mrf.mxu2 }
 0xb34   :  { %v2912_v45 = vadd.f32 %v5648_v26, %v2911_v32  ;;  %5008 = vmatmul.msk.bf16.vlgmr.msrb.gmra.mxu2 %vm2875_vm5, %v3083_v20  ;;  %v2807_v63 = vadd.f32 %v2806_v37, %v2318_v31 }
 0xb35   :  { %v3581_v50 = vrot.slane %v2814_v53, 4  ;;  %v3362_v30 = vunpack.c.l.b16 %v2814_v53 }
 0xb36   :  { %v2916_v48 = vsel %vm2915_vm1, %v5648_v26, %v2912_v45 }
 0xb37   :  { %v2921_v38 = vsel %vm2918_vm2, %v2920_v35, %v2916_v48  ;;  %3265 = vmatpush.bf16.msrb.mxu1 %v5496_v9  ;;  %v6494_v59 = vunpack.c.l.b16 %v3581_v50 }
 0xb38   :  { %v2923_v40 = vmul.f32 %v6460_v5, %v2921_v38  ;;  %v2784_v52 = vpop.f32.mrf.mxu1 }
 0xb39   :  { %v2785_v34 = vadd.f32 %v2784_v52, %v2317_v29  ;;  %v260_v52 = vsel %vm256_vm3, %v6445_v39, -inf }
 0xb3a   :  { %v2925_v46 = vpack.c.bf16 %v2923_v40, %v2923_v40  ;;  %v257_v40 = vsel %vm256_vm3, %v6434_v21, -inf }
 0xb3b   :  { %3503 = vmatpush.bf16.xpose.msra.mxu1 %v3494_v54  ;;  %v2818_v11 = vpack.c.bf16 %v2804_v62, %v2785_v34  ;;  %v2808_v12 = vpop.f32.mrf.mxu2 }
 0xb3c   :  { %5007 = vmatmul.msk.bf16.vlgmr.msrb.gmra.mxu3 %vm2875_vm5, %v2925_v46  ;;  %v2809_v14 = vadd.f32 %v2808_v12, %v2318_v31 }
 0xb3d   :  { %3304 = vmatpush.bf16.xpose.msrb.mxu3 %v3295_v47  ;;  %v3363_v5 = vunpack.c.l.b16 %v2818_v11  ;;  %v3582_v60 = vrot.slane %v2818_v11, 4 }
 0xb3f   :  { %v3364_v55 = vpack.c.b16 %v3363_v5, %v3362_v30  ;;  %v6496_v6 = vunpack.c.l.b16 %v3582_v60 }
 0xb40   :  { %v2787_v26 = vpop.f32.mrf.mxu1 }
 0xb41   :  { %v2788_v36 = vadd.f32 %v2787_v26, %v2317_v29  ;;  %v3585_v1 = vpack.c.b16 %v6496_v6, %v6494_v59  ;;  %3376 = vmatpush.bf16.msrb.mxu2 %v3364_v55 }
 0xb43   :  { %v2822_v19 = vpack.c.bf16 %v2807_v63, %v2788_v36 }
 0xb44   :  { %3286 = vmatmul.bf16.vlgmr.msra.gmra.mxu2 %v6386_v23 }
 0xb45   :  { %3525 = vmatpush.bf16.xpose.msra.mxu2 %v3516_v4  ;;  %v3384_v58 = vunpack.c.l.b16 %v2822_v19  ;;  %v3603_v16 = vrot.slane %v2822_v19, 4 }
 0xb47   :  { %v6501_v18 = vunpack.c.l.b16 %v3603_v16 }
 0xb48   :  { %v2789_v8 = vpop.f32.mrf.mxu1 }
 0xb49   :  { %v2790_v3 = vadd.f32 %v2789_v8, %v2317_v29 }
 0xb4b   :  { %v2826_v15 = vpack.c.bf16 %v2809_v14, %v2790_v3 }
 0xb4d   :  { %v3385_v17 = vunpack.c.l.b16 %v2826_v15  ;;  %v3604_v61 = vrot.slane %v2826_v15, 4 }
 0xb4f   :  { %v6503_v20 = vpack.c.b16 %v3385_v17, %v3384_v58  ;;  %v6505_v32 = vunpack.c.l.b16 %v3604_v61  ;;  %v3488_v17 = vrot.slane %v6386_v23, 4  ;;  %v5509_v23 = vld [vmem:[#allocation17 + $0x68] sm:$0xff] }
 0xb51   :  { %v3607_v28 = vpack.c.b16 %v6505_v32, %v6501_v18  ;;  %v5510_v32 = vld [vmem:[#allocation17 + $0x70] sm:$0xff] }
 0xb97   :  { %v2944_v9 = vpop.f32.mrf.mxu1 }
 0xb9f   :  { %v2946_v29 = vpop.f32.mrf.mxu1 }
 0xba7   :  { %v3031_v45 = vpop.f32.mrf.mxu1 }
 0xba8   :  { %v3032_v31 = vadd.f32 %v3031_v45, %v6450_v43 }
 0xbaa   :  { %v3038_v54 = vsel %vm2875_vm5, %v3032_v31, -inf }
 0xbab   :  { %3039 = vmax.xlane.f32.xlu2 %v3038_v54 }
 0xbaf   :  { %v3033_v25 = vpop.f32.mrf.mxu1 }
 0xbb7   :  { %v6511_v33 = vpop.f32.mrf.mxu2 }
 0xbbf   :  { %v2966_v35 = vpop.f32.mrf.mxu3  ;;  %v3105_v42 = vpop.f32.mrf.mxu2 }
 0xbc0   :  { %v5508_v42 = vld [vmem:[#allocation17 + $0x60] sm:$0xff] }
 0xbc7   :  { %v2968_v0 = vpop.f32.mrf.mxu3  ;;  %v3287_v48 = vpop.f32.mrf.mxu2 }
 0xbc8   :  { %v3288_v38 = vadd.f32 %v3287_v48, %v6438_v49  ;;  %v3510_v0 = vrot.slane %v6391_v41, 4  ;;  %v5507_v48 = vld [vmem:[#allocation17 + $0x58] sm:$0xff] }
 0xbca   :  { %v3310_v27 = vsel %vm2875_vm5, %v3288_v38, -inf }
 0xbcb   :  { %3311 = vmax.xlane.f32.xlu0 %v3310_v27  ;;  %v5505_v27 = vld [vmem:[#allocation17 + $0x48] sm:$0xff] }
 0xbcf   :  { %v3289_v10 = vpop.f32.mrf.mxu2 }
 0xbd0   :  { %v5504_v10 = vld [vmem:[#allocation17 + $0x40] sm:$0xff] }
 0xbd3   :  { %258 = vmax.xlane.f32.xlu0 %v257_v40 }
 0xc1e   :  { %v3040_v47 = vpop.xlane.xlu2 %3039 }
 0xc1f   :  { %v3042_v46 = vsub.f32 %v3032_v31, %v3040_v47 }
 0xc21   :  { %v3045_v13 = vmul.f32 1.442695, %v3042_v46 }
 0xc23   :  { %5649 = vpow2.f32 %v3045_v13 }
 0xc29   :  { %v5650_v7 = vpop.eup %5649 }
 0xc2a   :  { %v3050_v53 = vsel %vm2875_vm5, %v5650_v7, 0.0 }
 0xc2b   :  { %3051 = vadd.xlane.f32.xlu1 %v3050_v53 }
 0xc33   :  { %261 = vmax.xlane.f32.xlu1 %v260_v52 }
 0xc3e   :  { %v3312_v57 = vpop.xlane.xlu0 %3311 }
 0xc3f   :  { %v3316_v34 = vsub.f32 %v3288_v38, %v3312_v57  ;;  %v5506_v38 = vld [vmem:[#allocation17 + $0x50] sm:$0xff] }
 0xc41   :  { %v3318_v50 = vmul.f32 1.442695, %v3316_v34 }
 0xc43   :  { %5651 = vpow2.f32 %v3318_v50 }
 0xc46   :  { %v259_v56 = vpop.xlane.xlu0 %258 }
 0xc47   :  { %vm263_vm4 = vcmp.gt.f32.partialorder %v259_v56, 0.0 }
 0xc48   :  { %v4092_v30 = vsel %vm263_vm4, 1.0, %v6027_v22 }
 0xc49   :  { %v6518_v62 = vpop.eup %5651  ;;  %v6523_v60 = vperm.slane %v4092_v30, 0 }
 0xc4a   :  { %v3322_v21 = vsel %vm2875_vm5, %v6518_v62, 0.0 }
 0xc4b   :  { %3323 = vadd.xlane.f32.xlu2 %v3322_v21  ;;  %v2972_v3 = vmul.f32 %v6523_v60, %v2944_v9  ;;  %v5511_v9 = vld [vmem:[#allocation17 + $0x78] sm:$0xff]  ;;  %v3129_v13 = vmul.f32 %v6511_v33, %v6523_v60 }
 0xc4c   :  { %3196 = vmatpush.bf16.msra.mxu0 %v5511_v9 }
 0xc50   :  { %3197 = vmatpush.bf16.msra.mxu0 %v5510_v32 }
 0xc54   :  { %3198 = vmatpush.bf16.msra.mxu0 %v5509_v23 }
 0xc58   :  { %3199 = vmatpush.bf16.msra.mxu0 %v5508_v42 }
 0xc5c   :  { %3200 = vmatpush.bf16.msra.mxu0 %v5507_v48  ;;  %v5519_v48 = vld [vmem:[#allocation17 + $0xb8] sm:$0xff] }
 0xc60   :  { %3201 = vmatpush.bf16.msra.mxu0 %v5506_v38 }
 0xc64   :  { %3202 = vmatpush.bf16.msra.mxu0 %v5505_v27 }
 0xc68   :  { %3203 = vmatpush.bf16.msra.mxu0 %v5504_v10  ;;  %v5518_v10 = vld [vmem:[#allocation17 + $0xb0] sm:$0xff] }
 0xc6c   :  { %3471 = vmatpush.bf16.msrb.mxu0 %v5519_v48 }
 0xc70   :  { %3472 = vmatpush.bf16.msrb.mxu0 %v5518_v10 }
 0xc9e   :  { %v3052_v44 = vpop.xlane.xlu1 %3051 }
 0xc9f   :  { %5653 = vrcp.f32 %v3052_v44  ;;  %v3078_v26 = vand.u32 2147483648, %v3052_v44  ;;  %v3076_v8 = vand.u32 2147483647, %v3052_v44  ;;  %vm3072_vm8 = vweird.f32 %v3052_v44 }
 0xca1   :  { %v3079_v14 = vor.u32 1.1754944e-38, %v3078_v26  ;;  %vm3077_vm11 = vcmp.eq.f32.partialorder %v3076_v8, 8.507059e+37 }
 0xca5   :  { %v5654_v11 = vpop.eup %5653 }
 0xca6   :  { %v3068_v5 = vmul.f32 %v5654_v11, %v3052_v44  ;;  %v262_v39 = vpop.xlane.xlu1 %261  ;;  %vm3073_vm7 = vweird.f32 %v5654_v11 }
 0xca7   :  { %vm264_vm6 = vcmp.gt.f32.partialorder %v262_v39, 0.0  ;;  %vm3074_vm10 = vmor %vm3072_vm8, %vm3073_vm7 }
 0xca8   :  { %v3069_v4 = vsub.f32 1.0, %v3068_v5  ;;  %v4093_v55 = vsel %vm264_vm6, 1.0, %v6027_v22 }
 0xca9   :  { %v6526_v36 = vperm.slane %v4093_v55, 0 }
 0xcaa   :  { %v3070_v37 = vmul.f32 %v5654_v11, %v3069_v4 }
 0xcab   :  { %v2973_v12 = vmul.f32 %v6526_v36, %v2966_v35 }
 0xcac   :  { %v3071_v63 = vadd.f32 %v5654_v11, %v3070_v37 }
 0xcad   :  { %v2974_v19 = vpack.c.bf16 %v2973_v12, %v2972_v3 }
 0xcae   :  { %v3075_v15 = vsel %vm3074_vm10, %v5654_v11, %v3071_v63 }
 0xcaf   :  { %v3080_v58 = vsel %vm3077_vm11, %v3079_v14, %v3075_v15  ;;  %3266 = vmatmul.bf16.vlgmr.msrb.gmra.mxu1 %v2974_v19 }
 0xcb0   :  { %v3082_v22 = vmul.f32 %v5650_v7, %v3080_v58  ;;  %3619 = vmatpush.bf16.msrb.mxu1 %v3607_v28 }
 0xcb2   :  { %v3084_v16 = vpack.c.bf16 %v3082_v22, %v3082_v22 }
 0xcb4   :  { %5009 = vmatmul.msk.bf16.vlgmr.msra.gmra.mxu3 %vm2875_vm5, %v3084_v16 }
 0xcb5   :  { %3398 = vmatpush.bf16.msra.mxu3 %v6503_v20 }
 0xcbe   :  { %v3324_v61 = vpop.xlane.xlu2 %3323 }
 0xcbf   :  { %5655 = vrcp.f32 %v3324_v61  ;;  %3504 = vmatmul.bf16.vlgmr.msra.gmra.mxu1 %v3488_v17  ;;  %v3339_v45 = vand.u32 2147483648, %v3324_v61  ;;  %v3337_v20 = vand.u32 2147483647, %v3324_v61  ;;  %vm3333_vm13 = vweird.f32 %v3324_v61 }
 0xcc1   :  { %v3340_v25 = vor.u32 1.1754944e-38, %v3339_v45  ;;  %vm3338_vm9 = vcmp.eq.f32.partialorder %v3337_v20, 8.507059e+37 }
 0xcc4   :  { %3305 = vmatmul.bf16.vlgmr.msrb.gmra.mxu3 %v6391_v41 }
 0xcc5   :  { %v5656_v29 = vpop.eup %5655  ;;  %3597 = vmatpush.bf16.msrb.mxu3 %v3585_v1 }
 0xcc6   :  { %v3329_v18 = vmul.f32 %v5656_v29, %v3324_v61  ;;  %vm3334_vm12 = vweird.f32 %v5656_v29 }
 0xcc7   :  { %vm3335_vm14 = vmor %vm3333_vm13, %vm3334_vm12 }
 0xcc8   :  { %v3330_v28 = vsub.f32 1.0, %v3329_v18 }
 0xcca   :  { %v3331_v31 = vmul.f32 %v5656_v29, %v3330_v28 }
 0xccc   :  { %v3332_v54 = vadd.f32 %v5656_v29, %v3331_v31 }
 0xcce   :  { %v3336_v35 = vsel %vm3335_vm14, %v5656_v29, %v3332_v54 }
 0xccf   :  { %v3341_v59 = vsel %vm3338_vm9, %v3340_v25, %v3336_v35 }
 0xcd0   :  { %v3356_v6 = vmul.f32 %v6518_v62, %v3341_v59 }
 0xcd2   :  { %v3358_v1 = vpack.c.bf16 %v3356_v6, %v3356_v6 }
 0xcd4   :  { %5074 = vmatmul.msk.bf16.vlgmr.msrb.gmra.mxu2 %vm2875_vm5, %v3358_v1 }
 0xce4   :  { %3526 = vmatmul.bf16.vlgmr.msra.gmra.mxu2 %v3510_v0 }
 0xd2c   :  { %v6543_v40 = vpop.f32.mrf.mxu1 }
 0xd34   :  { %v6545_v47 = vpop.f32.mrf.mxu1 }
 0xd37   :  { %v3125_v46 = vpop.f32.mrf.mxu3 }
 0xd38   :  { %v3130_v7 = vmul.f32 %v3125_v46, %v6526_v36 }
 0xd3a   :  { %v3131_v41 = vpack.c.bf16 %v3130_v7, %v3129_v13  ;;  %v5517_v7 = vld [vmem:[#allocation17 + $0xa8] sm:$0xff] }
 0xd3b   :  { %3473 = vmatpush.bf16.msrb.mxu0 %v5517_v7 }
 0xd3c   :  { %3204 = vmatmul.bf16.vlgmr.msra.gmra.mxu0 %v3131_v41  ;;  %v3505_v53 = vpop.f32.mrf.mxu1 }
 0xd3d   :  { %v3506_v52 = vadd.f32 %v3505_v53, %v6438_v49 }
 0xd3f   :  { %v3127_v57 = vpop.f32.mrf.mxu3  ;;  %v3531_v34 = vsel %vm2875_vm5, %v3506_v52, -inf }
 0xd40   :  { %3532 = vmax.xlane.f32.xlu0 %v3531_v34  ;;  %v5516_v57 = vld [vmem:[#allocation17 + $0xa0] sm:$0xff] }
 0xd41   :  { %3474 = vmatpush.bf16.msrb.mxu0 %v5516_v57  ;;  %v5200_v57 = vld [vmem:[#allocation19 + $0x70] sm:$0xf] }
 0xd44   :  { %v3507_v50 = vpop.f32.mrf.mxu1 }
 0xd45   :  { %v5515_v50 = vld [vmem:[#allocation17 + $0x98] sm:$0xff] }
 0xd46   :  { %3475 = vmatpush.bf16.msrb.mxu0 %v5515_v50  ;;  %v5542_v50 = vld [vmem:[#allocation19 + $0x74] sm:$0xf] }
 0xd47   :  { %v3306_v62 = vpop.f32.mrf.mxu3 }
 0xd48   :  { %v3307_v21 = vadd.f32 %v3306_v62, %v6450_v43 }
 0xd4a   :  { %v3313_v56 = vsel %vm2875_vm5, %v3307_v21, -inf }
 0xd4b   :  { %3314 = vmax.xlane.f32.xlu2 %v3313_v56  ;;  %v5514_v56 = vld [vmem:[#allocation17 + $0x90] sm:$0xff] }
 0xd4c   :  { %3476 = vmatpush.bf16.msrb.mxu0 %v5514_v56 }
 0xd4f   :  { %v3308_v44 = vpop.f32.mrf.mxu3 }
 0xd57   :  { %v6554_v33 = vpop.f32.mrf.mxu2 }
 0xd5f   :  { %v3380_v30 = vpop.f32.mrf.mxu2 }
 0xd67   :  { %v3527_v11 = vpop.f32.mrf.mxu2 }
 0xd68   :  { %v3528_v5 = vadd.f32 %v3527_v11, %v6450_v43 }
 0xd6a   :  { %v3534_v49 = vsel %vm2875_vm5, %v3528_v5, -inf }
 0xd6b   :  { %3535 = vmax.xlane.f32.xlu1 %v3534_v49  ;;  %v5513_v49 = vld [vmem:[#allocation17 + $0x88] sm:$0xff] }
 0xd6c   :  { %3477 = vmatpush.bf16.msrb.mxu0 %v5513_v49  ;;  %v5194_v49 = vld [vmem:[#allocation19 + $0x68] sm:$0xf0] }
 0xd6f   :  { %v3529_v39 = vpop.f32.mrf.mxu2 }
 0xdb3   :  { %v3533_v4 = vpop.xlane.xlu0 %3532 }
 0xdb4   :  { %v3537_v55 = vsub.f32 %v3506_v52, %v3533_v4 }
 0xdb6   :  { %v3539_v26 = vmul.f32 1.442695, %v3537_v55 }
 0xdb8   :  { %5657 = vpow2.f32 %v3539_v26 }
 0xdbe   :  { %v5658_v37 = vpop.eup %5657  ;;  %v3315_v8 = vpop.xlane.xlu2 %3314 }
 0xdbf   :  { %v3317_v3 = vsub.f32 %v3307_v21, %v3315_v8  ;;  %v3543_v12 = vsel %vm2875_vm5, %v5658_v37, 0.0 }
 0xdc0   :  { %3544 = vadd.xlane.f32.xlu0 %v3543_v12  ;;  %v5512_v12 = vld [vmem:[#allocation17 + $0x80] sm:$0xff] }
 0xdc1   :  { %v3320_v63 = vmul.f32 1.442695, %v3317_v3  ;;  %v5527_v3 = vld [vmem:[#allocation17 + $0xf8] sm:$0xff]  ;;  %3478 = vmatpush.bf16.msrb.mxu0 %v5512_v12  ;;  %v5176_v12 = vld [vmem:[#allocation19 + $0x40] sm:$0xf] }
 0xdc2   :  { %3692 = vmatpush.bf16.msrb.mxu2 %v5527_v3 }
 0xdc3   :  { %5659 = vpow2.f32 %v3320_v63  ;;  %v5526_v63 = vld [vmem:[#allocation17 + $0xf0] sm:$0xff] }
 0xdc6   :  { %3693 = vmatpush.bf16.msrb.mxu2 %v5526_v63  ;;  %v5537_v63 = vld [vmem:[#allocation19 + $0x44] sm:$0xf0] }
 0xdc9   :  { %v5660_v14 = vpop.eup %5659 }
 0xdca   :  { %v3325_v19 = vsel %vm2875_vm5, %v5660_v14, 0.0 }
 0xdcb   :  { %3326 = vadd.xlane.f32.xlu2 %v3325_v19  ;;  %v5524_v19 = vld [vmem:[#allocation17 + $0xe0] sm:$0xff] }
 0xdde   :  { %v3536_v43 = vpop.xlane.xlu1 %3535 }
 0xddf   :  { %v3538_v15 = vsub.f32 %v3528_v5, %v3536_v43  ;;  %v5523_v43 = vld [vmem:[#allocation17 + $0xd8] sm:$0xff] }
 0xde1   :  { %v3541_v58 = vmul.f32 1.442695, %v3538_v15  ;;  %v5522_v15 = vld [vmem:[#allocation17 + $0xd0] sm:$0xff] }
 0xde3   :  { %5661 = vpow2.f32 %v3541_v58  ;;  %v5521_v58 = vld [vmem:[#allocation17 + $0xc8] sm:$0xff] }
 0xde9   :  { %v6560_v22 = vpop.eup %5661 }
 0xdea   :  { %v3546_v16 = vsel %vm2875_vm5, %v6560_v22, 0.0 }
 0xdeb   :  { %3547 = vadd.xlane.f32.xlu1 %v3546_v16 }
 0xe33   :  { %v3545_v17 = vpop.xlane.xlu0 %3544 }
 0xe34   :  { %5663 = vrcp.f32 %v3545_v17  ;;  %v3560_v38 = vand.u32 2147483648, %v3545_v17  ;;  %vm3554_vm4 = vweird.f32 %v3545_v17  ;;  %v3558_v27 = vand.u32 2147483647, %v3545_v17 }
 0xe36   :  { %v3561_v13 = vor.u32 1.1754944e-38, %v3560_v38  ;;  %vm3559_vm7 = vcmp.eq.f32.partialorder %v3558_v27, 8.507059e+37 }
 0xe3a   :  { %v5664_v9 = vpop.eup %5663 }
 0xe3b   :  { %v3550_v32 = vmul.f32 %v5664_v9, %v3545_v17  ;;  %vm3555_vm3 = vweird.f32 %v5664_v9  ;;  %v3404_v17 = vmul.f32 %v6554_v33, %v6523_v60 }
 0xe3c   :  { %vm3556_vm6 = vmor %vm3554_vm4, %vm3555_vm3 }
 0xe3d   :  { %v3551_v23 = vsub.f32 1.0, %v3550_v32 }
 0xe3e   :  { %v3327_v61 = vpop.xlane.xlu2 %3326 }
 0xe3f   :  { %5665 = vrcp.f32 %v3327_v61  ;;  %v3353_v45 = vand.u32 2147483648, %v3327_v61  ;;  %v3351_v20 = vand.u32 2147483647, %v3327_v61  ;;  %vm3347_vm0 = vweird.f32 %v3327_v61 }
 0xe40   :  { %v3552_v59 = vmul.f32 %v5664_v9, %v3551_v23 }
 0xe41   :  { %v3354_v25 = vor.u32 1.1754944e-38, %v3353_v45  ;;  %vm3352_vm2 = vcmp.eq.f32.partialorder %v3351_v20, 8.507059e+37 }
 0xe42   :  { %v3553_v0 = vadd.f32 %v5664_v9, %v3552_v59 }
 0xe44   :  { %v3557_v46 = vsel %vm3556_vm6, %v5664_v9, %v3553_v0 }
 0xe45   :  { %v5666_v29 = vpop.eup %5665  ;;  %v3562_v41 = vsel %vm3559_vm7, %v3561_v13, %v3557_v46 }
 0xe46   :  { %v3343_v18 = vmul.f32 %v5666_v29, %v3327_v61  ;;  %vm3348_vm15 = vweird.f32 %v5666_v29  ;;  %v3577_v53 = vmul.f32 %v5658_v37, %v3562_v41 }
 0xe47   :  { %vm3349_vm1 = vmor %vm3347_vm0, %vm3348_vm15 }
 0xe48   :  { %v3344_v28 = vsub.f32 1.0, %v3343_v18  ;;  %v3579_v34 = vpack.c.bf16 %v3577_v53, %v3577_v53 }
 0xe4a   :  { %v3345_v31 = vmul.f32 %v5666_v29, %v3344_v28 }
 0xe4c   :  { %v3346_v54 = vadd.f32 %v5666_v29, %v3345_v31 }
 0xe4e   :  { %v3350_v35 = vsel %vm3349_vm1, %v5666_v29, %v3346_v54  ;;  %v3205_v54 = vpop.f32.mrf.mxu0 }
 0xe4f   :  { %v3355_v42 = vsel %vm3352_vm2, %v3354_v25, %v3350_v35  ;;  %v3268_v33 = vadd.f32 %v6543_v40, %v3205_v54  ;;  %v5530_v54 = vld [vmem:[#allocation19 + $0x14] sm:$0xf] }
 0xe50   :  { %v3357_v6 = vmul.f32 %v5660_v14, %v3355_v42  ;;  %v5525_v14 = vld [vmem:[#allocation17 + $0xe8] sm:$0xff] }
 0xe51   :  { %3694 = vmatpush.bf16.msrb.mxu2 %v5525_v14  ;;  %v5536_v14 = vld [vmem:[#allocation19 + $0x44] sm:$0xf] }
 0xe52   :  { %v3359_v1 = vpack.c.bf16 %v3357_v6, %v3357_v6 }
 0xe54   :  { %5075 = vmatmul.msk.bf16.vlgmr.msra.gmra.mxu3 %vm2875_vm5, %v3359_v1  ;;  %v5591_v1 = vld [vmem:[#allocation10 + $0x19] ss:$0 sm:$0xff] }
 0xe55   :  { %3695 = vmatpush.bf16.msrb.mxu2 %v5524_v19  ;;  %v5177_v19 = vor.u32 %v5537_v63, %v5176_v12 }
 0xe56   :  { %v3207_v25 = vpop.f32.mrf.mxu0 }
 0xe57   :  { %v3270_v38 = vadd.f32 %v6545_v47, %v3207_v25 }
 0xe59   :  { %3696 = vmatpush.bf16.msrb.mxu2 %v5523_v43  ;;  %v5178_v43 = vld [vmem:[#allocation19 + $0x48] sm:$0xf0] }
 0xe5d   :  { %3697 = vmatpush.bf16.msrb.mxu2 %v5522_v15  ;;  %v5181_v15 = vor.u32 %v5536_v14, %v5178_v43 }
 0xe5e   :  { %v3548_v52 = vpop.xlane.xlu1 %3547 }
 0xe5f   :  { %5667 = vrcp.f32 %v3548_v52  ;;  %v3574_v30 = vand.u32 2147483648, %v3548_v52  ;;  %v3572_v5 = vand.u32 2147483647, %v3548_v52  ;;  %vm3568_vm10 = vweird.f32 %v3548_v52 }
 0xe61   :  { %v3575_v4 = vor.u32 1.1754944e-38, %v3574_v30  ;;  %vm3573_vm12 = vcmp.eq.f32.partialorder %v3572_v5, 8.507059e+37  ;;  %3698 = vmatpush.bf16.msrb.mxu2 %v5521_v58  ;;  %v5541_v30 = vld [vmem:[#allocation19 + $0x64] sm:$0xf0]  ;;  %v5168_v58 = vld [vmem:[#allocation19 + $0x30] sm:$0xf] }
 0xe64   :  { %5108 = vmatmul.msk.bf16.vlgmr.msrb.gmra.mxu3 %vm2875_vm5, %v3579_v34  ;;  %v5543_v34 = vld [vmem:[#allocation19 + $0x74] sm:$0xf0] }
 0xe65   :  { %v5668_v62 = vpop.eup %5667 }
 0xe66   :  { %v3564_v21 = vmul.f32 %v5668_v62, %v3548_v52  ;;  %vm3569_vm8 = vweird.f32 %v5668_v62 }
 0xe67   :  { %vm3570_vm11 = vmor %vm3568_vm10, %vm3569_vm8 }
 0xe68   :  { %v3565_v44 = vsub.f32 1.0, %v3564_v21  ;;  %v5202_v21 = vld [vmem:[#allocation19 + $0x78] sm:$0xf0] }
 0xe69   :  { %v5205_v56 = vor.u32 %v5542_v50, %v5202_v21  ;;  %v5549_v50 = vld [vmem:[#allocation20 + $0x28] sm:$0xff] }
 0xe6a   :  { %v3566_v11 = vmul.f32 %v5668_v62, %v3565_v44  ;;  %v5192_v44 = vld [vmem:[#allocation19 + $0x60] sm:$0xf] }
 0xe6b   :  { %3881 = vmatpush.bf16.msra.mxu0 %v5205_v56  ;;  %v5193_v5 = vor.u32 %v5541_v30, %v5192_v44  ;;  %v5556_v56 = vld [vmem:[#allocation20 + $0x60] sm:$0xff] }
 0xe6c   :  { %v3567_v39 = vadd.f32 %v5668_v62, %v3566_v11  ;;  %v5540_v11 = vld [vmem:[#allocation19 + $0x64] sm:$0xf] }
 0xe6e   :  { %v3571_v55 = vsel %vm3570_vm11, %v5668_v62, %v3567_v39  ;;  %v5201_v62 = vor.u32 %v5543_v34, %v5200_v57  ;;  %v5197_v39 = vor.u32 %v5540_v11, %v5194_v49  ;;  %v5557_v34 = vld [vmem:[#allocation20 + $0x68] sm:$0xff] }
 0xe6f   :  { %v3576_v26 = vsel %vm3573_vm12, %v3575_v4, %v3571_v55  ;;  %v5184_v4 = vld [vmem:[#allocation19 + $0x50] sm:$0xf]  ;;  %v5539_v55 = vld [vmem:[#allocation19 + $0x54] sm:$0xf0] }
 0xe70   :  { %v3578_v37 = vmul.f32 %v6560_v22, %v3576_v26  ;;  %v5520_v22 = vld [vmem:[#allocation17 + $0xc0] sm:$0xff]  ;;  %3867 = vmatpush.bf16.msra.mxu3 %v5201_v62  ;;  %3882 = vmatpush.bf16.msra.mxu0 %v5197_v39  ;;  %v5538_v26 = vld [vmem:[#allocation19 + $0x54] sm:$0xf] }
 0xe71   :  { %3699 = vmatpush.bf16.msrb.mxu2 %v5520_v22  ;;  %v5535_v22 = vld [vmem:[#allocation19 + $0x34] sm:$0xf0] }
 0xe72   :  { %v3580_v8 = vpack.c.bf16 %v3578_v37, %v3578_v37  ;;  %v5185_v37 = vor.u32 %v5539_v55, %v5184_v4  ;;  %v5592_v55 = vld [vmem:[#allocation8 + $0x4] ss:$0 sm:$0xff] }
 0xe74   :  { %5109 = vmatmul.msk.bf16.vlgmr.msrb.gmra.mxu1 %vm2875_vm5, %v3580_v8  ;;  %3868 = vmatpush.bf16.msra.mxu3 %v5193_v5  ;;  %v5186_v8 = vld [vmem:[#allocation19 + $0x58] sm:$0xf0] }
 0xe75   :  { %v5189_v3 = vor.u32 %v5538_v26, %v5186_v8 }
 0xe77   :  { %3883 = vmatpush.bf16.msra.mxu0 %v5189_v3  ;;  %v5593_v3 = vld [vmem:[#allocation8 + $0x5] ss:$0 sm:$0xff] }
 0xe78   :  { %3869 = vmatpush.bf16.msra.mxu3 %v5185_v37 }
 0xe7b   :  { %3884 = vmatpush.bf16.msra.mxu0 %v5181_v15 }
 0xe7c   :  { %3870 = vmatpush.bf16.msra.mxu3 %v5177_v19 }
 0xed7   :  { %v3400_v16 = vpop.f32.mrf.mxu3 }
 0xed8   :  { %v3405_v61 = vmul.f32 %v3400_v16, %v6526_v36  ;;  %v5534_v16 = vld [vmem:[#allocation19 + $0x34] sm:$0xf] }
 0xeda   :  { %v3406_v9 = vpack.c.bf16 %v3405_v61, %v3404_v17  ;;  %v5169_v17 = vor.u32 %v5535_v22, %v5168_v58  ;;  %v5170_v61 = vld [vmem:[#allocation19 + $0x38] sm:$0xf0]  ;;  %v5548_v22 = vld [vmem:[#allocation20 + $0x20] sm:$0xff] }
 0xedb   :  { %v5555_v58 = vld [vmem:[#allocation20 + $0x58] sm:$0xff] }
 0xedc   :  { %3479 = vmatmul.bf16.vlgmr.msrb.gmra.mxu0 %v3406_v9  ;;  %v5173_v9 = vor.u32 %v5534_v16, %v5170_v61  ;;  %3871 = vmatpush.bf16.msra.mxu3 %v5169_v17  ;;  %v5554_v16 = vld [vmem:[#allocation20 + $0x50] sm:$0xff]  ;;  %v5553_v17 = vld [vmem:[#allocation20 + $0x48] sm:$0xff] }
 0xedd   :  { %v5546_v61 = vld [vmem:[#allocation20 + $0x10] sm:$0xff] }
 0xede   :  { %3885 = vmatpush.bf16.msra.mxu0 %v5173_v9  ;;  %v5552_v9 = vld [vmem:[#allocation20 + $0x40] sm:$0xff] }
 0xedf   :  { %v3402_v29 = vpop.f32.mrf.mxu3 }
 0xee0   :  { %v5160_v29 = vld [vmem:[#allocation19 + $0x20] sm:$0xf] }
 0xee7   :  { %v3599_v18 = vpop.f32.mrf.mxu3 }
 0xee8   :  { %v3625_v45 = vmul.f32 %v3599_v18, %v6523_v60  ;;  %v5533_v18 = vld [vmem:[#allocation19 + $0x24] sm:$0xf0] }
 0xeef   :  { %v3601_v32 = vpop.f32.mrf.mxu3 }
 0xef0   :  { %v5532_v32 = vld [vmem:[#allocation19 + $0x24] sm:$0xf] }
 0xef1   :  { %v3621_v28 = vpop.f32.mrf.mxu1 }
 0xef2   :  { %v3626_v31 = vmul.f32 %v3621_v28, %v6526_v36  ;;  %v5161_v28 = vor.u32 %v5533_v18, %v5160_v29  ;;  %v5544_v29 = vld [vmem:[#allocation20] sm:$0xff]  ;;  %v3781_v18 = vld [vmem:[#allocation10 + $0x1a] sm:$0x3] }
 0xef4   :  { %v3627_v20 = vpack.c.bf16 %v3626_v31, %v3625_v45  ;;  %v5162_v45 = vld [vmem:[#allocation19 + $0x28] sm:$0xf0]  ;;  %3872 = vmatpush.bf16.msra.mxu3 %v5161_v28  ;;  %v3784_v28 = vperm.slane %v3781_v18, 1 }
 0xef5   :  { %v5165_v31 = vor.u32 %v5532_v32, %v5162_v45 }
 0xef6   :  { %3700 = vmatmul.bf16.vlgmr.msrb.gmra.mxu2 %v3627_v20  ;;  %v5152_v20 = vld [vmem:[#allocation19 + $0x10] sm:$0xf] }
 0xef7   :  { %3886 = vmatpush.bf16.msra.mxu0 %v5165_v31 }
 0xef9   :  { %v3623_v23 = vpop.f32.mrf.mxu1 }
 0xefa   :  { %v5531_v23 = vld [vmem:[#allocation19 + $0x14] sm:$0xf0] }
 0xf59   :  { %v3480_v35 = vpop.f32.mrf.mxu0 }
 0xf5a   :  { %v3485_v42 = vadd.f32 %v3480_v35, %v3268_v33  ;;  %v5153_v35 = vor.u32 %v5531_v23, %v5152_v20  ;;  %v5154_v33 = vld [vmem:[#allocation19 + $0x18] sm:$0xf0]  ;;  %v3783_v23 = vperm.slane %v3781_v18, 0 }
 0xf5c   :  { %3873 = vmatpush.bf16.msra.mxu3 %v5153_v35 }
 0xf61   :  { %v3482_v48 = vpop.f32.mrf.mxu0 }
 0xf62   :  { %v3486_v36 = vadd.f32 %v3482_v48, %v3270_v38  ;;  %v5528_v38 = vld [vmem:[#allocation19 + $0x4] sm:$0xf] }
 0xf79   :  { %v3701_v59 = vpop.f32.mrf.mxu2 }
 0xf7a   :  { %v3706_v6 = vadd.f32 %v3701_v59, %v3485_v42  ;;  %v5157_v59 = vor.u32 %v5530_v54, %v5154_v33 }
 0xf7c   :  { %v3708_v0 = vadd.f32 %v3706_v6, %v6342_v24  ;;  %3887 = vmatpush.bf16.msra.mxu0 %v5157_v59 }
 0xf7e   :  { %v6576_v60 = vadd.f32 %v5591_v1, %v3708_v0  ;;  %v5529_v0 = vld [vmem:[#allocation19 + $0x4] sm:$0xf0] }
 0xf80   :  { %3718 = vadd.xlane.f32.xlu2 %v6576_v60 }
 0xf81   :  { %v3703_v27 = vpop.f32.mrf.mxu2 }
 0xf82   :  { %v3707_v10 = vadd.f32 %v3703_v27, %v3486_v36  ;;  %v5146_v36 = vld [vmem:[#allocation19 + $0x8] sm:$0xf0] }
 0xf83   :  { %v5149_v27 = vor.u32 %v5528_v38, %v5146_v36  ;;  %v5594_v38 = vld [vmem:[#allocation10 + $0x1c] ss:$0 sm:$0xff] }
 0xf84   :  { %v3709_v46 = vadd.f32 %v3707_v10, %v6345_v51  ;;  %v5559_v10 = vld [vmem:[#allocation20 + $0x78] sm:$0xff] }
 0xf85   :  { %3888 = vmatpush.bf16.msra.mxu0 %v5149_v27  ;;  %4047 = vmatpush.bf16.msra.mxu2 %v5559_v10 }
 0xf86   :  { %v6580_v13 = vadd.f32 %v5591_v1, %v3709_v46  ;;  %v5144_v1 = vld [vmem:[#allocation19] sm:$0xf]  ;;  %v5551_v46 = vld [vmem:[#allocation20 + $0x38] sm:$0xff] }
 0xf87   :  { %v5145_v48 = vor.u32 %v5529_v0, %v5144_v1  ;;  %4033 = vmatpush.bf16.msra.mxu1 %v5551_v46 }
 0xf88   :  { %3720 = vadd.xlane.f32.xlu0 %v6580_v13 }
 0xf89   :  { %3874 = vmatpush.bf16.msra.mxu3 %v5145_v48 }
 0xff3   :  { %v3719_v40 = vpop.xlane.xlu2 %3718 }
 0xff4   :  { %v3722_v7 = vmul.f32 %v3719_v40, %v6169_v2 }
 0xff6   :  { %v6585_v24 = vsub.f32 %v6576_v60, %v3722_v7 }
 0xff8   :  { %v3726_v47 = vmul.f32 %v6585_v24, %v6585_v24 }
 0xffa   :  { %3728 = vadd.xlane.f32.xlu1 %v3726_v47  ;;  %v5558_v47 = vld [vmem:[#allocation20 + $0x70] sm:$0xff] }
 0xffb   :  { %v3721_v41 = vpop.xlane.xlu0 %3720  ;;  %4048 = vmatpush.bf16.msra.mxu2 %v5558_v47 }
 0xffc   :  { %v3723_v53 = vmul.f32 %v3721_v41, %v6169_v2  ;;  %v5550_v41 = vld [vmem:[#allocation20 + $0x30] sm:$0xff] }
 0xffd   :  { %4034 = vmatpush.bf16.msra.mxu1 %v5550_v41 }
 0xffe   :  { %v6591_v52 = vsub.f32 %v6580_v13, %v3723_v53 }
 0xfff   :  { %4049 = vmatpush.bf16.msra.mxu2 %v5557_v34 }
0x1000   :  { %v3727_v51 = vmul.f32 %v6591_v52, %v6591_v52 }
0x1001   :  { %4035 = vmatpush.bf16.msra.mxu1 %v5549_v50 }
0x1002   :  { %3730 = vadd.xlane.f32.xlu2 %v3727_v51 }
0x1003   :  { %4050 = vmatpush.bf16.msra.mxu2 %v5556_v56 }
0x1005   :  { %4036 = vmatpush.bf16.msra.mxu1 %v5548_v22 }
0x1007   :  { %4051 = vmatpush.bf16.msra.mxu2 %v5555_v58 }
0x100b   :  { %4052 = vmatpush.bf16.msra.mxu2 %v5554_v16 }
0x100f   :  { %4053 = vmatpush.bf16.msra.mxu2 %v5553_v17 }
0x1013   :  { %4054 = vmatpush.bf16.msra.mxu2 %v5552_v9 }
0x106d   :  { %v3729_v25 = vpop.xlane.xlu1 %3728 }
0x106e   :  { %v3732_v42 = vmul.f32 %v3729_v25, %v6169_v2 }
0x1070   :  { %v3734_v6 = vadd.f32 1e-12, %v3732_v42 }
0x1072   :  { %5669 = vrsqrt.f32 %v3734_v6  ;;  %vm3742_vm13 = vweird.f32 %v3734_v6 }
0x1075   :  { %v3731_v40 = vpop.xlane.xlu2 %3730 }
0x1076   :  { %v3733_v7 = vmul.f32 %v3731_v40, %v6169_v2 }
0x1078   :  { %v5670_v53 = vpop.eup %5669  ;;  %v3735_v51 = vadd.f32 1e-12, %v3733_v7 }
0x1079   :  { %v3737_v57 = vmul.f32 %v5670_v53, %v3734_v6  ;;  %vm3743_vm5 = vweird.f32 %v5670_v53 }
0x107a   :  { %5671 = vrsqrt.f32 %v3735_v51  ;;  %vm3744_vm14 = vmor %vm3742_vm13, %vm3743_vm5  ;;  %vm3752_vm15 = vweird.f32 %v3735_v51 }
0x107b   :  { %v3738_v62 = vmul.f32 %v5670_v53, %v3737_v57 }
0x107d   :  { %v3739_v21 = vmul.f32 0.5, %v3738_v62 }
0x107f   :  { %v3740_v44 = vsub.f32 1.5, %v3739_v21 }
0x1080   :  { %v5672_v30 = vpop.eup %5671 }
0x1081   :  { %v3741_v2 = vmul.f32 %v5670_v53, %v3740_v44  ;;  %v3747_v11 = vmul.f32 %v5672_v30, %v3735_v51  ;;  %vm3753_vm9 = vweird.f32 %v5672_v30 }
0x1082   :  { %vm3754_vm0 = vmor %vm3752_vm15, %vm3753_vm9 }
0x1083   :  { %v3748_v5 = vmul.f32 %v5672_v30, %v3747_v11  ;;  %v3745_v49 = vsel %vm3744_vm14, %v5670_v53, %v3741_v2 }
0x1084   :  { %v3756_v26 = vmul.f32 %v3745_v49, %v6585_v24  ;;  %v5547_v24 = vld [vmem:[#allocation20 + $0x18] sm:$0xff] }
0x1085   :  { %v3749_v39 = vmul.f32 0.5, %v3748_v5  ;;  %4037 = vmatpush.bf16.msra.mxu1 %v5547_v24 }
0x1086   :  { %v3759_v12 = vmul.f32 %v5592_v55, %v3756_v26 }
0x1087   :  { %v3750_v4 = vsub.f32 1.5, %v3749_v39 }
0x1088   :  { %v3762_v19 = vadd.f32 %v5593_v3, %v3759_v12 }
0x1089   :  { %v3751_v37 = vmul.f32 %v5672_v30, %v3750_v4  ;;  %4038 = vmatpush.bf16.msra.mxu1 %v5546_v61 }
0x108b   :  { %v3755_v8 = vsel %vm3754_vm0, %v5672_v30, %v3751_v37 }
0x108c   :  { %v3757_v63 = vmul.f32 %v3755_v8, %v6591_v52  ;;  %v5545_v52 = vld [vmem:[#allocation20 + $0x8] sm:$0xff] }
0x108d   :  { %4039 = vmatpush.bf16.msra.mxu1 %v5545_v52 }
0x108e   :  { %v3760_v14 = vmul.f32 %v5592_v55, %v3757_v63 }
0x1090   :  { %v3763_v43 = vadd.f32 %v5593_v3, %v3760_v14 }
0x1091   :  { %4040 = vmatpush.bf16.msra.mxu1 %v5544_v29 }
0x1092   :  { %v3764_v15 = vpack.c.bf16 %v3763_v43, %v3762_v19 }
0x1094   :  { %3875 = vmatmul.bf16.vlgmr.msra.gmra.mxu3 %v3764_v15  ;;  %3889 = vmatmul.bf16.vlgmr.msra.gmra.mxu0 %v3764_v15 }
0x1111   :  { %v3890_v32 = vpop.f32.mrf.mxu0 }
0x1112   :  { %v3891_v31 = vadd.f32 %v3890_v32, %v3784_v28 }
0x1114   :  { %v3896_v25 = vmax.f32 %v3891_v31, 0.0 }
0x1117   :  { %v3876_v45 = vpop.f32.mrf.mxu3 }
0x1118   :  { %v3877_v33 = vadd.f32 %v3876_v45, %v3783_v23 }
0x1119   :  { %v3892_v20 = vpop.f32.mrf.mxu0 }
0x111a   :  { %v3893_v54 = vadd.f32 %v3892_v20, %v3784_v28  ;;  %v3895_v1 = vmax.f32 %v3877_v33, 0.0 }
0x111c   :  { %v3898_v35 = vmax.f32 %v3893_v54, 0.0 }
0x111e   :  { %v3900_v42 = vpack.c.bf16 %v3898_v35, %v3896_v25 }
0x111f   :  { %v3878_v59 = vpop.f32.mrf.mxu3 }
0x1120   :  { %v3879_v6 = vadd.f32 %v3878_v59, %v3783_v23  ;;  %4055 = vmatmul.bf16.vlgmr.msra.gmra.mxu2 %v3900_v42 }
0x1122   :  { %v3897_v0 = vmax.f32 %v3879_v6, 0.0 }
0x1124   :  { %v3899_v48 = vpack.c.bf16 %v3897_v0, %v3895_v1 }
0x1126   :  { %4041 = vmatmul.bf16.vlgmr.msra.gmra.mxu1 %v3899_v48 }
0x11a3   :  { %v4042_v36 = vpop.f32.mrf.mxu1  ;;  %v4056_v27 = vpop.f32.mrf.mxu2 }
0x11a4   :  { %v4043_v10 = vadd.f32 %v5594_v38, %v4042_v36 }
0x11a6   :  { %v4057_v46 = vadd.f32 %v4056_v27, %v4043_v10 }
0x11a8   :  { %v4061_v40 = vadd.f32 %v4057_v46, %v6576_v60 }
0x11aa   :  { %4063 = vst [vmem:[#allocation22] sm:$0xff] %v4061_v40 }
0x11ab   :  { %v4044_v7 = vpop.f32.mrf.mxu1  ;;  %v4058_v41 = vpop.f32.mrf.mxu2 }
0x11ac   :  { %v4045_v47 = vadd.f32 %v5594_v38, %v4044_v7 }
0x11ae   :  { %v4059_v53 = vadd.f32 %v4058_v41, %v4045_v47 }
0x11b0   :  { %v4062_v51 = vadd.f32 %v4059_v53, %v6580_v13 }
0x11b2   :  { %4064 = vst [vmem:[#allocation22 + $0x8] sm:$0xff] %v4062_v51 }
0x11b3   :  { %4077 = dma.vmem_to_hbm [thread:$0]  %s4070_s6, 256, %s4072_s19, [#allocation4], %s6015_s4, %s6015_s4, %s6016_s24  }
0x11b4   :  { %6001 = dma.done.wait [#allocation4], 256  }
0x11b5   :  { %6002 = vsyncadd [#allocation4], 4294967040 }
0x11b6   :  { %4082 = vsyncpa [#allocation3], 1 }
0x11b7   :  { %4083 = vsyncpa [#allocation6], 1 }
0x11b8   :  { %4084 = vsyncpa [#allocation9], 1 }
0x11b9   :  { %4085 = vsyncpa [#allocation12], 1 }
0x11ba   :  { %4086 = vsyncpa [#allocation15], 1 }
0x11bb   :  { %4087 = vsyncpa [#allocation18], 1 }
0x11bc   :  { %4088 = vsyncpa [#allocation21], 1 }
0x11bd   :  { %4089 = vsyncpa [#allocation4], 1 }

</bundles_post_ra>
